<compile_context>
chip_gen: v7x
topology: tpu7x:2x2x1
jax: 0.10.0
libtpu: 0.0.40
codegen_flags: <defaults>
</compile_context>

<pallas_src>
import math
import functools

import jax
import jax.numpy as jnp
from jax import lax
from jax.experimental import pallas as pl
from jax.experimental.pallas import tpu as pltpu


# ----------------------------------------------------------------------------
# Kernel helpers
# ----------------------------------------------------------------------------
def _erf(x):
    """erf via Abramowitz & Stegun 7.1.26 (max abs err ~1.5e-7)."""
    a1, a2, a3, a4, a5 = (0.254829592, -0.284496736, 1.421413741,
                          -1.453152027, 1.061405429)
    p = 0.3275911
    sign = jnp.where(x >= 0.0, 1.0, -1.0)
    ax = jnp.abs(x)
    t = 1.0 / (1.0 + p * ax)
    poly = ((((a5 * t + a4) * t + a3) * t + a2) * t + a1) * t
    y = 1.0 - poly * jnp.exp(-ax * ax)
    return sign * y


def _gelu_exact(x):
    return 0.5 * x * (1.0 + _erf(x * (2.0 ** -0.5)))


# ----------------------------------------------------------------------------
# Pallas kernel: one grid step == a block of `bb` batch elements
# ----------------------------------------------------------------------------
def bayes_attn_kernel(x_ref, wkqv_ref, bkqv_ref, ab_ref, gamma_ref, beta_ref,
                      wout_ref, bout_ref, eps_ref, out_ref,
                      *, scale, bb, n_seq, n_hid, n_dim):
    # ---- fused K/Q/V projection: one big-M, 3*n_hid-lane MXU matmul ---------
    x2 = x_ref[...].reshape(bb * n_seq, n_dim)             # leading-dim merge
    kqv = jnp.dot(x2, wkqv_ref[...],
                  preferred_element_type=jnp.float32) + bkqv_ref[...]
    kqv = kqv.reshape(bb, n_seq, 3 * n_hid)
    k = kqv[:, :, 0 * n_hid:1 * n_hid]
    q = kqv[:, :, 1 * n_hid:2 * n_hid]
    v = kqv[:, :, 2 * n_hid:3 * n_hid]

    # ---- attention (batched over the bb batch elements) ---------------------
    # PyTorch: weight[b,i,j] = softmax_i( (k^T q)[b,i,j] * B**-0.5 )
    # Computed transposed (logits_t[b,j,i] == logits[b,i,j]) so the softmax
    # reduction runs over the lane (last) axis instead of sublanes.
    logits_t = lax.dot_general(
        q, k, dimension_numbers=(((1,), (1,)), ((0,), (0,))),
        preferred_element_type=jnp.float32) * scale         # (bb, Hj, Hi)
    logits_t = logits_t - jnp.max(logits_t, axis=-1, keepdims=True)
    expw = jnp.exp(logits_t)
    attn_t = expw / jnp.sum(expw, axis=-1, keepdims=True)   # softmax over i

    # out[b,s,j] = sum_i v[b,s,i]*weight[b,i,j] = sum_i v[b,s,i]*attn_t[b,j,i]
    out = lax.dot_general(
        v, attn_t, dimension_numbers=(((2,), (2,)), ((0,), (0,))),
        preferred_element_type=jnp.float32)                  # (bb, S, H)
    out = out + ab_ref[...]                                  # (S,H) bias bcast

    # LayerNorm over last dim (eps=1e-5, biased variance, affine)
    mean = jnp.mean(out, axis=-1, keepdims=True)
    var = jnp.mean((out - mean) ** 2, axis=-1, keepdims=True)
    out = (out - mean) * lax.rsqrt(var + 1e-5) * gamma_ref[...] + beta_ref[...]

    # TODO(synk): Dropout(p=0.1) treated as inference-mode identity (training RNG not replicated).
    out = _gelu_exact(out)

    # ---- fused mu/logvar projection: flatten(out) @ [W_mu | W_lv]^T + b -----
    # proj[b,d] = sum_{s,h} out[b,s,h] * w_out[s,h,d]  (batch over S in-place,
    # no explicit transpose of `out`).
    p = lax.dot_general(
        out, wout_ref[...], dimension_numbers=(((2,), (1,)), ((1,), (0,))),
        preferred_element_type=jnp.float32)                  # (S, bb, 2*D)
    proj = jnp.sum(p, axis=0) + bout_ref[...]                # (bb, 2*D)
    mu = proj[:, :n_dim]
    lv = proj[:, n_dim:]

    # reparameterization: sample = mu + eps * exp(0.5 * log_var)
    sample = mu + eps_ref[...] * jnp.exp(0.5 * lv)

    # single lane-dense fused output slab: [sample | mu | logvar]
    out_ref[...] = jnp.concatenate([sample, mu, lv], axis=-1)


# ----------------------------------------------------------------------------
# Wrapper
# ----------------------------------------------------------------------------
def _select_block_b(B, block_b=None):
    """Pick the per-grid-step batch block.

    Single-TC chips (v5e/v6e): one grid step (bb=B) — avoids the ~600-cycle
    per-step overhead and maximizes matmul M.  2-TC v7x: an even grid so both
    TensorCores get work under dimension_semantics=("parallel",).
    """
    if block_b is not None:
        return block_b if B % block_b == 0 else math.gcd(B, block_b)
    try:
        kind = jax.devices()[0].device_kind.lower()
    except Exception:
        kind = ""
    if "v7" in kind and B % 2 == 0:
        return B // 2
    return B


def bayesian_attn_ar_forward(x, params, epsilon, *, block_b=None):
    B, n_seq, n_dim = x.shape
    n_hid = params["wk"].shape[1]
    scale = float(B) ** (-0.5)   # PyTorch uses v.shape[0] == batch size

    bb = _select_block_b(B, block_b)
    grid = (B // bb,)

    # --- wrapper-side weight packing (pure glue) -----------------------------
    w_kqv = jnp.concatenate([params["wk"], params["wq"], params["wv"]], axis=1)
    b_kqv = jnp.concatenate([params["bk"], params["bq"], params["bv"]], axis=1)
    w_out = jnp.concatenate([params["w_mu"], params["w_logvar"]], axis=2)
    b_out = jnp.concatenate([params["b_mu"], params["b_logvar"]], axis=1)

    kern = functools.partial(bayes_attn_kernel, scale=scale, bb=bb,
                             n_seq=n_seq, n_hid=n_hid, n_dim=n_dim)

    full2 = lambda shape: pl.BlockSpec(shape, lambda b: (0, 0))
    full3 = lambda shape: pl.BlockSpec(shape, lambda b: (0, 0, 0))

    in_specs = [
        pl.BlockSpec((bb, n_seq, n_dim), lambda b: (b, 0, 0)),      # x
        full2((n_dim, 3 * n_hid)),                                  # wk|wq|wv
        full2((1, 3 * n_hid)),                                      # bk|bq|bv
        full2((n_seq, n_hid)),                                      # attn bias
        full2((1, n_hid)),                                          # ln gamma
        full2((1, n_hid)),                                          # ln beta
        full3((n_seq, n_hid, 2 * n_dim)),                           # w_mu|w_lv
        full2((1, 2 * n_dim)),                                      # b_mu|b_lv
        pl.BlockSpec((bb, n_dim), lambda b: (b, 0)),                # epsilon
    ]
    out_specs = pl.BlockSpec((bb, 3 * n_dim), lambda b: (b, 0))
    out_shape = jax.ShapeDtypeStruct((B, 3 * n_dim), jnp.float32)

    # Advisory cost estimate (grid-invariant weight blocks counted once).
    elt = 4
    weight_bytes = elt * (n_dim * 3 * n_hid + 3 * n_hid + n_seq * n_hid
                          + 2 * n_hid + n_seq * n_hid * 2 * n_dim + 2 * n_dim)
    io_bytes = elt * (B * n_seq * n_dim + B * n_dim + B * 3 * n_dim)
    flops = 2 * B * n_seq * (n_dim * 3 * n_hid + 2 * n_hid * n_hid
                             + n_hid * 2 * n_dim)
    transcendentals = B * (n_hid * n_hid + n_seq * n_hid + n_dim)
    cost = pl.CostEstimate(flops=flops, transcendentals=transcendentals,
                           bytes_accessed=weight_bytes + io_bytes)

    fused = pl.pallas_call(
        kern,
        out_shape=out_shape,
        grid_spec=pltpu.PrefetchScalarGridSpec(
            num_scalar_prefetch=0,
            grid=grid,
            in_specs=in_specs,
            out_specs=out_specs,
        ),
        compiler_params=pltpu.CompilerParams(
            dimension_semantics=("parallel",)),
        cost_estimate=cost,
    )(x, w_kqv, b_kqv, params["attn_bias"], params["ln_gamma"],
      params["ln_beta"], w_out, b_out, epsilon)

    sample = fused[:, 0 * n_dim:1 * n_dim]
    mu = fused[:, 1 * n_dim:2 * n_dim]
    log_var = fused[:, 2 * n_dim:3 * n_dim]
    # out.unsqueeze(1) — pure glue
    return sample[:, None, :], mu, log_var


# ----------------------------------------------------------------------------
# Deterministic parameter initialization (shapes from the module's __init__)
# ----------------------------------------------------------------------------
def init_params(key, n_seq, n_hid, n_dim):
    ks = jax.random.split(key, 12)

    def xavier_uniform(k, out_f, in_f):
        a = math.sqrt(6.0 / (in_f + out_f))
        return jax.random.uniform(k, (out_f, in_f), jnp.float32, -a, a)

    def torch_linear_bias(k, in_f, out_f):
        b = 1.0 / math.sqrt(in_f)
        return jax.random.uniform(k, (1, out_f), jnp.float32, -b, b)

    def torch_linear_weight(k, out_f, in_f):
        b = 1.0 / math.sqrt(in_f)
        return jax.random.uniform(k, (out_f, in_f), jnp.float32, -b, b)

    # k_w / q_w / v_w: Linear(n_dim, n_hid), xavier-uniform weights
    wk = xavier_uniform(ks[0], n_hid, n_dim).T          # (n_dim, n_hid)
    wq = xavier_uniform(ks[1], n_hid, n_dim).T
    wv = xavier_uniform(ks[2], n_hid, n_dim).T
    bk = torch_linear_bias(ks[3], n_dim, n_hid)
    bq = torch_linear_bias(ks[4], n_dim, n_hid)
    bv = torch_linear_bias(ks[5], n_dim, n_hid)

    attn_bias = jax.random.normal(ks[6], (n_seq, n_hid), jnp.float32)

    ln_gamma = jnp.ones((1, n_hid), jnp.float32)
    ln_beta = jnp.zeros((1, n_hid), jnp.float32)

    # out_layer_mu / out_layer_logvar: Linear(n_seq*n_hid, n_dim)
    w_mu_t = torch_linear_weight(ks[7], n_dim, n_seq * n_hid)       # (D, S*H)
    w_lv_t = torch_linear_weight(ks[8], n_dim, n_seq * n_hid)
    # reshape to (n_seq, n_hid, n_dim): W_mu[s,h,d] = W[d, s*n_hid + h]
    w_mu = jnp.transpose(w_mu_t.reshape(n_dim, n_seq, n_hid), (1, 2, 0))
    w_lv = jnp.transpose(w_lv_t.reshape(n_dim, n_seq, n_hid), (1, 2, 0))
    b_mu = torch_linear_bias(ks[9], n_seq * n_hid, n_dim)
    b_lv = torch_linear_bias(ks[10], n_seq * n_hid, n_dim)

    return {
        "wk": wk, "bk": bk, "wq": wq, "bq": bq, "wv": wv, "bv": bv,
        "attn_bias": attn_bias, "ln_gamma": ln_gamma, "ln_beta": ln_beta,
        "w_mu": w_mu, "b_mu": b_mu, "w_logvar": w_lv, "b_logvar": b_lv,
    }


# ----------------------------------------------------------------------------
if __name__ == "__main__":
    B, n_seq, n_hid, n_dim = 16, 8, 32, 16   # small shapes

    key = jax.random.PRNGKey(0)
    k_params, k_x, k_eps = jax.random.split(key, 3)

    params = init_params(k_params, n_seq, n_hid, n_dim)
    x = jax.random.normal(k_x, (B, n_seq, n_dim), jnp.float32)
    epsilon = jax.random.normal(k_eps, (B, n_dim), jnp.float32)  # randn_like(std)

    out, mu, log_var = bayesian_attn_ar_forward(x, params, epsilon)
    jax.block_until_ready((out, mu, log_var))

    assert out.shape == (B, 1, n_dim)
    assert mu.shape == (B, n_dim)
    assert log_var.shape == (B, n_dim)
    assert bool(jnp.all(jnp.isfinite(out)))
    assert bool(jnp.all(jnp.isfinite(mu)))
    assert bool(jnp.all(jnp.isfinite(log_var)))
    print("KERNEL_OK")
</pallas_src>

<mosaic_0001>
module attributes {stable_mosaic.version = 11 : i64} {
  func.func @bayes_attn_kernel(%arg0: i32, %arg1: memref<16x8x16xf32, #tpu.memory_space<vmem>>, %arg2: memref<16x96xf32, #tpu.memory_space<vmem>>, %arg3: memref<1x96xf32, #tpu.memory_space<vmem>>, %arg4: memref<8x32xf32, #tpu.memory_space<vmem>>, %arg5: memref<1x32xf32, #tpu.memory_space<vmem>>, %arg6: memref<1x32xf32, #tpu.memory_space<vmem>>, %arg7: memref<8x32x32xf32, #tpu.memory_space<vmem>>, %arg8: memref<1x32xf32, #tpu.memory_space<vmem>>, %arg9: memref<16x16xf32, #tpu.memory_space<vmem>>, %arg10: memref<16x48xf32, #tpu.memory_space<vmem>>) attributes {dimension_semantics = [#tpu.dimension_semantics<parallel>], iteration_bounds = array<i64: 1>, scalar_prefetch = 0 : i64, scratch_operands = 0 : i64, tpu.core_type = #tpu.core_type<tc>, window_params = [{transform_indices = @transform_0, window_bounds = array<i64: 16, 8, 16>}, {pipeline_mode = #tpu.pipeline_mode<synchronous>, transform_indices = @transform_1, window_bounds = array<i64: 16, 96>}, {pipeline_mode = #tpu.pipeline_mode<synchronous>, transform_indices = @transform_2, window_bounds = array<i64: 1, 96>}, {pipeline_mode = #tpu.pipeline_mode<synchronous>, transform_indices = @transform_3, window_bounds = array<i64: 8, 32>}, {pipeline_mode = #tpu.pipeline_mode<synchronous>, transform_indices = @transform_4, window_bounds = array<i64: 1, 32>}, {pipeline_mode = #tpu.pipeline_mode<synchronous>, transform_indices = @transform_5, window_bounds = array<i64: 1, 32>}, {pipeline_mode = #tpu.pipeline_mode<synchronous>, transform_indices = @transform_6, window_bounds = array<i64: 8, 32, 32>}, {pipeline_mode = #tpu.pipeline_mode<synchronous>, transform_indices = @transform_7, window_bounds = array<i64: 1, 32>}, {transform_indices = @transform_8, window_bounds = array<i64: 16, 16>}, {transform_indices = @transform_9, window_bounds = array<i64: 16, 48>}]} {
    %c0 = arith.constant 0 : index
    %c0_0 = arith.constant 0 : index
    %c0_1 = arith.constant 0 : index
    %0 = vector.load %arg1[%c0, %c0_0, %c0_1] : memref<16x8x16xf32, #tpu.memory_space<vmem>>, vector<16x8x16xf32>
    %1 = vector.shape_cast %0 : vector<16x8x16xf32> to vector<128x16xf32>
    %c0_2 = arith.constant 0 : index
    %c0_3 = arith.constant 0 : index
    %2 = vector.load %arg2[%c0_2, %c0_3] : memref<16x96xf32, #tpu.memory_space<vmem>>, vector<16x96xf32>
    %cst = arith.constant dense<0.000000e+00> : vector<128x96xf32>
    %3 = tpu.matmul %1, %2, %cst {dimension_numbers = #tpu.dot_dimension_numbers<[1], [0], [0], [1], [0, 0, 1, 1], [], []>} : vector<128x16xf32>, vector<16x96xf32>, vector<128x96xf32> -> vector<128x96xf32>
    %c0_4 = arith.constant 0 : index
    %c0_5 = arith.constant 0 : index
    %4 = vector.load %arg3[%c0_4, %c0_5] : memref<1x96xf32, #tpu.memory_space<vmem>>, vector<1x96xf32>
    %5 = vector.broadcast %4 : vector<1x96xf32> to vector<128x96xf32>
    %6 = arith.addf %3, %5 : vector<128x96xf32>
    %7 = vector.shape_cast %6 : vector<128x96xf32> to vector<16x8x96xf32>
    %8 = vector.extract_strided_slice %7 {offsets = [0, 0, 0], sizes = [16, 8, 32], strides = [1, 1, 1]} : vector<16x8x96xf32> to vector<16x8x32xf32>
    %9 = vector.extract_strided_slice %7 {offsets = [0, 0, 32], sizes = [16, 8, 32], strides = [1, 1, 1]} : vector<16x8x96xf32> to vector<16x8x32xf32>
    %10 = vector.extract_strided_slice %7 {offsets = [0, 0, 64], sizes = [16, 8, 32], strides = [1, 1, 1]} : vector<16x8x96xf32> to vector<16x8x32xf32>
    %cst_6 = arith.constant dense<0.000000e+00> : vector<16x32x32xf32>
    %11 = tpu.matmul %9, %8, %cst_6 {dimension_numbers = #tpu.dot_dimension_numbers<[1], [1], [2], [2], [0, 0, 0, 2, 1, 2], [0], [0]>} : vector<16x8x32xf32>, vector<16x8x32xf32>, vector<16x32x32xf32> -> vector<16x32x32xf32>
    %cst_7 = arith.constant 2.500000e-01 : f32
    %12 = vector.broadcast %cst_7 : f32 to vector<16x32x32xf32>
    %13 = arith.mulf %11, %12 : vector<16x32x32xf32>
    %cst_8 = arith.constant dense<0xFF800000> : vector<16x32xf32>
    %14 = vector.multi_reduction <maximumf>, %13, %cst_8 [2] : vector<16x32x32xf32> to vector<16x32xf32>
    %15 = vector.shape_cast %14 : vector<16x32xf32> to vector<16x32x1xf32>
    %16 = vector.broadcast %15 : vector<16x32x1xf32> to vector<16x32x32xf32>
    %17 = arith.subf %13, %16 : vector<16x32x32xf32>
    %18 = math.exp %17 : vector<16x32x32xf32>
    %cst_9 = arith.constant dense<0.000000e+00> : vector<16x32xf32>
    %19 = vector.multi_reduction <add>, %18, %cst_9 [2] : vector<16x32x32xf32> to vector<16x32xf32>
    %20 = vector.shape_cast %19 : vector<16x32xf32> to vector<16x32x1xf32>
    %21 = vector.broadcast %20 : vector<16x32x1xf32> to vector<16x32x32xf32>
    %22 = arith.divf %18, %21 : vector<16x32x32xf32>
    %cst_10 = arith.constant dense<0.000000e+00> : vector<16x8x32xf32>
    %23 = tpu.matmul %10, %22, %cst_10 {dimension_numbers = #tpu.dot_dimension_numbers<[2], [2], [1], [1], [0, 0, 0, 1, 1, 1], [0], [0]>} : vector<16x8x32xf32>, vector<16x32x32xf32>, vector<16x8x32xf32> -> vector<16x8x32xf32>
    %c0_11 = arith.constant 0 : index
    %c0_12 = arith.constant 0 : index
    %24 = vector.load %arg4[%c0_11, %c0_12] : memref<8x32xf32, #tpu.memory_space<vmem>>, vector<8x32xf32>
    %25 = vector.shape_cast %24 : vector<8x32xf32> to vector<1x8x32xf32>
    %26 = vector.broadcast %25 : vector<1x8x32xf32> to vector<16x8x32xf32>
    %27 = arith.addf %23, %26 : vector<16x8x32xf32>
    %cst_13 = arith.constant dense<0.000000e+00> : vector<16x8xf32>
    %28 = vector.multi_reduction <add>, %27, %cst_13 [2] : vector<16x8x32xf32> to vector<16x8xf32>
    %29 = vector.shape_cast %28 : vector<16x8xf32> to vector<16x8x1xf32>
    %cst_14 = arith.constant 3.200000e+01 : f32
    %30 = vector.broadcast %cst_14 : f32 to vector<16x8x1xf32>
    %31 = arith.divf %29, %30 : vector<16x8x1xf32>
    %32 = vector.broadcast %31 : vector<16x8x1xf32> to vector<16x8x32xf32>
    %33 = arith.subf %27, %32 : vector<16x8x32xf32>
    %34 = arith.mulf %33, %33 : vector<16x8x32xf32>
    %cst_15 = arith.constant dense<0.000000e+00> : vector<16x8xf32>
    %35 = vector.multi_reduction <add>, %34, %cst_15 [2] : vector<16x8x32xf32> to vector<16x8xf32>
    %36 = vector.shape_cast %35 : vector<16x8xf32> to vector<16x8x1xf32>
    %cst_16 = arith.constant 3.200000e+01 : f32
    %37 = vector.broadcast %cst_16 : f32 to vector<16x8x1xf32>
    %38 = arith.divf %36, %37 : vector<16x8x1xf32>
    %39 = vector.broadcast %31 : vector<16x8x1xf32> to vector<16x8x32xf32>
    %40 = arith.subf %27, %39 : vector<16x8x32xf32>
    %cst_17 = arith.constant 9.99999974E-6 : f32
    %41 = vector.broadcast %cst_17 : f32 to vector<16x8x1xf32>
    %42 = arith.addf %38, %41 : vector<16x8x1xf32>
    %43 = math.rsqrt %42 : vector<16x8x1xf32>
    %44 = vector.broadcast %43 : vector<16x8x1xf32> to vector<16x8x32xf32>
    %45 = arith.mulf %40, %44 : vector<16x8x32xf32>
    %c0_18 = arith.constant 0 : index
    %c0_19 = arith.constant 0 : index
    %46 = vector.load %arg5[%c0_18, %c0_19] : memref<1x32xf32, #tpu.memory_space<vmem>>, vector<1x32xf32>
    %47 = vector.shape_cast %46 : vector<1x32xf32> to vector<1x1x32xf32>
    %48 = vector.broadcast %47 : vector<1x1x32xf32> to vector<16x8x32xf32>
    %49 = arith.mulf %45, %48 : vector<16x8x32xf32>
    %c0_20 = arith.constant 0 : index
    %c0_21 = arith.constant 0 : index
    %50 = vector.load %arg6[%c0_20, %c0_21] : memref<1x32xf32, #tpu.memory_space<vmem>>, vector<1x32xf32>
    %51 = vector.shape_cast %50 : vector<1x32xf32> to vector<1x1x32xf32>
    %52 = vector.broadcast %51 : vector<1x1x32xf32> to vector<16x8x32xf32>
    %53 = arith.addf %49, %52 : vector<16x8x32xf32>
    %cst_22 = arith.constant 5.000000e-01 : f32
    %54 = vector.broadcast %cst_22 : f32 to vector<16x8x32xf32>
    %55 = arith.mulf %54, %53 : vector<16x8x32xf32>
    %cst_23 = arith.constant 0.707106769 : f32
    %56 = vector.broadcast %cst_23 : f32 to vector<16x8x32xf32>
    %57 = arith.mulf %53, %56 : vector<16x8x32xf32>
    %cst_24 = arith.constant 0.000000e+00 : f32
    %58 = vector.broadcast %cst_24 : f32 to vector<16x8x32xf32>
    %59 = arith.cmpf oge, %57, %58 : vector<16x8x32xf32>
    %cst_25 = arith.constant 1.000000e+00 : f32
    %cst_26 = arith.constant -1.000000e+00 : f32
    %60 = vector.broadcast %cst_25 : f32 to vector<16x8x32xf32>
    %61 = vector.broadcast %cst_26 : f32 to vector<16x8x32xf32>
    %62 = arith.select %59, %60, %61 : vector<16x8x32xi1>, vector<16x8x32xf32>
    %63 = math.absf %57 : vector<16x8x32xf32>
    %cst_27 = arith.constant 0.327591091 : f32
    %64 = vector.broadcast %cst_27 : f32 to vector<16x8x32xf32>
    %65 = arith.mulf %64, %63 : vector<16x8x32xf32>
    %cst_28 = arith.constant 1.000000e+00 : f32
    %66 = vector.broadcast %cst_28 : f32 to vector<16x8x32xf32>
    %67 = arith.addf %66, %65 : vector<16x8x32xf32>
    %cst_29 = arith.constant 1.000000e+00 : f32
    %68 = vector.broadcast %cst_29 : f32 to vector<16x8x32xf32>
    %69 = arith.divf %68, %67 : vector<16x8x32xf32>
    %cst_30 = arith.constant 1.06140542 : f32
    %70 = vector.broadcast %cst_30 : f32 to vector<16x8x32xf32>
    %71 = arith.mulf %70, %69 : vector<16x8x32xf32>
    %cst_31 = arith.constant -1.45315206 : f32
    %72 = vector.broadcast %cst_31 : f32 to vector<16x8x32xf32>
    %73 = arith.addf %71, %72 : vector<16x8x32xf32>
    %74 = arith.mulf %73, %69 : vector<16x8x32xf32>
    %cst_32 = arith.constant 1.42141378 : f32
    %75 = vector.broadcast %cst_32 : f32 to vector<16x8x32xf32>
    %76 = arith.addf %74, %75 : vector<16x8x32xf32>
    %77 = arith.mulf %76, %69 : vector<16x8x32xf32>
    %cst_33 = arith.constant -0.284496725 : f32
    %78 = vector.broadcast %cst_33 : f32 to vector<16x8x32xf32>
    %79 = arith.addf %77, %78 : vector<16x8x32xf32>
    %80 = arith.mulf %79, %69 : vector<16x8x32xf32>
    %cst_34 = arith.constant 0.254829586 : f32
    %81 = vector.broadcast %cst_34 : f32 to vector<16x8x32xf32>
    %82 = arith.addf %80, %81 : vector<16x8x32xf32>
    %83 = arith.mulf %82, %69 : vector<16x8x32xf32>
    %cst_35 = arith.constant 0.000000e+00 : f32
    %84 = vector.broadcast %cst_35 : f32 to vector<16x8x32xf32>
    %85 = arith.subf %84, %63 : vector<16x8x32xf32>
    %86 = arith.mulf %85, %63 : vector<16x8x32xf32>
    %87 = math.exp %86 : vector<16x8x32xf32>
    %88 = arith.mulf %83, %87 : vector<16x8x32xf32>
    %cst_36 = arith.constant 1.000000e+00 : f32
    %89 = vector.broadcast %cst_36 : f32 to vector<16x8x32xf32>
    %90 = arith.subf %89, %88 : vector<16x8x32xf32>
    %91 = arith.mulf %62, %90 : vector<16x8x32xf32>
    %cst_37 = arith.constant 1.000000e+00 : f32
    %92 = vector.broadcast %cst_37 : f32 to vector<16x8x32xf32>
    %93 = arith.addf %92, %91 : vector<16x8x32xf32>
    %94 = arith.mulf %55, %93 : vector<16x8x32xf32>
    %c0_38 = arith.constant 0 : index
    %c0_39 = arith.constant 0 : index
    %c0_40 = arith.constant 0 : index
    %95 = vector.load %arg7[%c0_38, %c0_39, %c0_40] : memref<8x32x32xf32, #tpu.memory_space<vmem>>, vector<8x32x32xf32>
    %cst_41 = arith.constant dense<0.000000e+00> : vector<8x16x32xf32>
    %96 = tpu.matmul %94, %95, %cst_41 {dimension_numbers = #tpu.dot_dimension_numbers<[2], [1], [0], [2], [0, 1, 0, 0, 1, 2], [1], [0]>} : vector<16x8x32xf32>, vector<8x32x32xf32>, vector<8x16x32xf32> -> vector<8x16x32xf32>
    %cst_42 = arith.constant dense<0.000000e+00> : vector<16x32xf32>
    %97 = vector.multi_reduction <add>, %96, %cst_42 [0] : vector<8x16x32xf32> to vector<16x32xf32>
    %c0_43 = arith.constant 0 : index
    %c0_44 = arith.constant 0 : index
    %98 = vector.load %arg8[%c0_43, %c0_44] : memref<1x32xf32, #tpu.memory_space<vmem>>, vector<1x32xf32>
    %99 = vector.broadcast %98 : vector<1x32xf32> to vector<16x32xf32>
    %100 = arith.addf %97, %99 : vector<16x32xf32>
    %101 = vector.extract_strided_slice %100 {offsets = [0, 0], sizes = [16, 16], strides = [1, 1]} : vector<16x32xf32> to vector<16x16xf32>
    %102 = vector.extract_strided_slice %100 {offsets = [0, 16], sizes = [16, 16], strides = [1, 1]} : vector<16x32xf32> to vector<16x16xf32>
    %c0_45 = arith.constant 0 : index
    %c0_46 = arith.constant 0 : index
    %103 = vector.load %arg9[%c0_45, %c0_46] : memref<16x16xf32, #tpu.memory_space<vmem>>, vector<16x16xf32>
    %cst_47 = arith.constant 5.000000e-01 : f32
    %104 = vector.broadcast %cst_47 : f32 to vector<16x16xf32>
    %105 = arith.mulf %104, %102 : vector<16x16xf32>
    %106 = math.exp %105 : vector<16x16xf32>
    %107 = arith.mulf %103, %106 : vector<16x16xf32>
    %108 = arith.addf %101, %107 : vector<16x16xf32>
    %109 = tpu.concatenate %108, %101, %102 in 1 : vector<16x16xf32>, vector<16x16xf32>, vector<16x16xf32> -> vector<16x48xf32>
    %c0_48 = arith.constant 0 : index
    %c0_49 = arith.constant 0 : index
    %110 = vector.load %arg10[%c0_48, %c0_49] : memref<16x48xf32, #tpu.memory_space<vmem>>, vector<16x48xf32>
    tpu.vector_store %arg10[%c0_48, %c0_49], %109 {strides = array<i32>} : memref<16x48xf32, #tpu.memory_space<vmem>>, vector<16x48xf32>,
    return
  }
  func.func @transform_0(%arg0: i32) -> (i32, i32, i32) {
    %c0_i32 = arith.constant 0 : i32
    %c0_i32_0 = arith.constant 0 : i32
    %c0_i32_1 = arith.constant 0 : i32
    return %arg0, %c0_i32, %c0_i32_0 : i32, i32, i32
  }
  func.func @transform_1(%arg0: i32) -> (i32, i32) {
    %c0_i32 = arith.constant 0 : i32
    %c0_i32_0 = arith.constant 0 : i32
    %c0_i32_1 = arith.constant 0 : i32
    return %c0_i32, %c0_i32_0 : i32, i32
  }
  func.func @transform_2(%arg0: i32) -> (i32, i32) {
    %c0_i32 = arith.constant 0 : i32
    %c0_i32_0 = arith.constant 0 : i32
    %c0_i32_1 = arith.constant 0 : i32
    return %c0_i32, %c0_i32_0 : i32, i32
  }
  func.func @transform_3(%arg0: i32) -> (i32, i32) {
    %c0_i32 = arith.constant 0 : i32
    %c0_i32_0 = arith.constant 0 : i32
    %c0_i32_1 = arith.constant 0 : i32
    return %c0_i32, %c0_i32_0 : i32, i32
  }
  func.func @transform_4(%arg0: i32) -> (i32, i32) {
    %c0_i32 = arith.constant 0 : i32
    %c0_i32_0 = arith.constant 0 : i32
    %c0_i32_1 = arith.constant 0 : i32
    return %c0_i32, %c0_i32_0 : i32, i32
  }
  func.func @transform_5(%arg0: i32) -> (i32, i32) {
    %c0_i32 = arith.constant 0 : i32
    %c0_i32_0 = arith.constant 0 : i32
    %c0_i32_1 = arith.constant 0 : i32
    return %c0_i32, %c0_i32_0 : i32, i32
  }
  func.func @transform_6(%arg0: i32) -> (i32, i32, i32) {
    %c0_i32 = arith.constant 0 : i32
    %c0_i32_0 = arith.constant 0 : i32
    %c0_i32_1 = arith.constant 0 : i32
    %c0_i32_2 = arith.constant 0 : i32
    return %c0_i32, %c0_i32_0, %c0_i32_1 : i32, i32, i32
  }
  func.func @transform_7(%arg0: i32) -> (i32, i32) {
    %c0_i32 = arith.constant 0 : i32
    %c0_i32_0 = arith.constant 0 : i32
    %c0_i32_1 = arith.constant 0 : i32
    return %c0_i32, %c0_i32_0 : i32, i32
  }
  func.func @transform_8(%arg0: i32) -> (i32, i32) {
    %c0_i32 = arith.constant 0 : i32
    %c0_i32_0 = arith.constant 0 : i32
    return %arg0, %c0_i32 : i32, i32
  }
  func.func @transform_9(%arg0: i32) -> (i32, i32) {
    %c0_i32 = arith.constant 0 : i32
    %c0_i32_0 = arith.constant 0 : i32
    return %arg0, %c0_i32 : i32, i32
  }
}

</mosaic_0001>

<bundles_post_ra>
// kernel: tpu_custom_call.1
= control target key start
LH: loop header
LB: loop body
LE: loop exit
PB: predicated region body
PF: predicated region fallthrough
CT: control target
= control target key end

     0   :  { %14 = vsyncpa [#allocation3], 0  ;;  %s9861_s0 = inlined_call_operand.hbm [shape: f32[16,8,16], index: 0, kind: input, shape index: {}]   ;;  %s9862_s1 = inlined_call_operand.hbm [shape: f32[16,96], index: 1, kind: input, shape index: {}]   ;;  %s9863_s2 = inlined_call_operand.vmem [shape: f32[1,96], index: 2, kind: input, shape index: {}]   ;;  %s9864_s3 = inlined_call_operand.vmem [shape: f32[8,32], index: 3, kind: input, shape index: {}]   ;;  %s9865_s4 = inlined_call_operand.vmem [shape: f32[1,32], index: 4, kind: input, shape index: {}]   ;;  %s9866_s5 = inlined_call_operand.vmem [shape: f32[1,32], index: 5, kind: input, shape index: {}]   ;;  %s9867_s6 = inlined_call_operand.hbm [shape: f32[8,32,32], index: 6, kind: input, shape index: {}]   ;;  %s9868_s7 = inlined_call_operand.vmem [shape: f32[1,32], index: 7, kind: input, shape index: {}]   ;;  %s9869_s8 = inlined_call_operand.vmem [shape: f32[16,16], index: 8, kind: input, shape index: {}]   ;;  %s9870_s9 = inlined_call_operand.hbm [shape: f32[16,48], index: 9, kind: output, shape index: {}]  }
   0x1   :  { %15 = vsyncpa [#allocation6], 0 }
   0x2   :  { %16 = vsyncpa [#allocation4], 0  ;;  %s7787_s30 = smov [#allocation5]   ;;  %s7788_s11 = smov [#allocation2]  }
   0x3   :  { %s34_s10 = sshll.u32 %s7787_s30, 4  ;;  %s22_s12 = sshll.u32 %s7788_s11, 4  ;;  %s35_s10 = int_to_ptr.vmem [resolvable:$true] %s34_s10  ;;  %s7853_s12 = int_to_ptr.vmem [resolvable:$true] %s22_s12 }
   0x4   :  { %s7693_s15 = scalar_lea.hbm %s9862_s1, 256 }
   0x5   :  { %p7694_p0 = scmp.ne.s32.totalorder %s9862_s1, %s7693_s15  ;;  %p7697_p1 = scmp.lt.u32.totalorder %s7693_s15, %s9862_s1 }
   0x7   :  { %p7699_p2 = pnand %p7697_p1, %p7694_p0 }
   0x9   :  { %7702 = shalt.err (!%p7699_p2)
}
   0xa   :  { %s7703_s20 = scalar_lea.vmem %s35_s10, 256  ;;  %p7708_p4 = scmp.lt.s32.totalorder %s35_s10, %s35_s10 }
   0xb   :  { %p7704_p3 = scmp.ne.s32.totalorder %s35_s10, %s7703_s20  ;;  %p7709_p5 = scmp.lt.s32.totalorder %s7703_s20, %s7703_s20 }
   0xd   :  { %p7710_p6 = por %p7709_p5, %p7708_p4 }
   0xf   :  { %p7711_p7 = pnand %p7710_p6, %p7704_p3 }
  0x11   :  { %7714 = shalt.err (!%p7711_p7)
}
  0x12   :  { %s7789_s21 = smov 128   ;;  %s7790_s22 = smov 8  }
  0x13   :  { %40 = dma.hbm_to_vmem [thread:$0]  %s9862_s1, 256, %s35_s10, [#allocation6], %s7789_s21, %s7789_s21, %s7790_s22  }
  0x14   :  { %s7715_s27 = scalar_lea.hbm %s9861_s0, 2048 }
  0x15   :  { %p7716_p8 = scmp.ne.s32.totalorder %s9861_s0, %s7715_s27  ;;  %p7719_p9 = scmp.lt.u32.totalorder %s7715_s27, %s9861_s0 }
  0x17   :  { %p7721_p10 = pnand %p7719_p9, %p7716_p8 }
  0x19   :  { %7724 = shalt.err (!%p7721_p10)
}
  0x1a   :  { %s7725_s13 = scalar_lea.vmem %s7853_s12, 2048  ;;  %p7730_p12 = scmp.lt.s32.totalorder %s7853_s12, %s7853_s12 }
  0x1b   :  { %p7726_p11 = scmp.ne.s32.totalorder %s7853_s12, %s7725_s13  ;;  %p7731_p13 = scmp.lt.s32.totalorder %s7725_s13, %s7725_s13 }
  0x1d   :  { %p7732_p0 = por %p7731_p13, %p7730_p12 }
  0x1f   :  { %p7733_p1 = pnand %p7732_p0, %p7726_p11 }
  0x21   :  { %7736 = shalt.err (!%p7733_p1)
}
  0x22   :  { %28 = dma.hbm_to_vmem [thread:$0]  %s9861_s0, 2048, %s7853_s12, [#allocation3], %s7789_s21, %s7789_s21, %s7790_s22  }
  0x23   :  { %s7791_s14 = smov [#allocation7]   ;;  %s7737_s18 = scalar_lea.hbm %s9867_s6, 4096 }
  0x24   :  { %s54_s15 = sshll.u32 %s7791_s14, 4  ;;  %p7738_p2 = scmp.ne.s32.totalorder %s9867_s6, %s7737_s18  ;;  %s55_s15 = int_to_ptr.vmem [resolvable:$true] %s54_s15 }
  0x25   :  { %p7741_p3 = scmp.lt.u32.totalorder %s7737_s18, %s9867_s6 }
  0x27   :  { %p7743_p4 = pnand %p7741_p3, %p7738_p2 }
  0x29   :  { %7746 = shalt.err (!%p7743_p4)
}
  0x2a   :  { %s7747_s25 = scalar_lea.vmem %s55_s15, 4096  ;;  %p7752_p6 = scmp.lt.s32.totalorder %s55_s15, %s55_s15 }
  0x2b   :  { %p7748_p5 = scmp.ne.s32.totalorder %s55_s15, %s7747_s25  ;;  %p7753_p7 = scmp.lt.s32.totalorder %s7747_s25, %s7747_s25 }
  0x2d   :  { %p7754_p8 = por %p7753_p7, %p7752_p6 }
  0x2f   :  { %p7755_p9 = pnand %p7754_p8, %p7748_p5 }
  0x31   :  { %7758 = shalt.err (!%p7755_p9)
}
  0x32   :  { %60 = dma.hbm_to_vmem [thread:$0]  %s9867_s6, 4096, %s55_s15, [#allocation6], %s7789_s21, %s7789_s21, %s7790_s22  }
  0x33   :  { %7781 = dma.done.wait [#allocation3], 2048  }
  0x34   :  { %7782 = vsyncadd [#allocation3], 4294965248 }
  0x35   :  { %7783 = dma.done.wait [#allocation6], 4352  }
  0x36   :  { %7784 = vsyncadd [#allocation6], 4294962944  ;;  %vm99_vm0 = vcmask 130048   ;;  %v90_v0 = vld [vmem:[#allocation5] sm:$0xff]  ;;  %v91_v1 = vld [vmem:[#allocation5 + $0x8] sm:$0xff]  ;;  %s7792_s27 = smov 96  }
  0x37   :  { %v74_v2 = vld [vmem:[#allocation2] sm:$0xff]  ;;  %v7125_v3 = vpack.c.bf16 %v91_v1, %v90_v0  ;;  %v75_v4 = vld [vmem:[#allocation2 + $0x8] sm:$0xff]  ;;  %v76_v5 = vld [vmem:[#allocation2 + $0x10] sm:$0xff]  ;;  %vm329_vm1 = vcmask 64512   ;;  %vm2486_vm2 = vcmask 261120   ;;  %vm7795_vm3 = vmmov 0  }
  0x38   :  { %6709 = vmatprep.mubr.msk.f32.mxu0 %vm99_vm0, %v74_v2  ;;  %v77_v6 = vld [vmem:[#allocation2 + $0x18] sm:$0xff]  ;;  %v78_v7 = vld [vmem:[#allocation2 + $0x20] sm:$0xff]  ;;  %v79_v8 = vld [vmem:[#allocation2 + $0x28] sm:$0xff]  ;;  %s7800_s1 = smov 16   ;;  %s7801_s10 = smov 112  }
  0x39   :  { %7126 = vmatprep.subr.bf16.mxu0 %v7125_v3  ;;  %v80_v9 = vld [vmem:[#allocation2 + $0x30] sm:$0xff]  ;;  %v81_v10 = vld [vmem:[#allocation2 + $0x38] sm:$0xff]  ;;  %v82_v11 = vld [vmem:[#allocation2 + $0x40] sm:$0xff]  ;;  %s7802_s17 = smov [#allocation8]  }
  0x3a   :  { %7128 = vmatpush3.bf16.msra.mxu0 %v7125_v3  ;;  %v83_v12 = vld [vmem:[#allocation2 + $0x48] sm:$0xff]  ;;  %v84_v13 = vld [vmem:[#allocation2 + $0x50] sm:$0xff]  ;;  %v85_v14 = vld [vmem:[#allocation2 + $0x58] sm:$0xff]  ;;  %s6286_s18 = sshll.u32 %s7802_s17, 4  ;;  %s6287_s18 = int_to_ptr.vmem [resolvable:$true] %s6286_s18 }
  0x3b   :  { %v86_v15 = vld [vmem:[#allocation2 + $0x60] sm:$0xff]  ;;  %v87_v16 = vld [vmem:[#allocation2 + $0x68] sm:$0xff]  ;;  %v88_v17 = vld [vmem:[#allocation2 + $0x70] sm:$0xff]  ;;  %p7764_p11 = scmp.lt.s32.totalorder %s6287_s18, %s6287_s18 }
  0x3c   :  { %v89_v18 = vld [vmem:[#allocation2 + $0x78] sm:$0xff]  ;;  %v6299_v19 = vld [vmem:[%s9863_s2] ss:$0 sm:$0xff]  ;;  %s7793_s2 = smov 64   ;;  %vm8732_vm4 = vmpackc.low %vm2486_vm2, %vm2486_vm2 }
  0x3d   :  { %6710 = vmatmul.mubr.msk.f32.vlgmr.msra.gmra.mrb[0].mxu0 %vm99_vm0, %v75_v4 }
  0x3e   :  { %6712 = vmatprep.mubr.msk.f32.mxu0 %vm99_vm0, %v76_v5 }
  0x41   :  { %6713 = vmatmul.mubr.msk.f32.gmra.mrb[2].mxu0 %vm99_vm0, %v77_v6 }
  0x42   :  { %6715 = vmatprep.mubr.msk.f32.mxu0 %vm99_vm0, %v78_v7 }
  0x45   :  { %6716 = vmatmul.mubr.msk.f32.gmra.mrb[4].mxu0 %vm99_vm0, %v79_v8 }
  0x46   :  { %6718 = vmatprep.mubr.msk.f32.mxu0 %vm99_vm0, %v80_v9 }
  0x49   :  { %6719 = vmatmul.mubr.msk.f32.gmra.mrb[6].mxu0 %vm99_vm0, %v81_v10 }
  0x4a   :  { %6721 = vmatprep.mubr.msk.f32.mxu0 %vm99_vm0, %v82_v11 }
  0x4d   :  { %6722 = vmatmul.mubr.msk.f32.gmra.mrb[8].mxu0 %vm99_vm0, %v83_v12 }
  0x4e   :  { %6724 = vmatprep.mubr.msk.f32.mxu0 %vm99_vm0, %v84_v13 }
  0x51   :  { %6725 = vmatmul.mubr.msk.f32.gmra.mrb[10].mxu0 %vm99_vm0, %v85_v14 }
  0x52   :  { %6727 = vmatprep.mubr.msk.f32.mxu0 %vm99_vm0, %v86_v15 }
  0x55   :  { %6728 = vmatmul.mubr.msk.f32.gmra.mrb[12].mxu0 %vm99_vm0, %v87_v16 }
  0x56   :  { %6730 = vmatprep.mubr.msk.f32.mxu0 %vm99_vm0, %v88_v17 }
  0x59   :  { %6731 = vmatmul.mubr.msk.f32.gmra.mrb[14].mxu0 %vm99_vm0, %v89_v18 }
 0x110   :  { %v6711_v20 = vpop.f32.mrb[0].mxu0 }
 0x111   :  { %v7924_v21 = vadd.f32 %v6711_v20, %v6299_v19  ;;  %v214_v22 = vpop.f32.mrb[1].mxu0 }
 0x112   :  { %v7926_v23 = vadd.f32 %v6299_v19, %v214_v22 }
 0x113   :  { %428 = vrot.lane.b32.xlu0 %v7924_v21, %s7792_s27 }
 0x114   :  { %6733 = vmatprep.subr.mxu1 %v7926_v23  ;;  %v6714_v24 = vpop.f32.mrb[2].mxu0 }
 0x115   :  { %6734 = vmatpush3.msra.mxu1 %v7926_v23  ;;  %v7932_v25 = vadd.f32 %v6714_v24, %v6299_v19  ;;  %v224_v26 = vpop.f32.mrb[3].mxu0 }
 0x116   :  { %6741 = vmatprep.subr.mxu1 %v7924_v21  ;;  %v7939_v27 = vadd.f32 %v6299_v19, %v224_v26 }
 0x117   :  { %294 = vrot.lane.b32.xlu0 %v7926_v23, %s7792_s27  ;;  %694 = vrot.lane.b32.xlu1 %v7932_v25, %s7792_s27 }
 0x118   :  { %v6717_v28 = vpop.f32.mrb[4].mxu0 }
 0x119   :  { %v7941_v29 = vadd.f32 %v6717_v28, %v6299_v19  ;;  %v234_v30 = vpop.f32.mrb[5].mxu0 }
 0x11a   :  { %v7943_v31 = vadd.f32 %v6299_v19, %v234_v30 }
 0x11b   :  { %561 = vrot.lane.b32.xlu1 %v7939_v27, %s7792_s27  ;;  %6773 = vmatprep.subr.mxu0 %v7941_v29 }
 0x11c   :  { %827 = vrot.lane.b32.xlu0 %v7943_v31, %s7792_s27  ;;  %6774 = vmatpush3.msra.mxu0 %v7941_v29  ;;  %v6720_v32 = vpop.f32.mrb[6].mxu0 }
 0x11d   :  { %v7951_v33 = vadd.f32 %v6720_v32, %v6299_v19  ;;  %v244_v34 = vpop.f32.mrb[7].mxu0 }
 0x11e   :  { %v7953_v35 = vadd.f32 %v6299_v19, %v244_v34 }
 0x11f   :  { %9917 = vst [vmem:[#allocation12_spill] sm:$0xff] %v7951_v33  ;;  %960 = vrot.lane.b32.xlu1 %v7941_v29, %s7792_s27  ;;  %6789 = vmatprep.subr.mxu0 %v7951_v33 }
 0x120   :  { %1093 = vrot.lane.b32.xlu0 %v7953_v35, %s7792_s27  ;;  %v6723_v36 = vpop.f32.mrb[8].mxu0 }
 0x121   :  { %v254_v37 = vpop.f32.mrb[9].mxu0  ;;  %v7964_v39 = vadd.f32 %v6723_v36, %v6299_v19 }
 0x122   :  { %v7960_v38 = vadd.f32 %v6299_v19, %v254_v37 }
 0x123   :  { %1226 = vrot.lane.b32.xlu1 %v7951_v33, %s7792_s27  ;;  %9919 = vst [vmem:[#allocation14_spill] sm:$0xff] %v7964_v39 }
 0x124   :  { %9918 = vst [vmem:[#allocation13_spill] sm:$0xff] %v7960_v38  ;;  %1359 = vrot.lane.b32.xlu0 %v7960_v38, %s7792_s27  ;;  %v6726_v40 = vpop.f32.mrb[10].mxu0 }
 0x125   :  { %v264_v41 = vpop.f32.mrb[11].mxu0  ;;  %v7972_v43 = vadd.f32 %v6726_v40, %v6299_v19 }
 0x126   :  { %v7968_v42 = vadd.f32 %v6299_v19, %v264_v41 }
 0x127   :  { %1492 = vrot.lane.b32.xlu1 %v7964_v39, %s7792_s27  ;;  %9921 = vst [vmem:[#allocation16_spill] sm:$0xff] %v7972_v43 }
 0x128   :  { %9920 = vst [vmem:[#allocation15_spill] sm:$0xff] %v7968_v42  ;;  %v6729_v44 = vpop.f32.mrb[12].mxu0  ;;  %1625 = vrot.lane.b32.xlu0 %v7968_v42, %s7792_s27 }
 0x129   :  { %v274_v45 = vpop.f32.mrb[13].mxu0  ;;  %v7980_v47 = vadd.f32 %v6729_v44, %v6299_v19 }
 0x12a   :  { %v7976_v46 = vadd.f32 %v6299_v19, %v274_v45 }
 0x12b   :  { %1758 = vrot.lane.b32.xlu1 %v7972_v43, %s7792_s27  ;;  %9923 = vst [vmem:[#allocation18_spill] sm:$0xff] %v7980_v47 }
 0x12c   :  { %9922 = vst [vmem:[#allocation17_spill] sm:$0xff] %v7976_v46  ;;  %v6732_v48 = vpop.f32.mrb[14].mxu0  ;;  %1891 = vrot.lane.b32.xlu0 %v7976_v46, %s7792_s27 }
 0x12d   :  { %v284_v49 = vpop.f32.mrb[15].mxu0  ;;  %v7986_v51 = vadd.f32 %v6732_v48, %v6299_v19 }
 0x12e   :  { %v7984_v50 = vadd.f32 %v6299_v19, %v284_v49 }
 0x12f   :  { %9925 = vst [vmem:[#allocation20_spill] sm:$0xff] %v7986_v51  ;;  %2024 = vrot.lane.b32.xlu1 %v7980_v47, %s7792_s27 }
 0x130   :  { %9924 = vst [vmem:[#allocation19_spill] sm:$0xff] %v7984_v50  ;;  %2157 = vrot.lane.b32.xlu0 %v7984_v50, %s7792_s27 }
 0x133   :  { %2290 = vrot.lane.b32.xlu1 %v7986_v51, %s7792_s27 }
 0x185   :  { %v429_v52 = vpop.permute.xlu0 %428 }
 0x186   :  { %431 = vxpose.xlu1.b32.start.end [1/1] (short) (narrow) %v429_v52, 32 }
 0x189   :  { %v295_v53 = vpop.permute.xlu0 %294  ;;  %v695_v54 = vpop.permute.xlu1 %694 }
 0x18a   :  { %297 = vxpose.xlu0.b32.start.end [1/1] (short) (narrow) %v295_v53, 32 }
 0x18d   :  { %v562_v55 = vpop.permute.xlu1 %561 }
 0x18e   :  { %v828_v57 = vpop.permute.xlu0 %827 }
 0x191   :  { %v961_v56 = vpop.permute.xlu1 %960 }
 0x192   :  { %v1094_v59 = vpop.permute.xlu0 %1093 }
 0x193   :  { %697 = vxpose.xlu1.b32.start.end [1/1] (short) (narrow) %v695_v54, 32 }
 0x195   :  { %v1227_v58 = vpop.permute.xlu1 %1226 }
 0x196   :  { %v1360_v61 = vpop.permute.xlu0 %1359 }
 0x197   :  { %564 = vxpose.xlu0.b32.start.end [1/1] (short) (narrow) %v562_v55, 32 }
 0x199   :  { %v1493_v60 = vpop.permute.xlu1 %1492 }
 0x19a   :  { %v1626_v63 = vpop.permute.xlu0 %1625 }
 0x19d   :  { %v1759_v62 = vpop.permute.xlu1 %1758 }
 0x19e   :  { %v1892_v1 = vpop.permute.xlu0 %1891 }
 0x1a0   :  { %963 = vxpose.xlu1.b32.start.end [1/1] (short) (narrow) %v961_v56, 32 }
 0x1a1   :  { %v2025_v0 = vpop.permute.xlu1 %2024 }
 0x1a2   :  { %v2158_v3 = vpop.permute.xlu0 %2157 }
 0x1a4   :  { %830 = vxpose.xlu0.b32.start.end [1/1] (short) (narrow) %v828_v57, 32 }
 0x1a5   :  { %v2291_v2 = vpop.permute.xlu1 %2290 }
 0x1ad   :  { %1229 = vxpose.xlu1.b32.start.end [1/1] (short) (narrow) %v1227_v58, 32 }
 0x1b1   :  { %1096 = vxpose.xlu0.b32.start.end [1/1] (short) (narrow) %v1094_v59, 32 }
 0x1ba   :  { %1495 = vxpose.xlu1.b32.start.end [1/1] (short) (narrow) %v1493_v60, 32 }
 0x1be   :  { %1362 = vxpose.xlu0.b32.start.end [1/1] (short) (narrow) %v1360_v61, 32 }
 0x1c7   :  { %1761 = vxpose.xlu1.b32.start.end [1/1] (short) (narrow) %v1759_v62, 32 }
 0x1cb   :  { %1628 = vxpose.xlu0.b32.start.end [1/1] (short) (narrow) %v1626_v63, 32 }
 0x1d4   :  { %2027 = vxpose.xlu1.b32.start.end [1/1] (short) (narrow) %v2025_v0, 32 }
 0x1d8   :  { %1894 = vxpose.xlu0.b32.start.end [1/1] (short) (narrow) %v1892_v1, 32 }
 0x1e1   :  { %2293 = vxpose.xlu1.b32.start.end [1/1] (short) (narrow) %v2291_v2, 32 }
 0x1e5   :  { %2160 = vxpose.xlu0.b32.start.end [1/1] (short) (narrow) %v2158_v3, 32 }
 0x206   :  { %v447_v4 = vpop.trf.xlu1 }
 0x20a   :  { %v448_v5 = vpop.trf.xlu1  ;;  %v313_v6 = vpop.trf.xlu0 }
 0x20b   :  { %3192 = vrot.lane.b32.xlu1 %v7926_v23, %s7793_s2  ;;  %6735 = vmatprep.mubr.msk.f32.mxu1 %vm329_vm1, %v313_v6 }
 0x20e   :  { %v449_v7 = vpop.trf.xlu1  ;;  %v314_v8 = vpop.trf.xlu0 }
 0x20f   :  { %3364 = vrot.lane.b32.xlu1 %v7939_v27, %s7793_s2  ;;  %6736 = vmatmul.mubr.msk.f32.vlgmr.msra.gmra.mrb[0].mxu1 %vm329_vm1, %v314_v8 }
 0x210   :  { %6742 = vmatpush3.msra.mxu1 %v7924_v21 }
 0x211   :  { %6749 = vmatprep.subr.mxu1 %v7939_v27 }
 0x212   :  { %v450_v9 = vpop.trf.xlu1  ;;  %v315_v10 = vpop.trf.xlu0 }
 0x213   :  { %3536 = vrot.lane.b32.xlu1 %v7943_v31, %s7793_s2  ;;  %6738 = vmatprep.mubr.msk.f32.mxu1 %vm329_vm1, %v315_v10 }
 0x216   :  { %v713_v11 = vpop.trf.xlu1  ;;  %v316_v12 = vpop.trf.xlu0 }
 0x217   :  { %3708 = vrot.lane.b32.xlu1 %v7953_v35, %s7793_s2  ;;  %6739 = vmatmul.mubr.msk.f32.gmra.mrb[2].mxu1 %vm329_vm1, %v316_v12 }
 0x218   :  { %6743 = vmatprep.mubr.msk.f32.mxu1 %vm329_vm1, %v447_v4 }
 0x21a   :  { %v714_v13 = vpop.trf.xlu1  ;;  %3278 = vrot.lane.b32.xlu0 %v7924_v21, %s7793_s2  ;;  %v580_v14 = vpop.trf.xlu0 }
 0x21b   :  { %6744 = vmatmul.mubr.msk.f32.vlgmr.msra.gmra.mrb[4].mxu1 %vm329_vm1, %v448_v5 }
 0x21c   :  { %6750 = vmatpush3.msra.mxu1 %v7939_v27  ;;  %6746 = vmatprep.mubr.msk.f32.mxu1 %vm329_vm1, %v449_v7 }
 0x21d   :  { %6757 = vmatprep.subr.mxu1 %v7932_v25 }
 0x21e   :  { %v715_v15 = vpop.trf.xlu1  ;;  %3450 = vrot.lane.b32.xlu0 %v7932_v25, %s7793_s2  ;;  %v581_v16 = vpop.trf.xlu0 }
 0x21f   :  { %6747 = vmatmul.mubr.msk.f32.gmra.mrb[6].mxu1 %vm329_vm1, %v450_v9 }
 0x220   :  { %6751 = vmatprep.mubr.msk.f32.mxu1 %vm329_vm1, %v580_v14 }
 0x222   :  { %v716_v17 = vpop.trf.xlu1  ;;  %3622 = vrot.lane.b32.xlu0 %v7941_v29, %s7793_s2  ;;  %v582_v18 = vpop.trf.xlu0 }
 0x223   :  { %6752 = vmatmul.mubr.msk.f32.vlgmr.msra.gmra.mrb[8].mxu1 %vm329_vm1, %v581_v16 }
 0x224   :  { %6758 = vmatpush3.msra.mxu1 %v7932_v25  ;;  %6754 = vmatprep.mubr.msk.f32.mxu1 %vm329_vm1, %v582_v18 }
 0x225   :  { %6765 = vmatprep.subr.mxu1 %v7943_v31 }
 0x226   :  { %v979_v19 = vpop.trf.xlu1  ;;  %v583_v20 = vpop.trf.xlu0 }
 0x227   :  { %6755 = vmatmul.mubr.msk.f32.gmra.mrb[10].mxu1 %vm329_vm1, %v583_v20  ;;  %6775 = vmatprep.mubr.msk.f32.mxu0 %vm329_vm1, %v979_v19 }
 0x228   :  { %6759 = vmatprep.mubr.msk.f32.mxu1 %vm329_vm1, %v713_v11 }
 0x22a   :  { %v980_v21 = vpop.trf.xlu1  ;;  %v846_v22 = vpop.trf.xlu0 }
 0x22b   :  { %6760 = vmatmul.mubr.msk.f32.vlgmr.msra.gmra.mrb[12].mxu1 %vm329_vm1, %v714_v13  ;;  %6776 = vmatmul.mubr.msk.f32.vlgmr.msra.gmra.mrb[16].mxu0 %vm329_vm1, %v980_v21 }
 0x22c   :  { %6766 = vmatpush3.msra.mxu1 %v7943_v31  ;;  %6790 = vmatpush3.msra.mxu0 %v7951_v33 }
 0x22d   :  { %6762 = vmatprep.mubr.msk.f32.mxu1 %vm329_vm1, %v715_v15  ;;  %6781 = vmatprep.subr.mxu1 %v7953_v35 }
 0x22e   :  { %6805 = vmatprep.subr.mxu0 %v7964_v39  ;;  %v981_v23 = vpop.trf.xlu1  ;;  %v847_v24 = vpop.trf.xlu0 }
 0x22f   :  { %6763 = vmatmul.mubr.msk.f32.gmra.mrb[14].mxu1 %vm329_vm1, %v716_v17  ;;  %6778 = vmatprep.mubr.msk.f32.mxu0 %vm329_vm1, %v981_v23 }
 0x230   :  { %6767 = vmatprep.mubr.msk.f32.mxu1 %vm329_vm1, %v846_v22 }
 0x232   :  { %v982_v25 = vpop.trf.xlu1  ;;  %v848_v26 = vpop.trf.xlu0 }
 0x233   :  { %6768 = vmatmul.mubr.msk.f32.vlgmr.msra.gmra.mrb[16].mxu1 %vm329_vm1, %v847_v24  ;;  %6779 = vmatmul.mubr.msk.f32.gmra.mrb[18].mxu0 %vm329_vm1, %v982_v25 }
 0x234   :  { %6782 = vmatpush3.msra.mxu1 %v7953_v35  ;;  %6770 = vmatprep.mubr.msk.f32.mxu1 %vm329_vm1, %v848_v26 }
 0x235   :  { %6797 = vmatprep.subr.mxu1 %v7960_v38 }
 0x236   :  { %v1245_v27 = vpop.trf.xlu1  ;;  %v849_v28 = vpop.trf.xlu0 }
 0x237   :  { %6791 = vmatprep.mubr.msk.f32.mxu0 %vm329_vm1, %v1245_v27  ;;  %6771 = vmatmul.mubr.msk.f32.gmra.mrb[18].mxu1 %vm329_vm1, %v849_v28 }
 0x23a   :  { %v1246_v29 = vpop.trf.xlu1  ;;  %v1112_v30 = vpop.trf.xlu0 }
 0x23b   :  { %6792 = vmatmul.mubr.msk.f32.vlgmr.msra.gmra.mrb[20].mxu0 %vm329_vm1, %v1246_v29  ;;  %6783 = vmatprep.mubr.msk.f32.mxu1 %vm329_vm1, %v1112_v30 }
 0x23c   :  { %6806 = vmatpush3.msra.mxu0 %v7964_v39 }
 0x23d   :  { %6821 = vmatprep.subr.mxu0 %v7972_v43 }
 0x23e   :  { %v1247_v31 = vpop.trf.xlu1  ;;  %v1113_v32 = vpop.trf.xlu0 }
 0x23f   :  { %6784 = vmatmul.mubr.msk.f32.vlgmr.msra.gmra.mrb[20].mxu1 %vm329_vm1, %v1113_v32  ;;  %6794 = vmatprep.mubr.msk.f32.mxu0 %vm329_vm1, %v1247_v31 }
 0x240   :  { %6798 = vmatpush3.msra.mxu1 %v7960_v38 }
 0x241   :  { %6813 = vmatprep.subr.mxu1 %v7968_v42 }
 0x242   :  { %v1248_v34 = vpop.trf.xlu1  ;;  %v1114_v35 = vpop.trf.xlu0 }
 0x243   :  { %6795 = vmatmul.mubr.msk.f32.gmra.mrb[22].mxu0 %vm329_vm1, %v1248_v34  ;;  %6786 = vmatprep.mubr.msk.f32.mxu1 %vm329_vm1, %v1114_v35 }
 0x246   :  { %v1511_v36 = vpop.trf.xlu1  ;;  %v1115_v37 = vpop.trf.xlu0 }
 0x247   :  { %6807 = vmatprep.mubr.msk.f32.mxu0 %vm329_vm1, %v1511_v36  ;;  %6787 = vmatmul.mubr.msk.f32.gmra.mrb[22].mxu1 %vm329_vm1, %v1115_v37 }
 0x24a   :  { %v1512_v40 = vpop.trf.xlu1  ;;  %v1378_v41 = vpop.trf.xlu0 }
 0x24b   :  { %6808 = vmatmul.mubr.msk.f32.vlgmr.msra.gmra.mrb[24].mxu0 %vm329_vm1, %v1512_v40  ;;  %6799 = vmatprep.mubr.msk.f32.mxu1 %vm329_vm1, %v1378_v41 }
 0x24c   :  { %6822 = vmatpush3.msra.mxu0 %v7972_v43 }
 0x24d   :  { %6837 = vmatprep.subr.mxu0 %v7980_v47 }
 0x24e   :  { %v1513_v44 = vpop.trf.xlu1  ;;  %v1379_v45 = vpop.trf.xlu0 }
 0x24f   :  { %6800 = vmatmul.mubr.msk.f32.vlgmr.msra.gmra.mrb[24].mxu1 %vm329_vm1, %v1379_v45  ;;  %6810 = vmatprep.mubr.msk.f32.mxu0 %vm329_vm1, %v1513_v44 }
 0x250   :  { %6814 = vmatpush3.msra.mxu1 %v7968_v42 }
 0x251   :  { %6829 = vmatprep.subr.mxu1 %v7976_v46 }
 0x252   :  { %v1514_v48 = vpop.trf.xlu1  ;;  %v1380_v49 = vpop.trf.xlu0 }
 0x253   :  { %6811 = vmatmul.mubr.msk.f32.gmra.mrb[26].mxu0 %vm329_vm1, %v1514_v48  ;;  %6802 = vmatprep.mubr.msk.f32.mxu1 %vm329_vm1, %v1380_v49 }
 0x256   :  { %v1777_v52 = vpop.trf.xlu1  ;;  %v1381_v53 = vpop.trf.xlu0 }
 0x257   :  { %6823 = vmatprep.mubr.msk.f32.mxu0 %vm329_vm1, %v1777_v52  ;;  %6803 = vmatmul.mubr.msk.f32.gmra.mrb[26].mxu1 %vm329_vm1, %v1381_v53 }
 0x25a   :  { %v1778_v54 = vpop.trf.xlu1  ;;  %v1644_v55 = vpop.trf.xlu0 }
 0x25b   :  { %6824 = vmatmul.mubr.msk.f32.vlgmr.msra.gmra.mrb[28].mxu0 %vm329_vm1, %v1778_v54  ;;  %6815 = vmatprep.mubr.msk.f32.mxu1 %vm329_vm1, %v1644_v55 }
 0x25c   :  { %6838 = vmatpush3.msra.mxu0 %v7980_v47 }
 0x25d   :  { %6853 = vmatprep.subr.mxu0 %v7986_v51 }
 0x25e   :  { %v1779_v56 = vpop.trf.xlu1  ;;  %v1645_v57 = vpop.trf.xlu0 }
 0x25f   :  { %6816 = vmatmul.mubr.msk.f32.vlgmr.msra.gmra.mrb[28].mxu1 %vm329_vm1, %v1645_v57  ;;  %6826 = vmatprep.mubr.msk.f32.mxu0 %vm329_vm1, %v1779_v56 }
 0x260   :  { %6830 = vmatpush3.msra.mxu1 %v7976_v46 }
 0x261   :  { %6845 = vmatprep.subr.mxu1 %v7984_v50 }
 0x262   :  { %v1780_v58 = vpop.trf.xlu1  ;;  %v1646_v59 = vpop.trf.xlu0 }
 0x263   :  { %6827 = vmatmul.mubr.msk.f32.gmra.mrb[30].mxu0 %vm329_vm1, %v1780_v58  ;;  %6818 = vmatprep.mubr.msk.f32.mxu1 %vm329_vm1, %v1646_v59 }
 0x266   :  { %v2043_v60 = vpop.trf.xlu1  ;;  %v1647_v61 = vpop.trf.xlu0 }
 0x267   :  { %6839 = vmatprep.mubr.msk.f32.mxu0 %vm329_vm1, %v2043_v60  ;;  %6819 = vmatmul.mubr.msk.f32.gmra.mrb[30].mxu1 %vm329_vm1, %v1647_v61 }
 0x26a   :  { %v2044_v62 = vpop.trf.xlu1  ;;  %v1910_v63 = vpop.trf.xlu0 }
 0x26b   :  { %6840 = vmatmul.mubr.msk.f32.vlgmr.msra.gmra.mrb[32].mxu0 %vm329_vm1, %v2044_v62  ;;  %6831 = vmatprep.mubr.msk.f32.mxu1 %vm329_vm1, %v1910_v63 }
 0x26c   :  { %6854 = vmatpush3.msra.mxu0 %v7986_v51 }
 0x26e   :  { %v2045_v0 = vpop.trf.xlu1  ;;  %v1911_v1 = vpop.trf.xlu0 }
 0x26f   :  { %6832 = vmatmul.mubr.msk.f32.vlgmr.msra.gmra.mrb[32].mxu1 %vm329_vm1, %v1911_v1  ;;  %6842 = vmatprep.mubr.msk.f32.mxu0 %vm329_vm1, %v2045_v0 }
 0x270   :  { %6846 = vmatpush3.msra.mxu1 %v7984_v50 }
 0x272   :  { %v2046_v2 = vpop.trf.xlu1  ;;  %v1912_v3 = vpop.trf.xlu0 }
 0x273   :  { %6843 = vmatmul.mubr.msk.f32.gmra.mrb[34].mxu0 %vm329_vm1, %v2046_v2  ;;  %6834 = vmatprep.mubr.msk.f32.mxu1 %vm329_vm1, %v1912_v3 }
 0x276   :  { %v2309_v4 = vpop.trf.xlu1  ;;  %v1913_v5 = vpop.trf.xlu0 }
 0x277   :  { %6855 = vmatprep.mubr.msk.f32.mxu0 %vm329_vm1, %v2309_v4  ;;  %6835 = vmatmul.mubr.msk.f32.gmra.mrb[34].mxu1 %vm329_vm1, %v1913_v5 }
 0x27a   :  { %v2310_v6 = vpop.trf.xlu1  ;;  %v2176_v7 = vpop.trf.xlu0 }
 0x27b   :  { %6856 = vmatmul.mubr.msk.f32.vlgmr.msra.gmra.mrb[36].mxu0 %vm329_vm1, %v2310_v6  ;;  %6847 = vmatprep.mubr.msk.f32.mxu1 %vm329_vm1, %v2176_v7 }
 0x27e   :  { %v2311_v8 = vpop.trf.xlu1  ;;  %v2177_v9 = vpop.trf.xlu0 }
 0x27f   :  { %6858 = vmatprep.mubr.msk.f32.mxu0 %vm329_vm1, %v2311_v8  ;;  %6848 = vmatmul.mubr.msk.f32.vlgmr.msra.gmra.mrb[36].mxu1 %vm329_vm1, %v2177_v9 }
 0x282   :  { %v2312_v10 = vpop.trf.xlu1  ;;  %v2178_v11 = vpop.trf.xlu0 }
 0x283   :  { %6859 = vmatmul.mubr.msk.f32.gmra.mrb[38].mxu0 %vm329_vm1, %v2312_v10  ;;  %6850 = vmatprep.mubr.msk.f32.mxu1 %vm329_vm1, %v2178_v11 }
 0x286   :  { %v2179_v12 = vpop.trf.xlu0 }
 0x287   :  { %6851 = vmatmul.mubr.msk.f32.gmra.mrb[38].mxu1 %vm329_vm1, %v2179_v12 }
 0x2e2   :  { %v6737_v13 = vpop.f32.mrb[0].mxu1 }
 0x2e3   :  { %v8098_v14 = vmul.f32 0.25, %v6737_v13  ;;  %v408_v15 = vpop.f32.mrb[1].mxu1 }
 0x2e4   :  { %v8100_v16 = vmul.f32 0.25, %v408_v15 }
 0x2e5   :  { %v2490_v17 = vsel %vm2486_vm2, %v8098_v14, -inf }
 0x2e6   :  { %2491 = vmax.xlane.f32.xlu1 %v2490_v17  ;;  %v2487_v18 = vsel %vm2486_vm2, %v8100_v16, -inf }
 0x2e7   :  { %2488 = vmax.xlane.f32.xlu0 %v2487_v18 }
 0x2ea   :  { %v6740_v19 = vpop.f32.mrb[2].mxu1 }
 0x2eb   :  { %v418_v20 = vpop.f32.mrb[3].mxu1  ;;  %v8110_v31 = vmul.f32 0.25, %v6740_v19 }
 0x2ec   :  { %v8116_v36 = vmul.f32 0.25, %v418_v20 }
 0x2ed   :  { %v2496_v48 = vsel %vm2486_vm2, %v8110_v31, -inf }
 0x2ee   :  { %v6745_v21 = vpop.f32.mrb[4].mxu1  ;;  %v2493_v49 = vsel %vm2486_vm2, %v8116_v36, -inf }
 0x2ef   :  { %v541_v22 = vpop.f32.mrb[5].mxu1  ;;  %v8132_v52 = vmul.f32 0.25, %v6745_v21 }
 0x2f0   :  { %v8140_v58 = vmul.f32 0.25, %v541_v22 }
 0x2f1   :  { %v2502_v59 = vsel %vm2486_vm2, %v8132_v52, -inf }
 0x2f2   :  { %v6748_v23 = vpop.f32.mrb[6].mxu1  ;;  %v2499_v1 = vsel %vm2486_vm2, %v8140_v58, -inf }
 0x2f3   :  { %v551_v24 = vpop.f32.mrb[7].mxu1  ;;  %v8164_v8 = vmul.f32 0.25, %v6748_v23 }
 0x2f4   :  { %v8144_v60 = vmul.f32 0.25, %v551_v24 }
 0x2f5   :  { %v2508_v15 = vsel %vm2486_vm2, %v8164_v8, -inf }
 0x2f6   :  { %v6753_v25 = vpop.f32.mrb[8].mxu1  ;;  %v2505_v3 = vsel %vm2486_vm2, %v8144_v60, -inf }
 0x2f7   :  { %v674_v26 = vpop.f32.mrb[9].mxu1  ;;  %v8178_v18 = vmul.f32 0.25, %v6753_v25 }
 0x2f8   :  { %v8160_v6 = vmul.f32 0.25, %v674_v26 }
 0x2f9   :  { %v2514_v25 = vsel %vm2486_vm2, %v8178_v18, -inf }
 0x2fa   :  { %v8106_v27 = vpop.f32.mrb[10].mxu1  ;;  %v2511_v13 = vsel %vm2486_vm2, %v8160_v6, -inf }
 0x2fb   :  { %v684_v28 = vpop.f32.mrb[11].mxu1 }
 0x2fc   :  { %v8182_v21 = vmul.f32 0.25, %v684_v28 }
 0x2fe   :  { %v8108_v29 = vpop.f32.mrb[12].mxu1  ;;  %v6777_v30 = vpop.f32.mrb[16].mxu0  ;;  %v2517_v28 = vsel %vm2486_vm2, %v8182_v21, -inf }
 0x2ff   :  { %v8112_v32 = vmul.f32 0.25, %v6777_v30  ;;  %v8114_v34 = vpop.f32.mrb[13].mxu1  ;;  %v1073_v35 = vpop.f32.mrb[17].mxu0 }
 0x300   :  { %v8118_v37 = vmul.f32 0.25, %v1073_v35 }
 0x301   :  { %v2550_v40 = vsel %vm2486_vm2, %v8112_v32, -inf }
 0x302   :  { %2551 = vmax.xlane.f32.xlu0 %v2550_v40  ;;  %v8122_v41 = vpop.f32.mrb[14].mxu1  ;;  %v2547_v44 = vsel %vm2486_vm2, %v8118_v37, -inf  ;;  %v8199_v40 = vmul.f32 0.25, %v8106_v27 }
 0x303   :  { %2548 = vmax.xlane.f32.xlu1 %v2547_v44  ;;  %v8126_v45 = vpop.f32.mrb[15].mxu1 }
 0x304   :  { %v2520_v27 = vsel %vm2486_vm2, %v8199_v40, -inf }
 0x306   :  { %v6780_v53 = vpop.f32.mrb[18].mxu0  ;;  %2497 = vmax.xlane.f32.xlu0 %v2496_v48  ;;  %v8134_v54 = vpop.f32.mrb[16].mxu1 }
 0x307   :  { %v1083_v55 = vpop.f32.mrb[19].mxu0  ;;  %2494 = vmax.xlane.f32.xlu1 %v2493_v49  ;;  %v8136_v56 = vpop.f32.mrb[17].mxu1  ;;  %v8150_v63 = vmul.f32 0.25, %v6780_v53  ;;  %v8206_v53 = vmul.f32 0.25, %v8114_v34 }
 0x308   :  { %v8138_v57 = vmul.f32 0.25, %v1083_v55 }
 0x309   :  { %v2556_v5 = vsel %vm2486_vm2, %v8150_v63, -inf  ;;  %v2523_v34 = vsel %vm2486_vm2, %v8206_v53, -inf }
 0x30a   :  { %2503 = vmax.xlane.f32.xlu0 %v2502_v59  ;;  %v2553_v61 = vsel %vm2486_vm2, %v8138_v57, -inf  ;;  %v8148_v62 = vpop.f32.mrb[18].mxu1 }
 0x30b   :  { %2554 = vmax.xlane.f32.xlu1 %v2553_v61  ;;  %v8152_v0 = vpop.f32.mrb[19].mxu1 }
 0x30e   :  { %v6793_v2 = vpop.f32.mrb[20].mxu0  ;;  %2500 = vmax.xlane.f32.xlu0 %v2499_v1 }
 0x30f   :  { %v1339_v4 = vpop.f32.mrb[21].mxu0  ;;  %2506 = vmax.xlane.f32.xlu1 %v2505_v3  ;;  %v8170_v11 = vmul.f32 0.25, %v6793_v2 }
 0x310   :  { %v8162_v7 = vmul.f32 0.25, %v1339_v4 }
 0x311   :  { %v2574_v20 = vsel %vm2486_vm2, %v8170_v11, -inf }
 0x312   :  { %2557 = vmax.xlane.f32.xlu0 %v2556_v5  ;;  %v2571_v9 = vsel %vm2486_vm2, %v8162_v7, -inf  ;;  %v8168_v10 = vpop.f32.mrb[20].mxu1 }
 0x313   :  { %2572 = vmax.xlane.f32.xlu1 %v2571_v9  ;;  %v8172_v12 = vpop.f32.mrb[21].mxu1  ;;  %v8225_v9 = vmul.f32 0.25, %v8108_v29 }
 0x316   :  { %v6796_v17 = vpop.f32.mrb[22].mxu0  ;;  %2509 = vmax.xlane.f32.xlu0 %v2508_v15 }
 0x317   :  { %v1349_v19 = vpop.f32.mrb[23].mxu0  ;;  %2512 = vmax.xlane.f32.xlu1 %v2511_v13  ;;  %v8190_v26 = vmul.f32 0.25, %v6796_v17  ;;  %v8228_v13 = vmul.f32 0.25, %v8126_v45 }
 0x318   :  { %v8184_v22 = vmul.f32 0.25, %v1349_v19 }
 0x319   :  { %v2580_v48 = vsel %vm2486_vm2, %v8190_v26, -inf  ;;  %v2529_v29 = vsel %vm2486_vm2, %v8228_v13, -inf }
 0x31a   :  { %2575 = vmax.xlane.f32.xlu0 %v2574_v20  ;;  %v2577_v23 = vsel %vm2486_vm2, %v8184_v22, -inf  ;;  %v8188_v24 = vpop.f32.mrb[22].mxu1 }
 0x31b   :  { %2578 = vmax.xlane.f32.xlu1 %v2577_v23  ;;  %v8194_v30 = vpop.f32.mrb[23].mxu1  ;;  %v2526_v23 = vsel %vm2486_vm2, %v8225_v9, -inf }
 0x31e   :  { %v6809_v35 = vpop.f32.mrb[24].mxu0  ;;  %2515 = vmax.xlane.f32.xlu0 %v2514_v25 }
 0x31f   :  { %v1605_v44 = vpop.f32.mrb[25].mxu0  ;;  %2518 = vmax.xlane.f32.xlu1 %v2517_v28  ;;  %v8212_v61 = vmul.f32 0.25, %v6809_v35 }
 0x320   :  { %v8203_v49 = vmul.f32 0.25, %v1605_v44  ;;  %v8247_v44 = vmul.f32 0.25, %v8136_v56 }
 0x321   :  { %v2598_v4 = vsel %vm2486_vm2, %v8212_v61, -inf }
 0x322   :  { %2581 = vmax.xlane.f32.xlu0 %v2580_v48  ;;  %v2595_v55 = vsel %vm2486_vm2, %v8203_v49, -inf  ;;  %v8210_v59 = vpop.f32.mrb[24].mxu1  ;;  %v8250_v48 = vmul.f32 0.25, %v8122_v41 }
 0x323   :  { %2596 = vmax.xlane.f32.xlu1 %v2595_v55  ;;  %v8216_v1 = vpop.f32.mrb[25].mxu1 }
 0x324   :  { %v2532_v56 = vsel %vm2486_vm2, %v8250_v48, -inf }
 0x326   :  { %v6812_v2 = vpop.f32.mrb[26].mxu0  ;;  %2521 = vmax.xlane.f32.xlu0 %v2520_v27 }
 0x327   :  { %v1615_v3 = vpop.f32.mrb[27].mxu0  ;;  %2524 = vmax.xlane.f32.xlu1 %v2523_v34  ;;  %v8234_v19 = vmul.f32 0.25, %v6812_v2 }
 0x328   :  { %v8222_v5 = vmul.f32 0.25, %v1615_v3  ;;  %v2535_v3 = vsel %vm2486_vm2, %v8247_v44, -inf }
 0x329   :  { %v2604_v28 = vsel %vm2486_vm2, %v8234_v19, -inf }
 0x32a   :  { %2599 = vmax.xlane.f32.xlu0 %v2598_v4  ;;  %v2601_v15 = vsel %vm2486_vm2, %v8222_v5, -inf  ;;  %v8232_v17 = vpop.f32.mrb[26].mxu1 }
 0x32b   :  { %2602 = vmax.xlane.f32.xlu1 %v2601_v15  ;;  %v8236_v20 = vpop.f32.mrb[27].mxu1 }
 0x32e   :  { %v6825_v25 = vpop.f32.mrb[28].mxu0  ;;  %2527 = vmax.xlane.f32.xlu0 %v2526_v23 }
 0x32f   :  { %v1871_v45 = vpop.f32.mrb[29].mxu0  ;;  %2530 = vmax.xlane.f32.xlu1 %v2529_v29  ;;  %v8256_v2 = vmul.f32 0.25, %v6825_v25  ;;  %v8269_v25 = vmul.f32 0.25, %v8152_v0  ;;  %v8272_v29 = vmul.f32 0.25, %v8134_v54 }
 0x330   :  { %v8244_v35 = vmul.f32 0.25, %v1871_v45 }
 0x331   :  { %v2622_v15 = vsel %vm2486_vm2, %v8256_v2, -inf  ;;  %v2538_v0 = vsel %vm2486_vm2, %v8272_v29, -inf }
 0x332   :  { %2605 = vmax.xlane.f32.xlu0 %v2604_v28  ;;  %v2619_v55 = vsel %vm2486_vm2, %v8244_v35, -inf  ;;  %v8254_v27 = vpop.f32.mrb[28].mxu1 }
 0x333   :  { %2620 = vmax.xlane.f32.xlu1 %v2619_v55  ;;  %v8258_v34 = vpop.f32.mrb[29].mxu1 }
 0x336   :  { %v6828_v4 = vpop.f32.mrb[30].mxu0  ;;  %2533 = vmax.xlane.f32.xlu0 %v2532_v56  ;;  %v2541_v56 = vsel %vm2486_vm2, %v8269_v25, -inf }
 0x337   :  { %v1881_v41 = vpop.f32.mrb[31].mxu0  ;;  %2536 = vmax.xlane.f32.xlu1 %v2535_v3  ;;  %v8278_v55 = vmul.f32 0.25, %v6828_v4  ;;  %v8291_v4 = vmul.f32 0.25, %v8172_v12 }
 0x338   :  { %v8266_v23 = vmul.f32 0.25, %v1881_v41 }
 0x33a   :  { %2623 = vmax.xlane.f32.xlu0 %v2622_v15  ;;  %v2625_v45 = vsel %vm2486_vm2, %v8266_v23, -inf  ;;  %v8276_v28 = vpop.f32.mrb[30].mxu1  ;;  %v2628_v15 = vsel %vm2486_vm2, %v8278_v55, -inf }
 0x33b   :  { %2626 = vmax.xlane.f32.xlu1 %v2625_v45  ;;  %v8280_v3 = vpop.f32.mrb[31].mxu1  ;;  %v8294_v45 = vmul.f32 0.25, %v8148_v62 }
 0x33d   :  { %v2544_v12 = vsel %vm2486_vm2, %v8294_v45, -inf }
 0x33e   :  { %v6841_v41 = vpop.f32.mrb[32].mxu0  ;;  %2539 = vmax.xlane.f32.xlu0 %v2538_v0 }
 0x33f   :  { %v2137_v54 = vpop.f32.mrb[33].mxu0  ;;  %2542 = vmax.xlane.f32.xlu1 %v2541_v56  ;;  %v8300_v0 = vmul.f32 0.25, %v6841_v41  ;;  %v8313_v41 = vmul.f32 0.25, %v8194_v30 }
 0x340   :  { %v8288_v50 = vmul.f32 0.25, %v2137_v54  ;;  %v2559_v54 = vsel %vm2486_vm2, %v8291_v4, -inf }
 0x341   :  { %9927 = vst [vmem:[#allocation22_spill] sm:$0xff] %v8300_v0 }
 0x342   :  { %9926 = vst [vmem:[#allocation21_spill] sm:$0xff] %v8288_v50  ;;  %2629 = vmax.xlane.f32.xlu0 %v2628_v15  ;;  %v2643_v43 = vsel %vm2486_vm2, %v8288_v50, -inf  ;;  %v8298_v51 = vpop.f32.mrb[32].mxu1  ;;  %v2646_v15 = vsel %vm2486_vm2, %v8300_v0, -inf }
 0x343   :  { %2644 = vmax.xlane.f32.xlu1 %v2643_v43  ;;  %v8302_v56 = vpop.f32.mrb[33].mxu1  ;;  %v8316_v43 = vmul.f32 0.25, %v8168_v10 }
 0x345   :  { %v2562_v30 = vsel %vm2486_vm2, %v8316_v43, -inf }
 0x346   :  { %v6844_v47 = vpop.f32.mrb[34].mxu0  ;;  %2545 = vmax.xlane.f32.xlu0 %v2544_v12 }
 0x347   :  { %v2147_v62 = vpop.f32.mrb[35].mxu0  ;;  %2560 = vmax.xlane.f32.xlu1 %v2559_v54  ;;  %v8322_v12 = vmul.f32 0.25, %v6844_v47  ;;  %v8333_v47 = vmul.f32 0.25, %v8216_v1 }
 0x348   :  { %v8310_v46 = vmul.f32 0.25, %v2147_v62  ;;  %v2565_v62 = vsel %vm2486_vm2, %v8313_v41, -inf }
 0x349   :  { %9929 = vst [vmem:[#allocation24_spill] sm:$0xff] %v8322_v12  ;;  %9931 = vst [vmem:[#allocation26_spill] sm:$0xff] %v8333_v47 }
 0x34a   :  { %9928 = vst [vmem:[#allocation23_spill] sm:$0xff] %v8310_v46  ;;  %2647 = vmax.xlane.f32.xlu0 %v2646_v15  ;;  %v2649_v42 = vsel %vm2486_vm2, %v8310_v46, -inf  ;;  %v8320_v39 = vpop.f32.mrb[34].mxu1  ;;  %v2652_v15 = vsel %vm2486_vm2, %v8322_v12, -inf }
 0x34b   :  { %2650 = vmax.xlane.f32.xlu1 %v2649_v42  ;;  %v2014_v54 = vpop.f32.mrb[35].mxu1  ;;  %v8336_v42 = vmul.f32 0.25, %v8188_v24 }
 0x34d   :  { %9932 = vst [vmem:[#allocation27_spill] sm:$0xff] %v8336_v42 }
 0x34e   :  { %v6857_v0 = vpop.f32.mrb[36].mxu0  ;;  %2563 = vmax.xlane.f32.xlu0 %v2562_v30  ;;  %v2583_v30 = vsel %vm2486_vm2, %v8333_v47, -inf }
 0x34f   :  { %v2403_v10 = vpop.f32.mrb[37].mxu0  ;;  %2566 = vmax.xlane.f32.xlu1 %v2565_v62  ;;  %v8340_v50 = vmul.f32 0.25, %v6857_v0  ;;  %v8351_v0 = vmul.f32 0.25, %v8236_v20  ;;  %v8365_v20 = vpop.permute.xlu1 %3192 }
 0x350   :  { %v8330_v38 = vmul.f32 0.25, %v2403_v10  ;;  %v2568_v10 = vsel %vm2486_vm2, %v8336_v42, -inf  ;;  %9936 = vst [vmem:[#allocation31_spill] sm:$0xff] %v8365_v20  ;;  %v8381_v20 = vpop.permute.xlu0 %3278 }
 0x351   :  { %9933 = vst [vmem:[#allocation28_spill] sm:$0xff] %v8340_v50  ;;  %v2670_v24 = vsel %vm2486_vm2, %v8340_v50, -inf  ;;  %v8377_v50 = vmul.f32 0.25, %v8232_v17  ;;  %9938 = vst [vmem:[#allocation33_spill] sm:$0xff] %v8381_v20  ;;  %v8394_v17 = vmul.f32 0.25, %v8276_v28  ;;  %v8407_v20 = vmul.f32 0.25, %v8298_v51 }
 0x352   :  { %9930 = vst [vmem:[#allocation25_spill] sm:$0xff] %v8330_v38  ;;  %2653 = vmax.xlane.f32.xlu0 %v2652_v15  ;;  %v2667_v33 = vsel %vm2486_vm2, %v8330_v38, -inf  ;;  %v6849_v46 = vpop.f32.mrb[36].mxu1 }
 0x353   :  { %2668 = vmax.xlane.f32.xlu1 %v2667_v33  ;;  %v2270_v62 = vpop.f32.mrb[37].mxu1  ;;  %v8354_v33 = vmul.f32 0.25, %v8210_v59  ;;  %9941 = vst [vmem:[#allocation36_spill] sm:$0xff] %v8407_v20  ;;  %v2616_v28 = vsel %vm2486_vm2, %v8394_v17, -inf  ;;  %v2634_v51 = vsel %vm2486_vm2, %v8407_v20, -inf }
 0x355   :  { %v2586_v59 = vsel %vm2486_vm2, %v8354_v33, -inf }
 0x356   :  { %v6860_v1 = vpop.f32.mrb[38].mxu0  ;;  %2569 = vmax.xlane.f32.xlu0 %v2568_v10  ;;  %v2589_v10 = vsel %vm2486_vm2, %v8351_v0, -inf }
 0x357   :  { %v2413_v12 = vpop.f32.mrb[39].mxu0  ;;  %2584 = vmax.xlane.f32.xlu1 %v2583_v30  ;;  %v8358_v42 = vmul.f32 0.25, %v6860_v1  ;;  %v8374_v1 = vmul.f32 0.25, %v8280_v3  ;;  %v2592_v3 = vsel %vm2486_vm2, %v8377_v50, -inf }
 0x358   :  { %v8348_v15 = vmul.f32 0.25, %v2413_v12  ;;  %v8363_v12 = vmul.f32 0.25, %v8258_v34  ;;  %v8379_v34 = vpop.permute.xlu1 %3364 }
 0x359   :  { %9935 = vst [vmem:[#allocation30_spill] sm:$0xff] %v8358_v42  ;;  %9937 = vst [vmem:[#allocation32_spill] sm:$0xff] %v8379_v34 }
 0x35a   :  { %9934 = vst [vmem:[#allocation29_spill] sm:$0xff] %v8348_v15  ;;  %2671 = vmax.xlane.f32.xlu0 %v2670_v24  ;;  %v2673_v38 = vsel %vm2486_vm2, %v8348_v15, -inf  ;;  %v6852_v47 = vpop.f32.mrb[38].mxu1  ;;  %v2676_v24 = vsel %vm2486_vm2, %v8358_v42, -inf  ;;  %v8389_v42 = vmul.f32 0.25, %v8254_v27  ;;  %v8404_v27 = vpop.permute.xlu0 %3450 }
 0x35b   :  { %2674 = vmax.xlane.f32.xlu1 %v2673_v38  ;;  %v2280_v30 = vpop.f32.mrb[39].mxu1  ;;  %v2607_v38 = vsel %vm2486_vm2, %v8363_v12, -inf  ;;  %9940 = vst [vmem:[#allocation35_spill] sm:$0xff] %v8404_v27 }
 0x35c   :  { %v8400_v34 = vpop.permute.xlu1 %3536  ;;  %v8426_v27 = vmul.f32 0.25, %v2280_v30  ;;  %v8436_v30 = vmul.f32 0.25, %v6852_v47 }
 0x35d   :  { %9939 = vst [vmem:[#allocation34_spill] sm:$0xff] %v8400_v34  ;;  %v8418_v34 = vmul.f32 0.25, %v8320_v39 }
 0x35e   :  { %2587 = vmax.xlane.f32.xlu0 %v2586_v59  ;;  %v8386_v59 = vmul.f32 0.25, %v8302_v56  ;;  %v2610_v56 = vsel %vm2486_vm2, %v8389_v42, -inf  ;;  %9944 = vst [vmem:[#allocation39_spill] sm:$0xff] %v8426_v27  ;;  %v2661_v15 = vsel %vm2486_vm2, %v8426_v27, -inf  ;;  %9946 = vst [vmem:[#allocation41_spill] sm:$0xff] %v8436_v30 }
 0x35f   :  { %2590 = vmax.xlane.f32.xlu1 %v2589_v10  ;;  %v2613_v10 = vsel %vm2486_vm2, %v8374_v1, -inf  ;;  %v2640_v39 = vsel %vm2486_vm2, %v8418_v34, -inf }
 0x362   :  { %2677 = vmax.xlane.f32.xlu0 %v2676_v24  ;;  %v2631_v24 = vsel %vm2486_vm2, %v8386_v59, -inf }
 0x363   :  { %2608 = vmax.xlane.f32.xlu1 %v2607_v38  ;;  %v8398_v38 = vmul.f32 0.25, %v2014_v54  ;;  %v8413_v54 = vmul.f32 0.25, %v2270_v62  ;;  %v8428_v62 = vmul.f32 0.25, %v6849_v46 }
 0x365   :  { %9945 = vst [vmem:[#allocation40_spill] sm:$0xff] %v8428_v62  ;;  %v2658_v46 = vsel %vm2486_vm2, %v8428_v62, -inf }
 0x366   :  { %2593 = vmax.xlane.f32.xlu0 %v2592_v3  ;;  %v8415_v3 = vpop.permute.xlu1 %3708 }
 0x367   :  { %2614 = vmax.xlane.f32.xlu1 %v2613_v10  ;;  %v2637_v10 = vsel %vm2486_vm2, %v8398_v38, -inf  ;;  %9942 = vst [vmem:[#allocation37_spill] sm:$0xff] %v8415_v3 }
 0x36a   :  { %2611 = vmax.xlane.f32.xlu0 %v2610_v56  ;;  %v8422_v56 = vpop.permute.xlu0 %3622 }
 0x36b   :  { %2632 = vmax.xlane.f32.xlu1 %v2631_v24  ;;  %9943 = vst [vmem:[#allocation38_spill] sm:$0xff] %v8422_v56  ;;  %v2655_v24 = vsel %vm2486_vm2, %v8413_v54, -inf }
 0x36e   :  { %2617 = vmax.xlane.f32.xlu0 %v2616_v28 }
 0x36f   :  { %2638 = vmax.xlane.f32.xlu1 %v2637_v10 }
 0x372   :  { %2635 = vmax.xlane.f32.xlu0 %v2634_v51 }
 0x373   :  { %v2492_v28 = vpop.xlane.xlu1 %2491  ;;  %2656 = vmax.xlane.f32.xlu1 %v2655_v24 }
 0x374   :  { %v2680_v10 = vsub.f32 %v8098_v14, %v2492_v28  ;;  %v2489_v3 = vpop.xlane.xlu0 %2488  ;;  %v2664_v14 = vsel %vm2486_vm2, %v8436_v30, -inf }
 0x375   :  { %v2679_v56 = vsub.f32 %v8100_v16, %v2489_v3 }
 0x376   :  { %v2745_v20 = vmul.f32 1.442695, %v2680_v10  ;;  %2641 = vmax.xlane.f32.xlu0 %v2640_v39 }
 0x377   :  { %v2743_v51 = vmul.f32 1.442695, %v2679_v56  ;;  %2662 = vmax.xlane.f32.xlu1 %v2661_v15 }
 0x378   :  { %7337 = vpow2.f32 %v2745_v20 }
 0x379   :  { %7339 = vpow2.f32 %v2743_v51 }
 0x37a   :  { %2659 = vmax.xlane.f32.xlu0 %v2658_v46 }
 0x37e   :  { %2665 = vmax.xlane.f32.xlu0 %v2664_v14 }
 0x382   :  { %v8442_v24 = vpop.eup %7337 }
 0x383   :  { %v8444_v28 = vpop.eup %7339  ;;  %v2874_v16 = vsel %vm2486_vm2, %v8442_v24, 0.0 }
 0x384   :  { %2875 = vadd.xlane.f32.xlu0 %v2874_v16  ;;  %v2871_v47 = vsel %vm2486_vm2, %v8444_v28, 0.0 }
 0x385   :  { %2872 = vadd.xlane.f32.xlu1 %v2871_v47 }
 0x38f   :  { %v2552_v15 = vpop.xlane.xlu0 %2551 }
 0x390   :  { %v2700_v20 = vsub.f32 %v8112_v32, %v2552_v15  ;;  %v2549_v3 = vpop.xlane.xlu1 %2548 }
 0x391   :  { %v2699_v56 = vsub.f32 %v8118_v37, %v2549_v3 }
 0x392   :  { %v2785_v39 = vmul.f32 1.442695, %v2700_v20 }
 0x393   :  { %v2783_v10 = vmul.f32 1.442695, %v2699_v56  ;;  %v2498_v51 = vpop.xlane.xlu0 %2497 }
 0x394   :  { %7341 = vpow2.f32 %v2785_v39  ;;  %v2682_v46 = vsub.f32 %v8110_v31, %v2498_v51  ;;  %v2495_v14 = vpop.xlane.xlu1 %2494 }
 0x395   :  { %7343 = vpow2.f32 %v2783_v10  ;;  %v2681_v16 = vsub.f32 %v8116_v36, %v2495_v14 }
 0x396   :  { %v2749_v30 = vmul.f32 1.442695, %v2682_v46 }
 0x397   :  { %v2747_v62 = vmul.f32 1.442695, %v2681_v16  ;;  %v2504_v27 = vpop.xlane.xlu0 %2503 }
 0x398   :  { %7345 = vpow2.f32 %v2749_v30  ;;  %v2684_v47 = vsub.f32 %v8132_v52, %v2504_v27  ;;  %v2555_v32 = vpop.xlane.xlu1 %2554  ;;  %v9896_v27 = vmov 0.0|0.0  }
 0x399   :  { %7347 = vpow2.f32 %v2747_v62  ;;  %v2701_v37 = vsub.f32 %v8138_v57, %v2555_v32  ;;  %7129 = vmatprep.subr.bf16.mxu1 %v9896_v27  ;;  %7137 = vmatprep.subr.bf16.mxu0 %v9896_v27 }
 0x39a   :  { %v2753_v15 = vmul.f32 1.442695, %v2684_v47 }
 0x39b   :  { %v2501_v20 = vpop.xlane.xlu0 %2500  ;;  %v2787_v39 = vmul.f32 1.442695, %v2701_v37 }
 0x39c   :  { %7349 = vpow2.f32 %v2753_v15  ;;  %v2683_v3 = vsub.f32 %v8140_v58, %v2501_v20  ;;  %v2507_v31 = vpop.xlane.xlu1 %2506 }
 0x39d   :  { %v2685_v10 = vsub.f32 %v8144_v60, %v2507_v31 }
 0x39e   :  { %v8457_v56 = vpop.eup %7341  ;;  %v2751_v36 = vmul.f32 1.442695, %v2683_v3 }
 0x39f   :  { %v8460_v51 = vpop.eup %7343  ;;  %v2558_v30 = vpop.xlane.xlu0 %2557  ;;  %v2934_v52 = vsel %vm2486_vm2, %v8457_v56, 0.0  ;;  %v2755_v46 = vmul.f32 1.442695, %v2685_v10 }
 0x3a0   :  { %7351 = vpow2.f32 %v2751_v36  ;;  %v2702_v57 = vsub.f32 %v8150_v63, %v2558_v30  ;;  %v2573_v58 = vpop.xlane.xlu1 %2572  ;;  %2935 = vadd.xlane.f32.xlu0 %v2934_v52  ;;  %v2931_v62 = vsel %vm2486_vm2, %v8460_v51, 0.0 }
 0x3a1   :  { %2932 = vadd.xlane.f32.xlu1 %v2931_v62  ;;  %7353 = vpow2.f32 %v2787_v39  ;;  %v2707_v16 = vsub.f32 %v8162_v7, %v2573_v58 }
 0x3a2   :  { %v8469_v60 = vpop.eup %7345  ;;  %v2789_v14 = vmul.f32 1.442695, %v2702_v57 }
 0x3a3   :  { %v8472_v47 = vpop.eup %7347  ;;  %v2510_v32 = vpop.xlane.xlu0 %2509  ;;  %v2880_v15 = vsel %vm2486_vm2, %v8469_v60, 0.0  ;;  %v2799_v31 = vmul.f32 1.442695, %v2707_v16 }
 0x3a4   :  { %7355 = vpow2.f32 %v2789_v14  ;;  %v2686_v63 = vsub.f32 %v8164_v8, %v2510_v32  ;;  %v2513_v37 = vpop.xlane.xlu1 %2512  ;;  %2881 = vadd.xlane.f32.xlu0 %v2880_v15  ;;  %v2877_v20 = vsel %vm2486_vm2, %v8472_v47, 0.0 }
 0x3a5   :  { %2878 = vadd.xlane.f32.xlu1 %v2877_v20  ;;  %7357 = vpow2.f32 %v2755_v46  ;;  %v2687_v39 = vsub.f32 %v8160_v6, %v2513_v37 }
 0x3a6   :  { %v8479_v3 = vpop.eup %7349  ;;  %v2757_v7 = vmul.f32 1.442695, %v2686_v63 }
 0x3a7   :  { %v2576_v36 = vpop.xlane.xlu0 %2575  ;;  %v2886_v10 = vsel %vm2486_vm2, %v8479_v3, 0.0  ;;  %v2759_v57 = vmul.f32 1.442695, %v2687_v39 }
 0x3a8   :  { %7359 = vpow2.f32 %v2757_v7  ;;  %v2708_v8 = vsub.f32 %v8170_v11, %v2576_v36  ;;  %v2579_v30 = vpop.xlane.xlu1 %2578  ;;  %2887 = vadd.xlane.f32.xlu0 %v2886_v10 }
 0x3a9   :  { %7361 = vpow2.f32 %v2799_v31  ;;  %v2709_v62 = vsub.f32 %v8184_v22, %v2579_v30 }
 0x3aa   :  { %v8485_v52 = vpop.eup %7351  ;;  %v2801_v58 = vmul.f32 1.442695, %v2708_v8 }
 0x3ab   :  { %v2516_v46 = vpop.xlane.xlu0 %2515  ;;  %v2883_v6 = vsel %vm2486_vm2, %v8485_v52, 0.0  ;;  %v8490_v14 = vpop.eup %7353  ;;  %v2803_v15 = vmul.f32 1.442695, %v2709_v62 }
 0x3ac   :  { %7363 = vpow2.f32 %v2801_v58  ;;  %v2688_v16 = vsub.f32 %v8178_v18, %v2516_v46  ;;  %v2519_v32 = vpop.xlane.xlu1 %2518  ;;  %2884 = vadd.xlane.f32.xlu1 %v2883_v6  ;;  %v2937_v31 = vsel %vm2486_vm2, %v8490_v14, 0.0 }
 0x3ad   :  { %7365 = vpow2.f32 %v2759_v57  ;;  %v2689_v37 = vsub.f32 %v8182_v21, %v2519_v32 }
 0x3ae   :  { %v8493_v11 = vpop.eup %7355  ;;  %v2761_v63 = vmul.f32 1.442695, %v2688_v16 }
 0x3af   :  { %v2582_v20 = vpop.xlane.xlu0 %2581  ;;  %v2940_v22 = vsel %vm2486_vm2, %v8493_v11, 0.0  ;;  %v8500_v7 = vpop.eup %7357  ;;  %v2763_v10 = vmul.f32 1.442695, %v2689_v37 }
 0x3b0   :  { %7367 = vpow2.f32 %v2761_v63  ;;  %v2710_v18 = vsub.f32 %v8190_v26, %v2582_v20  ;;  %v2597_v39 = vpop.xlane.xlu1 %2596  ;;  %2941 = vadd.xlane.f32.xlu0 %v2940_v22  ;;  %2938 = vadd.xlane.f32.xlu1 %v2937_v31  ;;  %v2889_v58 = vsel %vm2486_vm2, %v8500_v7, 0.0 }
 0x3b1   :  { %7369 = vpow2.f32 %v2803_v15  ;;  %v2715_v8 = vsub.f32 %v8203_v49, %v2597_v39 }
 0x3b2   :  { %v8503_v36 = vpop.eup %7359  ;;  %v2805_v21 = vmul.f32 1.442695, %v2710_v18 }
 0x3b3   :  { %v2522_v30 = vpop.xlane.xlu0 %2521  ;;  %v2892_v57 = vsel %vm2486_vm2, %v8503_v36, 0.0  ;;  %v8510_v62 = vpop.eup %7361  ;;  %v2815_v16 = vmul.f32 1.442695, %v2715_v8 }
 0x3b4   :  { %7371 = vpow2.f32 %v2805_v21  ;;  %v2690_v26 = vsub.f32 %v8199_v40, %v2522_v30  ;;  %v2525_v46 = vpop.xlane.xlu1 %2524  ;;  %2893 = vadd.xlane.f32.xlu0 %v2892_v57  ;;  %2890 = vadd.xlane.f32.xlu1 %v2889_v58  ;;  %v2955_v37 = vsel %vm2486_vm2, %v8510_v62, 0.0 }
 0x3b5   :  { %7373 = vpow2.f32 %v2763_v10  ;;  %v2691_v32 = vsub.f32 %v8206_v53, %v2525_v46 }
 0x3b6   :  { %v8513_v6 = vpop.eup %7363  ;;  %v2765_v49 = vmul.f32 1.442695, %v2690_v26 }
 0x3b7   :  { %v2600_v15 = vpop.xlane.xlu0 %2599  ;;  %v2958_v63 = vsel %vm2486_vm2, %v8513_v6, 0.0  ;;  %v8520_v20 = vpop.eup %7365  ;;  %v2767_v18 = vmul.f32 1.442695, %v2691_v32 }
 0x3b8   :  { %7375 = vpow2.f32 %v2765_v49  ;;  %v2716_v40 = vsub.f32 %v8212_v61, %v2600_v15  ;;  %v2603_v22 = vpop.xlane.xlu1 %2602  ;;  %2959 = vadd.xlane.f32.xlu0 %v2958_v63  ;;  %2956 = vadd.xlane.f32.xlu1 %v2955_v37  ;;  %v2895_v8 = vsel %vm2486_vm2, %v8520_v20, 0.0 }
 0x3b9   :  { %7377 = vpow2.f32 %v2815_v16  ;;  %v2717_v39 = vsub.f32 %v8222_v5, %v2603_v22 }
 0x3ba   :  { %v8523_v31 = vpop.eup %7367  ;;  %v2817_v53 = vmul.f32 1.442695, %v2716_v40 }
 0x3bb   :  { %v2528_v10 = vpop.xlane.xlu0 %2527  ;;  %v2898_v21 = vsel %vm2486_vm2, %v8523_v31, 0.0  ;;  %v8530_v30 = vpop.eup %7369  ;;  %v2819_v26 = vmul.f32 1.442695, %v2717_v39 }
 0x3bc   :  { %9947 = vst [vmem:[#allocation42_spill] sm:$0xff] %v8530_v30  ;;  %7379 = vpow2.f32 %v2817_v53  ;;  %v2692_v61 = vsub.f32 %v8225_v9, %v2528_v10  ;;  %v2531_v57 = vpop.xlane.xlu1 %2530  ;;  %2899 = vadd.xlane.f32.xlu0 %v2898_v21  ;;  %2896 = vadd.xlane.f32.xlu1 %v2895_v8  ;;  %v2961_v32 = vsel %vm2486_vm2, %v8530_v30, 0.0 }
 0x3bd   :  { %7381 = vpow2.f32 %v2767_v18  ;;  %v2693_v46 = vsub.f32 %v8228_v13, %v2531_v57 }
 0x3be   :  { %v8533_v58 = vpop.eup %7371  ;;  %v2769_v5 = vmul.f32 1.442695, %v2692_v61 }
 0x3bf   :  { %v2606_v16 = vpop.xlane.xlu0 %2605  ;;  %v2964_v49 = vsel %vm2486_vm2, %v8533_v58, 0.0  ;;  %v8540_v15 = vpop.eup %7373  ;;  %v2771_v40 = vmul.f32 1.442695, %v2693_v46 }
 0x3c0   :  { %7383 = vpow2.f32 %v2769_v5  ;;  %v2718_v9 = vsub.f32 %v8234_v19, %v2606_v16  ;;  %v2621_v63 = vpop.xlane.xlu1 %2620  ;;  %2965 = vadd.xlane.f32.xlu0 %v2964_v49  ;;  %2962 = vadd.xlane.f32.xlu1 %v2961_v32  ;;  %v2901_v39 = vsel %vm2486_vm2, %v8540_v15, 0.0 }
 0x3c1   :  { %7385 = vpow2.f32 %v2819_v26  ;;  %v2723_v22 = vsub.f32 %v8244_v35, %v2621_v63 }
 0x3c2   :  { %v8543_v37 = vpop.eup %7375  ;;  %v2821_v13 = vmul.f32 1.442695, %v2718_v9 }
 0x3c3   :  { %v2534_v18 = vpop.xlane.xlu0 %2533  ;;  %v2904_v53 = vsel %vm2486_vm2, %v8543_v37, 0.0  ;;  %v8550_v10 = vpop.eup %7377  ;;  %v2831_v61 = vmul.f32 1.442695, %v2723_v22 }
 0x3c4   :  { %9948 = vst [vmem:[#allocation43_spill] sm:$0xff] %v8550_v10  ;;  %7387 = vpow2.f32 %v2821_v13  ;;  %v2694_v19 = vsub.f32 %v8250_v48, %v2534_v18  ;;  %v2537_v21 = vpop.xlane.xlu1 %2536  ;;  %2905 = vadd.xlane.f32.xlu0 %v2904_v53  ;;  %2902 = vadd.xlane.f32.xlu1 %v2901_v39  ;;  %v2979_v46 = vsel %vm2486_vm2, %v8550_v10, 0.0 }
 0x3c5   :  { %7389 = vpow2.f32 %v2771_v40  ;;  %v2695_v57 = vsub.f32 %v8247_v44, %v2537_v21  ;;  %v9894_v40 = vmov 0.0  }
 0x3c6   :  { %v8553_v8 = vpop.eup %7379  ;;  %v2773_v35 = vmul.f32 1.442695, %v2694_v19  ;;  %6869 = vmatprep.mubr.msk.f32.mxu1 %vm7795_vm3, %v9894_v40  ;;  %6880 = vmatprep.mubr.msk.f32.mxu0 %vm7795_vm3, %v9894_v40 }
 0x3c7   :  { %9949 = vst [vmem:[#allocation44_spill] sm:$0xff] %v8553_v8  ;;  %v2624_v26 = vpop.xlane.xlu0 %2623  ;;  %v2982_v5 = vsel %vm2486_vm2, %v8553_v8, 0.0  ;;  %v8560_v16 = vpop.eup %7381  ;;  %v2775_v9 = vmul.f32 1.442695, %v2695_v57 }
 0x3c8   :  { %7391 = vpow2.f32 %v2773_v35  ;;  %v2724_v48 = vsub.f32 %v8256_v2, %v2624_v26  ;;  %v2627_v49 = vpop.xlane.xlu1 %2626  ;;  %2983 = vadd.xlane.f32.xlu0 %v2982_v5  ;;  %2980 = vadd.xlane.f32.xlu1 %v2979_v46  ;;  %v2907_v22 = vsel %vm2486_vm2, %v8560_v16, 0.0 }
 0x3c9   :  { %7393 = vpow2.f32 %v2831_v61  ;;  %v2725_v63 = vsub.f32 %v8266_v23, %v2627_v49 }
 0x3ca   :  { %v8563_v32 = vpop.eup %7383  ;;  %v2833_v44 = vmul.f32 1.442695, %v2724_v48 }
 0x3cb   :  { %v2540_v13 = vpop.xlane.xlu0 %2539  ;;  %v2910_v2 = vsel %vm2486_vm2, %v8563_v32, 0.0  ;;  %v8574_v18 = vpop.eup %7385  ;;  %v2835_v19 = vmul.f32 1.442695, %v2725_v63 }
 0x3cc   :  { %9950 = vst [vmem:[#allocation45_spill] sm:$0xff] %v8574_v18  ;;  %7395 = vpow2.f32 %v2833_v44  ;;  %v2696_v23 = vsub.f32 %v8272_v29, %v2540_v13  ;;  %v2543_v53 = vpop.xlane.xlu1 %2542  ;;  %2911 = vadd.xlane.f32.xlu0 %v2910_v2  ;;  %2908 = vadd.xlane.f32.xlu1 %v2907_v22  ;;  %v2985_v26 = vsel %vm2486_vm2, %v8574_v18, 0.0 }
 0x3cd   :  { %7397 = vpow2.f32 %v2775_v9  ;;  %v2697_v61 = vsub.f32 %v8269_v25, %v2543_v53 }
 0x3ce   :  { %v8577_v39 = vpop.eup %7387  ;;  %v2777_v21 = vmul.f32 1.442695, %v2696_v23 }
 0x3cf   :  { %9951 = vst [vmem:[#allocation46_spill] sm:$0xff] %v8577_v39  ;;  %v2630_v35 = vpop.xlane.xlu0 %2629  ;;  %v2988_v57 = vsel %vm2486_vm2, %v8577_v39, 0.0  ;;  %v8584_v5 = vpop.eup %7389  ;;  %v2779_v25 = vmul.f32 1.442695, %v2697_v61 }
 0x3d0   :  { %7399 = vpow2.f32 %v2777_v21  ;;  %v2726_v29 = vsub.f32 %v8278_v55, %v2630_v35  ;;  %v8587_v46 = vpop.xlane.xlu1 %2644  ;;  %2989 = vadd.xlane.f32.xlu0 %v2988_v57  ;;  %2986 = vadd.xlane.f32.xlu1 %v2985_v26  ;;  %v2913_v63 = vsel %vm2486_vm2, %v8584_v5, 0.0 }
 0x3d1   :  { %7401 = vpow2.f32 %v2835_v19 }
 0x3d2   :  { %v8589_v48 = vpop.eup %7391  ;;  %v2837_v49 = vmul.f32 1.442695, %v2726_v29 }
 0x3d3   :  { %v2546_v9 = vpop.xlane.xlu0 %2545  ;;  %v2916_v44 = vsel %vm2486_vm2, %v8589_v48, 0.0  ;;  %v8595_v13 = vpop.eup %7393 }
 0x3d4   :  { %7403 = vpow2.f32 %v2837_v49  ;;  %v2698_v55 = vsub.f32 %v8294_v45, %v2546_v9  ;;  %v2561_v2 = vpop.xlane.xlu1 %2560  ;;  %2917 = vadd.xlane.f32.xlu0 %v2916_v44  ;;  %2914 = vadd.xlane.f32.xlu1 %v2913_v63  ;;  %v3003_v35 = vsel %vm2486_vm2, %v8595_v13, 0.0 }
 0x3d5   :  { %v2703_v22 = vsub.f32 %v8291_v4, %v2561_v2  ;;  %7405 = vpow2.f32 %v2779_v25 }
 0x3d6   :  { %v8599_v23 = vpop.eup %7395  ;;  %v2781_v53 = vmul.f32 1.442695, %v2698_v55 }
 0x3d7   :  { %v2791_v19 = vmul.f32 1.442695, %v2703_v22  ;;  %v8601_v21 = vpop.xlane.xlu0 %2647  ;;  %v3006_v61 = vsel %vm2486_vm2, %v8599_v23, 0.0  ;;  %v8607_v57 = vpop.eup %7397 }
 0x3d8   :  { %7407 = vpow2.f32 %v2781_v53  ;;  %v8609_v45 = vpop.xlane.xlu1 %2650  ;;  %3007 = vadd.xlane.f32.xlu0 %v3006_v61  ;;  %3004 = vadd.xlane.f32.xlu1 %v3003_v35  ;;  %v2919_v25 = vsel %vm2486_vm2, %v8607_v57, 0.0 }
 0x3d9   :  { %7409 = vpow2.f32 %v2791_v19 }
 0x3da   :  { %v8611_v4 = vpop.eup %7399 }
 0x3db   :  { %v2564_v26 = vpop.xlane.xlu0 %2563  ;;  %v2922_v29 = vsel %vm2486_vm2, %v8611_v4, 0.0  ;;  %v8617_v49 = vpop.eup %7401 }
 0x3dc   :  { %v2704_v9 = vsub.f32 %v8316_v43, %v2564_v26  ;;  %v2567_v44 = vpop.xlane.xlu1 %2566  ;;  %2923 = vadd.xlane.f32.xlu0 %v2922_v29  ;;  %2920 = vadd.xlane.f32.xlu1 %v2919_v25  ;;  %v3009_v61 = vsel %vm2486_vm2, %v8617_v49, 0.0 }
 0x3dd   :  { %v2705_v63 = vsub.f32 %v8313_v41, %v2567_v44  ;;  %v9952_v44 = vld [vmem:[#allocation27_spill] sm:$0xff] }
 0x3de   :  { %v8621_v55 = vpop.eup %7403  ;;  %v2793_v2 = vmul.f32 1.442695, %v2704_v9 }
 0x3df   :  { %v2795_v22 = vmul.f32 1.442695, %v2705_v63  ;;  %v8623_v53 = vpop.xlane.xlu0 %2653  ;;  %v3012_v19 = vsel %vm2486_vm2, %v8621_v55, 0.0  ;;  %v8629_v35 = vpop.eup %7405 }
 0x3e0   :  { %7411 = vpow2.f32 %v2793_v2  ;;  %v8631_v43 = vpop.xlane.xlu1 %2668  ;;  %3013 = vadd.xlane.f32.xlu0 %v3012_v19  ;;  %3010 = vadd.xlane.f32.xlu1 %v3009_v61  ;;  %v2925_v25 = vsel %vm2486_vm2, %v8629_v35, 0.0  ;;  %v9953_v2 = vld [vmem:[#allocation26_spill] sm:$0xff] }
 0x3e1   :  { %7413 = vpow2.f32 %v2795_v22 }
 0x3e2   :  { %v8633_v41 = vpop.eup %7407 }
 0x3e3   :  { %v2570_v26 = vpop.xlane.xlu0 %2569  ;;  %v2928_v29 = vsel %vm2486_vm2, %v8633_v41, 0.0  ;;  %v8639_v9 = vpop.eup %7409 }
 0x3e4   :  { %v2706_v63 = vsub.f32 %v9952_v44, %v2570_v26  ;;  %v2585_v40 = vpop.xlane.xlu1 %2584  ;;  %2929 = vadd.xlane.f32.xlu0 %v2928_v29  ;;  %2926 = vadd.xlane.f32.xlu1 %v2925_v25  ;;  %v2943_v18 = vsel %vm2486_vm2, %v8639_v9, 0.0 }
 0x3e5   :  { %v2711_v19 = vsub.f32 %v9953_v2, %v2585_v40 }
 0x3e6   :  { %v2797_v61 = vmul.f32 1.442695, %v2706_v63 }
 0x3e7   :  { %v2807_v22 = vmul.f32 1.442695, %v2711_v19  ;;  %v8643_v27 = vpop.xlane.xlu0 %2671 }
 0x3e8   :  { %7415 = vpow2.f32 %v2797_v61  ;;  %v8647_v39 = vpop.xlane.xlu1 %2674  ;;  %2944 = vadd.xlane.f32.xlu1 %v2943_v18 }
 0x3e9   :  { %7417 = vpow2.f32 %v2807_v22 }
 0x3ea   :  { %v8649_v10 = vpop.eup %7411 }
 0x3eb   :  { %v8651_v26 = vpop.eup %7413  ;;  %v2588_v29 = vpop.xlane.xlu0 %2587  ;;  %v2946_v40 = vsel %vm2486_vm2, %v8649_v10, 0.0 }
 0x3ec   :  { %9954 = vst [vmem:[#allocation27_spill] sm:$0xff] %v8651_v26  ;;  %v2712_v25 = vsub.f32 %v8354_v33, %v2588_v29  ;;  %v2591_v44 = vpop.xlane.xlu1 %2590  ;;  %2947 = vadd.xlane.f32.xlu0 %v2946_v40  ;;  %v2949_v63 = vsel %vm2486_vm2, %v8651_v26, 0.0 }
 0x3ed   :  { %v2713_v2 = vsub.f32 %v8351_v0, %v2591_v44  ;;  %2950 = vadd.xlane.f32.xlu1 %v2949_v63 }
 0x3ee   :  { %v2809_v18 = vmul.f32 1.442695, %v2712_v25 }
 0x3ef   :  { %v2811_v19 = vmul.f32 1.442695, %v2713_v2  ;;  %v8659_v61 = vpop.xlane.xlu0 %2677  ;;  %v9956_v2 = vld [vmem:[#allocation21_spill] sm:$0xff] }
 0x3f0   :  { %7419 = vpow2.f32 %v2809_v18  ;;  %v2609_v22 = vpop.xlane.xlu1 %2608  ;;  %v2731_v18 = vsub.f32 %v9956_v2, %v8587_v46  ;;  %v9959_v2 = vld [vmem:[#allocation23_spill] sm:$0xff] }
 0x3f1   :  { %7421 = vpow2.f32 %v2811_v19  ;;  %v2719_v8 = vsub.f32 %v8363_v12, %v2609_v22 }
 0x3f2   :  { %v8662_v30 = vpop.eup %7415 }
 0x3f3   :  { %9955 = vst [vmem:[#allocation26_spill] sm:$0xff] %v8662_v30  ;;  %v8664_v33 = vpop.eup %7417  ;;  %v2823_v29 = vmul.f32 1.442695, %v2719_v8  ;;  %v2594_v40 = vpop.xlane.xlu0 %2593  ;;  %v2952_v26 = vsel %vm2486_vm2, %v8662_v30, 0.0 }
 0x3f4   :  { %v2714_v0 = vsub.f32 %v8377_v50, %v2594_v40  ;;  %v2615_v25 = vpop.xlane.xlu1 %2614  ;;  %2953 = vadd.xlane.f32.xlu0 %v2952_v26  ;;  %v2967_v44 = vsel %vm2486_vm2, %v8664_v33, 0.0 }
 0x3f5   :  { %7423 = vpow2.f32 %v2823_v29  ;;  %v2721_v63 = vsub.f32 %v8374_v1, %v2615_v25  ;;  %2968 = vadd.xlane.f32.xlu1 %v2967_v44  ;;  %v2847_v1 = vmul.f32 1.442695, %v2731_v18  ;;  %v2733_v18 = vsub.f32 %v9959_v2, %v8609_v45 }
 0x3f6   :  { %v2813_v12 = vmul.f32 1.442695, %v2714_v0 }
 0x3f7   :  { %v2827_v8 = vmul.f32 1.442695, %v2721_v63  ;;  %v2612_v19 = vpop.xlane.xlu0 %2611 }
 0x3f8   :  { %7425 = vpow2.f32 %v2813_v12  ;;  %v2720_v22 = vsub.f32 %v8389_v42, %v2612_v19  ;;  %v2633_v30 = vpop.xlane.xlu1 %2632 }
 0x3f9   :  { %7427 = vpow2.f32 %v2827_v8  ;;  %v2727_v50 = vsub.f32 %v8386_v59, %v2633_v30 }
 0x3fa   :  { %v8676_v26 = vpop.eup %7419  ;;  %v2825_v40 = vmul.f32 1.442695, %v2720_v22 }
 0x3fb   :  { %v8678_v29 = vpop.eup %7421  ;;  %v2839_v25 = vmul.f32 1.442695, %v2727_v50  ;;  %v2618_v0 = vpop.xlane.xlu0 %2617  ;;  %v2970_v46 = vsel %vm2486_vm2, %v8676_v26, 0.0 }
 0x3fc   :  { %9957 = vst [vmem:[#allocation21_spill] sm:$0xff] %v8678_v29  ;;  %7429 = vpow2.f32 %v2825_v40  ;;  %v2722_v44 = vsub.f32 %v8394_v17, %v2618_v0  ;;  %v2639_v63 = vpop.xlane.xlu1 %2638  ;;  %2971 = vadd.xlane.f32.xlu0 %v2970_v46  ;;  %v2973_v42 = vsel %vm2486_vm2, %v8678_v29, 0.0 }
 0x3fd   :  { %7431 = vpow2.f32 %v2839_v25  ;;  %v2729_v59 = vsub.f32 %v8398_v38, %v2639_v63  ;;  %2974 = vadd.xlane.f32.xlu1 %v2973_v42  ;;  %v2851_v38 = vmul.f32 1.442695, %v2733_v18 }
 0x3fe   :  { %v2829_v30 = vmul.f32 1.442695, %v2722_v44  ;;  %7433 = vpow2.f32 %v2847_v1 }
 0x3ff   :  { %v8686_v12 = vpop.eup %7423  ;;  %v2843_v8 = vmul.f32 1.442695, %v2729_v59  ;;  %v2636_v19 = vpop.xlane.xlu0 %2635 }
 0x400   :  { %9958 = vst [vmem:[#allocation47_spill] sm:$0xff] %v8686_v12  ;;  %7435 = vpow2.f32 %v2829_v30  ;;  %v2991_v17 = vsel %vm2486_vm2, %v8686_v12, 0.0  ;;  %v2657_v63 = vpop.xlane.xlu1 %2656 }
 0x401   :  { %2992 = vadd.xlane.f32.xlu1 %v2991_v17  ;;  %7437 = vpow2.f32 %v2843_v8 }
 0x402   :  { %v8692_v22 = vpop.eup %7425  ;;  %7439 = vpow2.f32 %v2851_v38 }
 0x403   :  { %9960 = vst [vmem:[#allocation23_spill] sm:$0xff] %v8692_v22  ;;  %v8694_v50 = vpop.eup %7427  ;;  %v2642_v40 = vpop.xlane.xlu0 %2641  ;;  %v2976_v1 = vsel %vm2486_vm2, %v8692_v22, 0.0 }
 0x404   :  { %9961 = vst [vmem:[#allocation48_spill] sm:$0xff] %v8694_v50  ;;  %2977 = vadd.xlane.f32.xlu0 %v2976_v1  ;;  %v2997_v45 = vsel %vm2486_vm2, %v8694_v50, 0.0  ;;  %v2663_v38 = vpop.xlane.xlu1 %2662  ;;  %v2730_v12 = vsub.f32 %v8418_v34, %v2642_v40 }
 0x405   :  { %2998 = vadd.xlane.f32.xlu1 %v2997_v45 }
 0x406   :  { %v8700_v25 = vpop.eup %7429  ;;  %v2845_v29 = vmul.f32 1.442695, %v2730_v12 }
 0x407   :  { %9962 = vst [vmem:[#allocation49_spill] sm:$0xff] %v8700_v25  ;;  %v8702_v0 = vpop.eup %7431  ;;  %v8704_v46 = vpop.xlane.xlu0 %2659  ;;  %v2994_v44 = vsel %vm2486_vm2, %v8700_v25, 0.0 }
 0x408   :  { %9963 = vst [vmem:[#allocation50_spill] sm:$0xff] %v8702_v0  ;;  %2995 = vadd.xlane.f32.xlu0 %v2994_v44  ;;  %v3015_v42 = vsel %vm2486_vm2, %v8702_v0, 0.0  ;;  %v8710_v59 = vpop.eup %7433 }
 0x409   :  { %9964 = vst [vmem:[#allocation51_spill] sm:$0xff] %v8710_v59  ;;  %3016 = vadd.xlane.f32.xlu1 %v3015_v42  ;;  %v3027_v18 = vsel %vm2486_vm2, %v8710_v59, 0.0 }
 0x40a   :  { %v8712_v30 = vpop.eup %7435 }
 0x40b   :  { %9965 = vst [vmem:[#allocation52_spill] sm:$0xff] %v8712_v30  ;;  %v3000_v2 = vsel %vm2486_vm2, %v8712_v30, 0.0  ;;  %v8718_v8 = vpop.eup %7437  ;;  %v8720_v17 = vpop.xlane.xlu0 %2665 }
 0x40c   :  { %3001 = vadd.xlane.f32.xlu0 %v3000_v2  ;;  %9966 = vst [vmem:[#allocation53_spill] sm:$0xff] %v8718_v8  ;;  %v3021_v1 = vsel %vm2486_vm2, %v8718_v8, 0.0  ;;  %v8724_v45 = vpop.eup %7439 }
 0x40d   :  { %3028 = vadd.xlane.f32.xlu1 %v3027_v18  ;;  %9967 = vst [vmem:[#allocation54_spill] sm:$0xff] %v8724_v45  ;;  %v3033_v2 = vsel %vm2486_vm2, %v8724_v45, 0.0 }
 0x411   :  { %v2876_v44 = vpop.xlane.xlu0 %2875  ;;  %3022 = vadd.xlane.f32.xlu1 %v3021_v1 }
 0x412   :  { %7441 = vrcp.f32 %v2876_v44  ;;  %v2873_v42 = vpop.xlane.xlu1 %2872  ;;  %v9970_v44 = vld [vmem:[#allocation12_spill] sm:$0xff] }
 0x413   :  { %7443 = vrcp.f32 %v2873_v42  ;;  %v9971_v42 = vmov 0.0|0.0  }
 0x415   :  { %3034 = vadd.xlane.f32.xlu1 %v3033_v2  ;;  %v9972_v2 = vld [vmem:[#allocation13_spill] sm:$0xff] }
 0x41c   :  { %v7442_v0 = vpop.eup %7441 }
 0x41d   :  { %v7444_v59 = vpop.eup %7443  ;;  %v3066_v50 = vmul.f32 %v7442_v0, %v8442_v24  ;;  %v9973_v24 = vld [vmem:[#allocation36_spill] sm:$0xff] }
 0x41e   :  { %v3064_v18 = vmul.f32 %v7444_v59, %v8444_v28  ;;  %v2728_v28 = vsub.f32 %v9973_v24, %v2636_v19  ;;  %v9975_v19 = vld [vmem:[#allocation24_spill] sm:$0xff] }
 0x41f   :  { %v2734_v24 = vsub.f32 %v9975_v19, %v8623_v53 }
 0x420   :  { %v7130_v1 = vpack.c.bf16 %v3066_v50, %v3064_v18  ;;  %v2841_v0 = vmul.f32 1.442695, %v2728_v28  ;;  %v9974_v50 = vld [vmem:[#allocation22_spill] sm:$0xff]  ;;  %v9976_v28 = vld [vmem:[#allocation25_spill] sm:$0xff] }
 0x421   :  { %v2732_v18 = vsub.f32 %v9974_v50, %v8601_v21  ;;  %v2739_v22 = vsub.f32 %v9976_v28, %v8631_v43  ;;  %v2853_v50 = vmul.f32 1.442695, %v2734_v24 }
 0x422   :  { %3794 = vrot.lane.b32.xlu0 %v9970_v44, %s7793_s2  ;;  %7132 = vmatpush3.bf16.xpose.msk.msra.mxu1 %vm8732_vm4, %v7130_v1  ;;  %7445 = vpow2.f32 %v2841_v0 }
 0x423   :  { %7133 = vmatprep.subr.bf16.mxu1 %v9971_v42  ;;  %v2849_v1 = vmul.f32 1.442695, %v2732_v18  ;;  %v2863_v34 = vmul.f32 1.442695, %v2739_v22 }
 0x426   :  { %3880 = vrot.lane.b32.xlu1 %v9972_v2, %s7793_s2  ;;  %v2735_v2 = vsub.f32 %v8413_v54, %v2657_v63  ;;  %v9977_v54 = vld [vmem:[#allocation39_spill] sm:$0xff] }
 0x427   :  { %v2737_v63 = vsub.f32 %v9977_v54, %v2663_v38 }
 0x428   :  { %v2855_v21 = vmul.f32 1.442695, %v2735_v2 }
 0x429   :  { %v2859_v22 = vmul.f32 1.442695, %v2737_v63 }
 0x42c   :  { %v8756_v18 = vpop.eup %7445 }
 0x42d   :  { %v8744_v59 = vpop.xlane.xlu0 %2935 }
 0x42e   :  { %v8746_v45 = vpop.xlane.xlu1 %2932 }
 0x431   :  { %v2882_v44 = vpop.xlane.xlu0 %2881 }
 0x432   :  { %7447 = vrcp.f32 %v2882_v44  ;;  %v2879_v30 = vpop.xlane.xlu1 %2878 }
 0x433   :  { %7449 = vrcp.f32 %v2879_v30 }
 0x434   :  { %7451 = vpow2.f32 %v2849_v1 }
 0x435   :  { %v2888_v25 = vpop.xlane.xlu0 %2887 }
 0x436   :  { %7453 = vrcp.f32 %v2888_v25  ;;  %v9978_v25 = vld [vmem:[#allocation29_spill] sm:$0xff] }
 0x437   :  { %v2741_v1 = vsub.f32 %v9978_v25, %v8647_v39  ;;  %v9979_v25 = vld [vmem:[#allocation31_spill] sm:$0xff] }
 0x439   :  { %v2885_v0 = vpop.xlane.xlu1 %2884  ;;  %v2867_v39 = vmul.f32 1.442695, %v2741_v1 }
 0x43a   :  { %7455 = vrcp.f32 %v2885_v0 }
 0x43b   :  { %7457 = vpow2.f32 %v2845_v29  ;;  %v3018_v29 = vsel %vm2486_vm2, %v8756_v18, 0.0 }
 0x43c   :  { %v7448_v40 = vpop.eup %7447  ;;  %7459 = vpow2.f32 %v2855_v21 }
 0x43d   :  { %v7450_v30 = vpop.eup %7449  ;;  %v3070_v53 = vmul.f32 %v7448_v40, %v8469_v60  ;;  %v8760_v44 = vpop.xlane.xlu0 %2941  ;;  %7461 = vpow2.f32 %v2853_v50 }
 0x43e   :  { %v8762_v43 = vpop.xlane.xlu1 %2938  ;;  %v3068_v12 = vmul.f32 %v7450_v30, %v8472_v47  ;;  %7463 = vpow2.f32 %v2863_v34  ;;  %v8769_v38 = vpop.eup %7451 }
 0x43f   :  { %v3030_v28 = vsel %vm2486_vm2, %v8769_v38, 0.0 }
 0x440   :  { %v7134_v2 = vpack.c.bf16 %v3070_v53, %v3068_v12  ;;  %v7454_v24 = vpop.eup %7453 }
 0x441   :  { %3019 = vadd.xlane.f32.xlu0 %v3018_v29  ;;  %v2894_v60 = vpop.xlane.xlu0 %2893  ;;  %v3074_v0 = vmul.f32 %v7454_v24, %v8479_v3 }
 0x442   :  { %v2891_v19 = vpop.xlane.xlu1 %2890  ;;  %7465 = vrcp.f32 %v2894_v60  ;;  %7136 = vmatpush3.bf16.xpose.msk.msra.mxu1 %vm8732_vm4, %v7134_v2 }
 0x443   :  { %7467 = vrcp.f32 %v2891_v19  ;;  %7145 = vmatprep.subr.bf16.mxu1 %v9971_v42 }
 0x444   :  { %v7456_v47 = vpop.eup %7455  ;;  %7469 = vpow2.f32 %v2859_v22  ;;  %v9980_v22 = vmov 0.0  }
 0x445   :  { %v8776_v21 = vpop.eup %7457  ;;  %v3072_v50 = vmul.f32 %v7456_v47, %v8485_v52  ;;  %3031 = vadd.xlane.f32.xlu0 %v3030_v28  ;;  %v8780_v34 = vpop.xlane.xlu0 %2959  ;;  %7471 = vpow2.f32 %v2867_v39 }
 0x446   :  { %v8782_v40 = vpop.xlane.xlu1 %2956  ;;  %v8784_v54 = vpop.eup %7459  ;;  %v3024_v53 = vsel %vm2486_vm2, %v8776_v21, 0.0 }
 0x447   :  { %v7138_v63 = vpack.c.bf16 %v3074_v0, %v3072_v50  ;;  %v8786_v30 = vpop.eup %7461  ;;  %v3039_v1 = vsel %vm2486_vm2, %v8784_v54, 0.0 }
 0x448   :  { %v8790_v12 = vpop.eup %7463  ;;  %v3036_v2 = vsel %vm2486_vm2, %v8786_v30, 0.0 }
 0x449   :  { %3025 = vadd.xlane.f32.xlu0 %v3024_v53  ;;  %v2900_v3 = vpop.xlane.xlu0 %2899  ;;  %6870 = vmatmul.mubr.msk.f32.vlgmr.msra.gmra.mrb[40].mxu1 %vm2486_vm2, %v9979_v25  ;;  %v3051_v39 = vsel %vm2486_vm2, %v8790_v12, 0.0 }
 0x44a   :  { %v2897_v52 = vpop.xlane.xlu1 %2896  ;;  %7473 = vrcp.f32 %v2900_v3  ;;  %7140 = vmatpush3.bf16.xpose.msk.msra.mxu0 %vm8732_vm4, %v7138_v63  ;;  %3040 = vadd.xlane.f32.xlu1 %v3039_v1 }
 0x44b   :  { %7475 = vrcp.f32 %v2897_v52  ;;  %7141 = vmatprep.subr.bf16.mxu0 %v9971_v42  ;;  %6891 = vmatprep.mubr.msk.f32.mxu1 %vm7795_vm3, %v9980_v22 }
 0x44c   :  { %v7466_v29 = vpop.eup %7465 }
 0x44d   :  { %v7468_v60 = vpop.eup %7467  ;;  %v3078_v19 = vmul.f32 %v7466_v29, %v8503_v36  ;;  %3037 = vadd.xlane.f32.xlu0 %v3036_v2  ;;  %v8804_v24 = vpop.xlane.xlu0 %2965 }
 0x44e   :  { %v8806_v47 = vpop.xlane.xlu1 %2962  ;;  %v8810_v28 = vpop.eup %7469  ;;  %v3076_v0 = vmul.f32 %v7468_v60, %v8500_v7  ;;  %3052 = vadd.xlane.f32.xlu1 %v3051_v39  ;;  %v9981_v39 = vld [vmem:[#allocation33_spill] sm:$0xff] }
 0x44f   :  { %v3045_v3 = vsel %vm2486_vm2, %v8810_v28, 0.0  ;;  %v8815_v36 = vpop.eup %7471 }
 0x450   :  { %v7142_v50 = vpack.c.bf16 %v3078_v19, %v3076_v0  ;;  %v3057_v2 = vsel %vm2486_vm2, %v8815_v36, 0.0 }
 0x451   :  { %v2906_v63 = vpop.xlane.xlu0 %2905 }
 0x452   :  { %v2903_v53 = vpop.xlane.xlu1 %2902  ;;  %7477 = vrcp.f32 %v2906_v63  ;;  %7144 = vmatpush3.bf16.xpose.msk.msra.mxu0 %vm8732_vm4, %v7142_v50  ;;  %3046 = vadd.xlane.f32.xlu1 %v3045_v3 }
 0x453   :  { %7479 = vrcp.f32 %v2903_v53  ;;  %7153 = vmatprep.subr.bf16.mxu0 %v9971_v42 }
 0x454   :  { %v7474_v25 = vpop.eup %7473 }
 0x455   :  { %v7476_v52 = vpop.eup %7475  ;;  %v3082_v7 = vmul.f32 %v7474_v25, %v8523_v31  ;;  %v8821_v1 = vpop.xlane.xlu0 %2983 }
 0x456   :  { %v8823_v29 = vpop.xlane.xlu1 %2980  ;;  %v3080_v60 = vmul.f32 %v7476_v52, %v8520_v20  ;;  %3058 = vadd.xlane.f32.xlu1 %v3057_v2 }
 0x458   :  { %v7146_v19 = vpack.c.bf16 %v3082_v7, %v3080_v60  ;;  %v9982_v60 = vld [vmem:[#allocation14_spill] sm:$0xff] }
 0x459   :  { %6881 = vmatmul.mubr.msk.f32.vlgmr.msra.gmra.mrb[40].mxu0 %vm2486_vm2, %v9981_v39  ;;  %v2912_v0 = vpop.xlane.xlu0 %2911 }
 0x45a   :  { %v2909_v50 = vpop.xlane.xlu1 %2908  ;;  %7481 = vrcp.f32 %v2912_v0  ;;  %7148 = vmatpush3.bf16.xpose.msk.msra.mxu1 %vm8732_vm4, %v7146_v19  ;;  %6902 = vmatprep.mubr.msk.f32.mxu0 %vm7795_vm3, %v9980_v22 }
 0x45b   :  { %7483 = vrcp.f32 %v2909_v50  ;;  %7149 = vmatprep.subr.bf16.mxu1 %v9971_v42 }
 0x45c   :  { %v7478_v31 = vpop.eup %7477 }
 0x45d   :  { %v7480_v63 = vpop.eup %7479  ;;  %v3086_v20 = vmul.f32 %v7478_v31, %v8543_v37  ;;  %v8836_v53 = vpop.xlane.xlu0 %2989  ;;  %v9983_v31 = vld [vmem:[#allocation15_spill] sm:$0xff] }
 0x45e   :  { %v8838_v3 = vpop.xlane.xlu1 %2986  ;;  %v3084_v25 = vmul.f32 %v7480_v63, %v8540_v15 }
 0x460   :  { %v7150_v52 = vpack.c.bf16 %v3086_v20, %v3084_v25  ;;  %v9984_v20 = vld [vmem:[#allocation32_spill] sm:$0xff] }
 0x461   :  { %v2918_v7 = vpop.xlane.xlu0 %2917 }
 0x462   :  { %v2915_v2 = vpop.xlane.xlu1 %2914  ;;  %7485 = vrcp.f32 %v2918_v7  ;;  %7152 = vmatpush3.bf16.xpose.msk.msra.mxu1 %vm8732_vm4, %v7150_v52  ;;  %v9986_v52 = vld [vmem:[#allocation40_spill] sm:$0xff] }
 0x463   :  { %7487 = vrcp.f32 %v2915_v2  ;;  %3966 = vrot.lane.b32.xlu0 %v9982_v60, %s7793_s2  ;;  %7161 = vmatprep.subr.bf16.mxu1 %v9971_v42  ;;  %v2736_v7 = vsub.f32 %v9986_v52, %v8704_v46  ;;  %v9988_v46 = vld [vmem:[#allocation28_spill] sm:$0xff]  ;;  %v9990_v52 = vld [vmem:[#allocation41_spill] sm:$0xff] }
 0x464   :  { %v7482_v37 = vpop.eup %7481  ;;  %7489 = vrcp.f32 %v8744_v59 }
 0x465   :  { %v7484_v19 = vpop.eup %7483  ;;  %7491 = vrcp.f32 %v8746_v45  ;;  %v3090_v15 = vmul.f32 %v7482_v37, %v8563_v32  ;;  %v3008_v39 = vpop.xlane.xlu0 %3007 }
 0x466   :  { %v3005_v0 = vpop.xlane.xlu1 %3004  ;;  %v3088_v50 = vmul.f32 %v7484_v19, %v8560_v16  ;;  %7493 = vrcp.f32 %v3008_v39  ;;  %v9985_v16 = vld [vmem:[#allocation17_spill] sm:$0xff] }
 0x467   :  { %7495 = vrcp.f32 %v3005_v0  ;;  %4052 = vrot.lane.b32.xlu1 %v9983_v31, %s7793_s2  ;;  %v9987_v0 = vld [vmem:[#allocation18_spill] sm:$0xff] }
 0x468   :  { %v7154_v63 = vpack.c.bf16 %v3090_v15, %v3088_v50 }
 0x469   :  { %6892 = vmatmul.mubr.msk.f32.vlgmr.msra.gmra.mrb[42].mxu1 %vm2486_vm2, %v9984_v20  ;;  %v2924_v25 = vpop.xlane.xlu0 %2923 }
 0x46a   :  { %v2921_v59 = vpop.xlane.xlu1 %2920  ;;  %7497 = vrcp.f32 %v2924_v25  ;;  %7156 = vmatpush3.bf16.xpose.msk.msra.mxu0 %vm8732_vm4, %v7154_v63  ;;  %6913 = vmatprep.mubr.msk.f32.mxu1 %vm7795_vm3, %v9980_v22  ;;  %v2740_v63 = vsub.f32 %v9988_v46, %v8643_v27 }
 0x46b   :  { %7499 = vrcp.f32 %v2921_v59  ;;  %4224 = vrot.lane.b32.xlu1 %v9985_v16, %s7793_s2  ;;  %7157 = vmatprep.subr.bf16.mxu0 %v9971_v42  ;;  %v9989_v59 = vld [vmem:[#allocation20_spill] sm:$0xff] }
 0x46c   :  { %v7486_v32 = vpop.eup %7485  ;;  %7501 = vrcp.f32 %v8760_v44 }
 0x46d   :  { %v7488_v45 = vpop.eup %7487  ;;  %7503 = vrcp.f32 %v8762_v43  ;;  %v3094_v2 = vmul.f32 %v7486_v32, %v8589_v48  ;;  %v3014_v60 = vpop.xlane.xlu0 %3013  ;;  %v2857_v43 = vmul.f32 1.442695, %v2736_v7  ;;  %v2738_v7 = vsub.f32 %v9990_v52, %v8720_v17 }
 0x46e   :  { %v3011_v37 = vpop.xlane.xlu1 %3010  ;;  %v7490_v19 = vpop.eup %7489  ;;  %v3092_v15 = vmul.f32 %v7488_v45, %v8584_v5  ;;  %7505 = vrcp.f32 %v3014_v60  ;;  %v2865_v45 = vmul.f32 1.442695, %v2740_v63 }
 0x46f   :  { %v7492_v39 = vpop.eup %7491  ;;  %7507 = vrcp.f32 %v3011_v37  ;;  %4310 = vrot.lane.b32.xlu1 %v9987_v0, %s7793_s2  ;;  %v3106_v16 = vmul.f32 %v7490_v19, %v8457_v56 }
 0x470   :  { %v7494_v44 = vpop.eup %7493  ;;  %v7158_v50 = vpack.c.bf16 %v3094_v2, %v3092_v15 }
 0x471   :  { %v7496_v31 = vpop.eup %7495  ;;  %v8872_v48 = vmul.f32 %v7494_v44, %v8599_v23  ;;  %v2930_v20 = vpop.xlane.xlu0 %2929  ;;  %v3104_v23 = vmul.f32 %v7492_v39, %v8460_v51  ;;  %v9991_v44 = vld [vmem:[#allocation30_spill] sm:$0xff] }
 0x472   :  { %v2927_v25 = vpop.xlane.xlu1 %2926  ;;  %v8875_v5 = vmul.f32 %v7496_v31, %v8595_v13  ;;  %7509 = vrcp.f32 %v2930_v20  ;;  %7160 = vmatpush3.bf16.xpose.msk.msra.mxu0 %vm8732_vm4, %v7158_v50  ;;  %v2742_v17 = vsub.f32 %v9991_v44, %v8659_v61  ;;  %v2861_v50 = vmul.f32 1.442695, %v2738_v7  ;;  %v9992_v31 = vld [vmem:[#allocation35_spill] sm:$0xff] }
 0x473   :  { %7511 = vrcp.f32 %v2927_v25  ;;  %4482 = vrot.lane.b32.xlu1 %v9989_v59, %s7793_s2  ;;  %7169 = vmatprep.subr.bf16.mxu0 %v9971_v42  ;;  %v7170_v39 = vpack.c.bf16 %v3106_v16, %v3104_v23 }
 0x474   :  { %v7498_v27 = vpop.eup %7497  ;;  %v7218_v32 = vpack.c.bf16 %v8872_v48, %v8875_v5  ;;  %7513 = vpow2.f32 %v2857_v43  ;;  %v2869_v63 = vmul.f32 1.442695, %v2742_v17  ;;  %v10013_v48 = vld [vmem:[#allocation54_spill] sm:$0xff] }
 0x475   :  { %v7500_v13 = vpop.eup %7499  ;;  %v3098_v2 = vmul.f32 %v7498_v27, %v8611_v4  ;;  %7515 = vrcp.f32 %v8780_v34 }
 0x476   :  { %v2945_v60 = vpop.xlane.xlu1 %2944  ;;  %v7502_v37 = vpop.eup %7501  ;;  %v3096_v15 = vmul.f32 %v7500_v13, %v8607_v57  ;;  %7517 = vrcp.f32 %v8782_v40 }
 0x477   :  { %v7504_v56 = vpop.eup %7503  ;;  %7519 = vrcp.f32 %v2945_v60  ;;  %v3110_v61 = vmul.f32 %v7502_v37, %v8493_v11 }
 0x478   :  { %v7506_v51 = vpop.eup %7505  ;;  %v7162_v19 = vpack.c.bf16 %v3098_v2, %v3096_v15  ;;  %7521 = vpow2.f32 %v2865_v45  ;;  %v3108_v40 = vmul.f32 %v7504_v56, %v8490_v14 }
 0x479   :  { %v7508_v0 = vpop.eup %7507  ;;  %v8895_v4 = vmul.f32 %v7506_v51, %v8621_v55  ;;  %6903 = vmatmul.mubr.msk.f32.vlgmr.msra.gmra.mrb[42].mxu0 %vm2486_vm2, %v9992_v31  ;;  %v2948_v57 = vpop.xlane.xlu0 %2947  ;;  %v9995_v31 = vld [vmem:[#allocation42_spill] sm:$0xff] }
 0x47a   :  { %v8900_v34 = vmul.f32 %v7508_v0, %v8617_v49  ;;  %7523 = vrcp.f32 %v2948_v57  ;;  %7164 = vmatpush3.bf16.xpose.msk.msra.mxu1 %vm8732_vm4, %v7162_v19  ;;  %7172 = vmatpush3.bf16.xpose.msk.msra.mxu0 %vm8732_vm4, %v7170_v39  ;;  %v2951_v20 = vpop.xlane.xlu1 %2950  ;;  %v7174_v27 = vpack.c.bf16 %v3110_v61, %v3108_v40  ;;  %v9993_v19 = vld [vmem:[#allocation34_spill] sm:$0xff] }
 0x47b   :  { %7165 = vmatprep.subr.bf16.mxu1 %v9971_v42  ;;  %7173 = vmatprep.subr.bf16.mxu0 %v9971_v42  ;;  %7525 = vpow2.f32 %v2861_v50  ;;  %v9997_v40 = vld [vmem:[#allocation26_spill] sm:$0xff] }
 0x47c   :  { %v7510_v55 = vpop.eup %7509  ;;  %6924 = vmatprep.mubr.msk.f32.mxu0 %vm7795_vm3, %v9980_v22  ;;  %v7222_v49 = vpack.c.bf16 %v8895_v4, %v8900_v34  ;;  %7527 = vrcp.f32 %v8804_v24  ;;  %v10014_v4 = vld [vmem:[#allocation53_spill] sm:$0xff] }
 0x47d   :  { %v7512_v46 = vpop.eup %7511  ;;  %v3102_v43 = vmul.f32 %v7510_v55, %v8633_v41  ;;  %7529 = vrcp.f32 %v8806_v47  ;;  %v9996_v55 = vld [vmem:[#allocation27_spill] sm:$0xff] }
 0x47e   :  { %v3100_v25 = vmul.f32 %v7512_v46, %v8629_v35  ;;  %v8917_v59 = vpop.eup %7513  ;;  %7531 = vrcp.f32 %v2951_v20 }
 0x47f   :  { %v7516_v14 = vpop.eup %7515  ;;  %7533 = vpow2.f32 %v2869_v63  ;;  %v3042_v35 = vsel %vm2486_vm2, %v8917_v59, 0.0 }
 0x480   :  { %v7166_v11 = vpack.c.bf16 %v3102_v43, %v3100_v25  ;;  %v7518_v16 = vpop.eup %7517  ;;  %v3122_v47 = vmul.f32 %v7516_v14, %v8513_v6 }
 0x481   :  { %v2954_v23 = vpop.xlane.xlu0 %2953  ;;  %v7520_v13 = vpop.eup %7519  ;;  %v3120_v45 = vmul.f32 %v7518_v16, %v8510_v62  ;;  %v9994_v62 = vld [vmem:[#allocation38_spill] sm:$0xff] }
 0x482   :  { %7535 = vrcp.f32 %v2954_v23  ;;  %7168 = vmatpush3.bf16.xpose.msk.msra.mxu1 %vm8732_vm4, %v7166_v11  ;;  %7176 = vmatpush3.bf16.xpose.msk.msra.mxu0 %vm8732_vm4, %v7174_v27  ;;  %v8926_v41 = vpop.eup %7521  ;;  %v3112_v52 = vmul.f32 %v7520_v13, %v8639_v9  ;;  %v2969_v2 = vpop.xlane.xlu1 %2968 }
 0x483   :  { %3043 = vadd.xlane.f32.xlu0 %v3042_v35  ;;  %7177 = vmatprep.subr.bf16.mxu1 %v9971_v42  ;;  %v3054_v60 = vsel %vm2486_vm2, %v8926_v41, 0.0  ;;  %7537 = vrcp.f32 %v2969_v2  ;;  %v7186_v51 = vpack.c.bf16 %v3122_v47, %v3120_v45  ;;  %v9998_v47 = vld [vmem:[#allocation44_spill] sm:$0xff] }
 0x484   :  { %v7524_v24 = vpop.eup %7523  ;;  %7185 = vmatprep.subr.bf16.mxu0 %v9971_v42 }
 0x485   :  { %v3114_v7 = vmul.f32 %v7524_v24, %v8649_v10  ;;  %v8936_v37 = vpop.eup %7525 }
 0x486   :  { %v7528_v56 = vpop.eup %7527  ;;  %v3048_v39 = vsel %vm2486_vm2, %v8936_v37, 0.0 }
 0x487   :  { %3055 = vadd.xlane.f32.xlu0 %v3054_v60  ;;  %v7178_v15 = vpack.c.bf16 %v3114_v7, %v3112_v52  ;;  %v7530_v6 = vpop.eup %7529  ;;  %v3126_v50 = vmul.f32 %v7528_v56, %v8533_v58  ;;  %v10000_v7 = vld [vmem:[#allocation37_spill] sm:$0xff] }
 0x488   :  { %v7532_v10 = vpop.eup %7531  ;;  %v3124_v57 = vmul.f32 %v7530_v6, %v9995_v31  ;;  %v10004_v31 = vld [vmem:[#allocation45_spill] sm:$0xff] }
 0x489   :  { %6914 = vmatmul.mubr.msk.f32.vlgmr.msra.gmra.mrb[44].mxu1 %vm2486_vm2, %v9993_v19  ;;  %6925 = vmatmul.mubr.msk.f32.vlgmr.msra.gmra.mrb[44].mxu0 %vm2486_vm2, %v9994_v62  ;;  %v2972_v9 = vpop.xlane.xlu0 %2971  ;;  %v8948_v44 = vpop.eup %7533  ;;  %v3116_v61 = vmul.f32 %v7532_v10, %v9996_v55 }
 0x48a   :  { %7539 = vrcp.f32 %v2972_v9  ;;  %7180 = vmatpush3.bf16.xpose.msk.msra.mxu1 %vm8732_vm4, %v7178_v15  ;;  %7188 = vmatpush3.bf16.xpose.msk.msra.mxu0 %vm8732_vm4, %v7186_v51  ;;  %v2975_v0 = vpop.xlane.xlu1 %2974  ;;  %v10001_v15 = vld [vmem:[#allocation21_spill] sm:$0xff]  ;;  %v10002_v51 = vld [vmem:[#allocation23_spill] sm:$0xff] }
 0x48b   :  { %7541 = vrcp.f32 %v8821_v1  ;;  %3049 = vadd.xlane.f32.xlu0 %v3048_v39  ;;  %7181 = vmatprep.subr.bf16.mxu1 %v9971_v42  ;;  %v3060_v1 = vsel %vm2486_vm2, %v8948_v44, 0.0 }
 0x48c   :  { %v7536_v17 = vpop.eup %7535  ;;  %7543 = vrcp.f32 %v8823_v29  ;;  %7189 = vmatprep.subr.bf16.mxu0 %v9971_v42  ;;  %6935 = vmatprep.mubr.msk.f32.mxu1 %vm7795_vm3, %v9980_v22  ;;  %v7190_v29 = vpack.c.bf16 %v3126_v50, %v3124_v57 }
 0x48d   :  { %v3118_v46 = vmul.f32 %v7536_v17, %v9997_v40  ;;  %6946 = vmatprep.mubr.msk.f32.mxu0 %vm7795_vm3, %v9980_v22  ;;  %7545 = vrcp.f32 %v2975_v0  ;;  %v7538_v20 = vpop.eup %7537  ;;  %v10003_v17 = vld [vmem:[#allocation46_spill] sm:$0xff]  ;;  %v10005_v40 = vld [vmem:[#allocation49_spill] sm:$0xff] }
 0x48e   :  { %v2993_v58 = vpop.xlane.xlu1 %2992  ;;  %v3128_v27 = vmul.f32 %v7538_v20, %v8664_v33 }
 0x48f   :  { %3061 = vadd.xlane.f32.xlu0 %v3060_v1  ;;  %v7182_v63 = vpack.c.bf16 %v3118_v46, %v3116_v61  ;;  %v10006_v1 = vld [vmem:[#allocation16_spill] sm:$0xff] }
 0x491   :  { %v2978_v43 = vpop.xlane.xlu0 %2977 }
 0x492   :  { %7547 = vrcp.f32 %v2978_v43  ;;  %7184 = vmatpush3.bf16.xpose.msk.msra.mxu1 %vm8732_vm4, %v7182_v63  ;;  %7192 = vmatpush3.bf16.xpose.msk.msra.mxu0 %vm8732_vm4, %v7190_v29  ;;  %v2999_v25 = vpop.xlane.xlu1 %2998  ;;  %v10007_v63 = vld [vmem:[#allocation47_spill] sm:$0xff] }
 0x493   :  { %7549 = vrcp.f32 %v8836_v53  ;;  %7193 = vmatprep.subr.bf16.mxu1 %v9971_v42  ;;  %7201 = vmatprep.subr.bf16.mxu0 %v9971_v42  ;;  %v9999_v53 = vld [vmem:[#allocation43_spill] sm:$0xff] }
 0x494   :  { %v7540_v14 = vpop.eup %7539  ;;  %7551 = vrcp.f32 %v8838_v3 }
 0x495   :  { %v7542_v11 = vpop.eup %7541  ;;  %v3130_v16 = vmul.f32 %v7540_v14, %v8676_v26  ;;  %v2996_v23 = vpop.xlane.xlu0 %2995  ;;  %v10008_v14 = vld [vmem:[#allocation19_spill] sm:$0xff] }
 0x496   :  { %v7544_v13 = vpop.eup %7543  ;;  %v3017_v35 = vpop.xlane.xlu1 %3016  ;;  %7553 = vrcp.f32 %v2996_v23  ;;  %v3138_v45 = vmul.f32 %v7542_v11, %v9998_v47  ;;  %v10010_v23 = vld [vmem:[#allocation48_spill] sm:$0xff] }
 0x497   :  { %v7194_v24 = vpack.c.bf16 %v3130_v16, %v3128_v27  ;;  %v3136_v52 = vmul.f32 %v7544_v13, %v9999_v53  ;;  %7555 = vrcp.f32 %v2993_v58  ;;  %v7546_v3 = vpop.eup %7545  ;;  %v10009_v27 = vld [vmem:[#allocation52_spill] sm:$0xff] }
 0x498   :  { %v3132_v56 = vmul.f32 %v7546_v3, %v10001_v15 }
 0x499   :  { %6936 = vmatmul.mubr.msk.f32.vlgmr.msra.gmra.mrb[46].mxu1 %vm2486_vm2, %v10000_v7  ;;  %v3002_v2 = vpop.xlane.xlu0 %3001  ;;  %v7202_v62 = vpack.c.bf16 %v3138_v45, %v3136_v52 }
 0x49a   :  { %7196 = vmatpush3.bf16.xpose.msk.msra.mxu1 %vm8732_vm4, %v7194_v24  ;;  %v3029_v33 = vpop.xlane.xlu1 %3028  ;;  %6957 = vmatprep.mubr.msk.f32.mxu1 %vm7795_vm3, %v9980_v22  ;;  %7557 = vrcp.f32 %v3002_v2 }
 0x49b   :  { %7197 = vmatprep.subr.bf16.mxu1 %v9971_v42  ;;  %7559 = vrcp.f32 %v2999_v25 }
 0x49c   :  { %v7548_v26 = vpop.eup %7547  ;;  %7561 = vrcp.f32 %v3029_v33 }
 0x49d   :  { %v7550_v60 = vpop.eup %7549  ;;  %v3134_v6 = vmul.f32 %v7548_v26, %v10002_v51  ;;  %v3795_v19 = vpop.permute.xlu0 %3794 }
 0x49e   :  { %v7552_v9 = vpop.eup %7551  ;;  %6947 = vmatmul.mubr.msk.f32.vlgmr.msra.gmra.mrb[46].mxu0 %vm2486_vm2, %v3795_v19  ;;  %v3023_v10 = vpop.xlane.xlu1 %3022  ;;  %v3142_v50 = vmul.f32 %v7550_v60, %v10003_v17  ;;  %v10011_v60 = vld [vmem:[#allocation51_spill] sm:$0xff] }
 0x49f   :  { %7204 = vmatpush3.bf16.xpose.msk.msra.mxu0 %vm8732_vm4, %v7202_v62  ;;  %v7198_v39 = vpack.c.bf16 %v3134_v6, %v3132_v56  ;;  %6968 = vmatprep.mubr.msk.f32.mxu0 %vm7795_vm3, %v9980_v22  ;;  %v3140_v57 = vmul.f32 %v7552_v9, %v10004_v31 }
 0x4a0   :  { %7205 = vmatprep.subr.bf16.mxu0 %v9971_v42  ;;  %v7554_v0 = vpop.eup %7553 }
 0x4a1   :  { %v7556_v61 = vpop.eup %7555  ;;  %v3146_v46 = vmul.f32 %v7554_v0, %v10005_v40  ;;  %v7206_v58 = vpack.c.bf16 %v3142_v50, %v3140_v57 }
 0x4a2   :  { %7200 = vmatpush3.bf16.xpose.msk.msra.mxu1 %vm8732_vm4, %v7198_v39  ;;  %v3035_v55 = vpop.xlane.xlu1 %3034  ;;  %v3144_v29 = vmul.f32 %v7556_v61, %v10007_v63  ;;  %v10012_v39 = vld [vmem:[#allocation50_spill] sm:$0xff] }
 0x4a3   :  { %7209 = vmatprep.subr.bf16.mxu1 %v9971_v42 }
 0x4a4   :  { %v7210_v20 = vpack.c.bf16 %v3146_v46, %v3144_v29  ;;  %v7558_v25 = vpop.eup %7557 }
 0x4a5   :  { %4138 = vrot.lane.b32.xlu0 %v10006_v1, %s7793_s2  ;;  %v7560_v11 = vpop.eup %7559  ;;  %v3150_v16 = vmul.f32 %v7558_v25, %v10009_v27  ;;  %v9062_v1 = vld [vmem:[%s9864_s3] sm:$0xff] }
 0x4a6   :  { %v3881_v43 = vpop.permute.xlu1 %3880  ;;  %v3148_v13 = vmul.f32 %v7560_v11, %v10010_v23  ;;  %v7562_v2 = vpop.eup %7561 }
 0x4a7   :  { %7208 = vmatpush3.bf16.xpose.msk.msra.mxu0 %vm8732_vm4, %v7206_v58  ;;  %v9019_v15 = vmul.f32 %v7562_v2, %v10011_v60 }
 0x4a8   :  { %7217 = vmatprep.subr.bf16.mxu0 %v9971_v42  ;;  %v7214_v24 = vpack.c.bf16 %v3150_v16, %v3148_v13 }
 0x4a9   :  { %4396 = vrot.lane.b32.xlu0 %v10008_v14, %s7793_s2  ;;  %6958 = vmatmul.mubr.msk.f32.vlgmr.msra.gmra.mrb[48].mxu1 %vm2486_vm2, %v3881_v43 }
 0x4aa   :  { %7212 = vmatpush3.bf16.xpose.msk.msra.mxu1 %vm8732_vm4, %v7210_v20  ;;  %6979 = vmatprep.mubr.msk.f32.mxu1 %vm7795_vm3, %v9980_v22 }
 0x4ab   :  { %7213 = vmatprep.subr.bf16.mxu1 %v9971_v42 }
 0x4b2   :  { %7216 = vmatpush3.bf16.xpose.msk.msra.mxu1 %vm8732_vm4, %v7214_v24 }
 0x4b3   :  { %7225 = vmatprep.subr.bf16.mxu1 %v9971_v42 }
 0x4ce   :  { %v3020_v47 = vpop.xlane.xlu0 %3019 }
 0x4d2   :  { %v3032_v45 = vpop.xlane.xlu0 %3031 }
 0x4d3   :  { %7563 = vrcp.f32 %v3032_v45 }
 0x4d4   :  { %7565 = vrcp.f32 %v3020_v47 }
 0x4d5   :  { %7567 = vrcp.f32 %v3017_v35 }
 0x4d6   :  { %v3026_v53 = vpop.xlane.xlu0 %3025  ;;  %7569 = vrcp.f32 %v3035_v55 }
 0x4d7   :  { %v3041_v52 = vpop.xlane.xlu1 %3040 }
 0x4da   :  { %v3038_v7 = vpop.xlane.xlu0 %3037 }
 0x4db   :  { %7571 = vrcp.f32 %v3038_v7  ;;  %v9016_v3 = vpop.xlane.xlu1 %3052 }
 0x4dc   :  { %7573 = vrcp.f32 %v3026_v53 }
 0x4dd   :  { %v7564_v26 = vpop.eup %7563  ;;  %7575 = vrcp.f32 %v3023_v10 }
 0x4de   :  { %v9022_v56 = vmul.f32 %v7564_v26, %v8769_v38  ;;  %v3967_v33 = vpop.permute.xlu0 %3966  ;;  %v7566_v6 = vpop.eup %7565  ;;  %7577 = vrcp.f32 %v3041_v52 }
 0x4df   :  { %6969 = vmatmul.mubr.msk.f32.vlgmr.msra.gmra.mrb[48].mxu0 %vm2486_vm2, %v3967_v33  ;;  %v3047_v51 = vpop.xlane.xlu1 %3046  ;;  %v7568_v35 = vpop.eup %7567  ;;  %v3162_v62 = vmul.f32 %v7566_v6, %v8756_v18 }
 0x4e0   :  { %7220 = vmatpush3.bf16.xpose.msk.msra.mxu0 %vm8732_vm4, %v7218_v32  ;;  %6990 = vmatprep.mubr.msk.f32.mxu0 %vm7795_vm3, %v9980_v22  ;;  %v7234_v38 = vpack.c.bf16 %v9022_v56, %v9019_v15  ;;  %v7570_v19 = vpop.eup %7569  ;;  %v3160_v0 = vmul.f32 %v7568_v35, %v10012_v39 }
 0x4e1   :  { %7221 = vmatprep.subr.bf16.mxu0 %v9971_v42  ;;  %v3172_v5 = vmul.f32 %v7570_v19, %v10013_v48 }
 0x4e2   :  { %v7226_v50 = vpack.c.bf16 %v3162_v62, %v3160_v0 }
 0x4e3   :  { %v3059_v9 = vpop.xlane.xlu1 %3058 }
 0x4e5   :  { %v7572_v10 = vpop.eup %7571 }
 0x4e6   :  { %v3174_v32 = vmul.f32 %v7572_v10, %v8786_v30  ;;  %v7574_v31 = vpop.eup %7573 }
 0x4e7   :  { %v4053_v17 = vpop.permute.xlu1 %4052  ;;  %v7576_v57 = vpop.eup %7575  ;;  %v3166_v30 = vmul.f32 %v7574_v31, %v8776_v21 }
 0x4e8   :  { %7224 = vmatpush3.bf16.xpose.msk.msra.mxu0 %vm8732_vm4, %v7222_v49  ;;  %6980 = vmatmul.mubr.msk.f32.vlgmr.msra.gmra.mrb[50].mxu1 %vm2486_vm2, %v4053_v17  ;;  %v7238_v18 = vpack.c.bf16 %v3174_v32, %v3172_v5  ;;  %v3164_v34 = vmul.f32 %v7576_v57, %v10014_v4  ;;  %v7578_v46 = vpop.eup %7577 }
 0x4e9   :  { %7228 = vmatpush3.bf16.xpose.msk.msra.mxu1 %vm8732_vm4, %v7226_v50  ;;  %7001 = vmatprep.mubr.msk.f32.mxu1 %vm7795_vm3, %v9980_v22  ;;  %v3176_v63 = vmul.f32 %v7578_v46, %v8784_v54 }
 0x4ea   :  { %7229 = vmatprep.subr.bf16.mxu1 %v9971_v42  ;;  %7233 = vmatprep.subr.bf16.mxu0 %v9971_v42  ;;  %v7230_v55 = vpack.c.bf16 %v3166_v30, %v3164_v34 }
 0x4eb   :  { %v4225_v49 = vpop.permute.xlu1 %4224 }
 0x4ef   :  { %v4311_v26 = vpop.permute.xlu1 %4310 }
 0x4f1   :  { %7232 = vmatpush3.bf16.xpose.msk.msra.mxu1 %vm8732_vm4, %v7230_v55 }
 0x4f2   :  { %7241 = vmatprep.subr.bf16.mxu1 %v9971_v42 }
 0x4f8   :  { %7002 = vmatmul.mubr.msk.f32.vlgmr.msra.gmra.mrb[52].mxu1 %vm2486_vm2, %v4225_v49 }
 0x4f9   :  { %7023 = vmatprep.mubr.msk.f32.mxu1 %vm7795_vm3, %v9980_v22 }
 0x510   :  { %v3044_v61 = vpop.xlane.xlu0 %3043 }
 0x511   :  { %7579 = vrcp.f32 %v3044_v61 }
 0x512   :  { %7581 = vrcp.f32 %v3047_v51 }
 0x514   :  { %v3056_v40 = vpop.xlane.xlu0 %3055 }
 0x518   :  { %v3050_v21 = vpop.xlane.xlu0 %3049 }
 0x519   :  { %7583 = vrcp.f32 %v3050_v21 }
 0x51a   :  { %7585 = vrcp.f32 %v3056_v40 }
 0x51b   :  { %v7580_v58 = vpop.eup %7579  ;;  %7587 = vrcp.f32 %v9016_v3 }
 0x51c   :  { %v3178_v29 = vmul.f32 %v7580_v58, %v8917_v59  ;;  %v3062_v43 = vpop.xlane.xlu0 %3061  ;;  %v3274_v20 = vpop.f32.mrb[40].mxu1 }
 0x51d   :  { %v9067_v25 = vadd.f32 %v3274_v20, %v9062_v1  ;;  %v6871_v14 = vpop.f32.mrb[41].mxu1  ;;  %v7582_v23 = vpop.eup %7581  ;;  %7589 = vrcp.f32 %v3062_v43 }
 0x51e   :  { %v7242_v11 = vpack.c.bf16 %v3178_v29, %v3176_v63  ;;  %v3180_v59 = vmul.f32 %v7582_v23, %v8810_v28  ;;  %7591 = vrcp.f32 %v3059_v9 }
 0x51f   :  { %v4568_v27 = vsel %vm2486_vm2, %v9067_v25, 0.0 }
 0x520   :  { %v4139_v16 = vpop.permute.xlu0 %4138  ;;  %7244 = vmatpush3.bf16.xpose.msk.msra.mxu1 %vm8732_vm4, %v7242_v11  ;;  %4569 = vadd.xlane.f32.xlu0 %v4568_v27 }
 0x521   :  { %6991 = vmatmul.mubr.msk.f32.vlgmr.msra.gmra.mrb[50].mxu0 %vm2486_vm2, %v4139_v16  ;;  %7245 = vmatprep.subr.bf16.mxu1 %v9971_v42 }
 0x522   :  { %7236 = vmatpush3.bf16.xpose.msk.msra.mxu0 %vm8732_vm4, %v7234_v38  ;;  %7012 = vmatprep.mubr.msk.f32.mxu0 %vm7795_vm3, %v9980_v22 }
 0x523   :  { %v7584_v54 = vpop.eup %7583  ;;  %7237 = vmatprep.subr.bf16.mxu0 %v9971_v42 }
 0x524   :  { %v3182_v13 = vmul.f32 %v7584_v54, %v8936_v37  ;;  %v7586_v47 = vpop.eup %7585  ;;  %v4397_v2 = vpop.permute.xlu0 %4396 }
 0x525   :  { %v7588_v45 = vpop.eup %7587  ;;  %v3186_v53 = vmul.f32 %v7586_v47, %v8926_v41 }
 0x526   :  { %v7246_v24 = vpack.c.bf16 %v3182_v13, %v3180_v59  ;;  %v3184_v7 = vmul.f32 %v7588_v45, %v8790_v12 }
 0x527   :  { %v7590_v15 = vpop.eup %7589 }
 0x528   :  { %7248 = vmatpush3.bf16.xpose.msk.msra.mxu1 %vm8732_vm4, %v7246_v24  ;;  %v7250_v60 = vpack.c.bf16 %v3186_v53, %v3184_v7  ;;  %v7592_v41 = vpop.eup %7591  ;;  %v3190_v12 = vmul.f32 %v7590_v15, %v8948_v44 }
 0x529   :  { %v3188_v56 = vmul.f32 %v7592_v41, %v8815_v36 }
 0x52a   :  { %7240 = vmatpush3.bf16.xpose.msk.msra.mxu0 %vm8732_vm4, %v7238_v18 }
 0x52b   :  { %7249 = vmatprep.subr.bf16.mxu0 %v9971_v42  ;;  %v7254_v33 = vpack.c.bf16 %v3190_v12, %v3188_v56 }
 0x52c   :  { %v3360_v52 = vpop.f32.mrb[40].mxu0 }
 0x52d   :  { %v9090_v28 = vadd.f32 %v3360_v52, %v9062_v1  ;;  %v6882_v37 = vpop.f32.mrb[41].mxu0 }
 0x52f   :  { %7024 = vmatmul.mubr.msk.f32.vlgmr.msra.gmra.mrb[54].mxu1 %vm2486_vm2, %v4397_v2  ;;  %v4571_v3 = vsel %vm2486_vm2, %v9090_v28, 0.0 }
 0x530   :  { %4572 = vadd.xlane.f32.xlu1 %v4571_v3 }
 0x531   :  { %7013 = vmatmul.mubr.msk.f32.vlgmr.msra.gmra.mrb[52].mxu0 %vm2486_vm2, %v4311_v26 }
 0x532   :  { %7252 = vmatpush3.bf16.xpose.msk.msra.mxu0 %vm8732_vm4, %v7250_v60  ;;  %7034 = vmatprep.mubr.msk.f32.mxu0 %vm7795_vm3, %v9980_v22  ;;  %v4483_v22 = vpop.permute.xlu1 %4482 }
 0x533   :  { %7253 = vmatprep.subr.bf16.mxu0 %v9971_v42 }
 0x53a   :  { %7256 = vmatpush3.bf16.xpose.msk.msra.mxu0 %vm8732_vm4, %v7254_v33 }
 0x53c   :  { %v3446_v51 = vpop.f32.mrb[42].mxu1 }
 0x53d   :  { %v9107_v6 = vadd.f32 %v3446_v51, %v9062_v1  ;;  %v6893_v38 = vpop.f32.mrb[43].mxu1 }
 0x53f   :  { %v4574_v35 = vsel %vm2486_vm2, %v9107_v6, 0.0 }
 0x540   :  { %4575 = vadd.xlane.f32.xlu0 %v4574_v35 }
 0x541   :  { %7035 = vmatmul.mubr.msk.f32.vlgmr.msra.gmra.mrb[54].mxu0 %vm2486_vm2, %v4483_v22 }
 0x54c   :  { %v3532_v42 = vpop.f32.mrb[42].mxu0 }
 0x54d   :  { %v9113_v44 = vadd.f32 %v3532_v42, %v9062_v1  ;;  %v6904_v36 = vpop.f32.mrb[43].mxu0 }
 0x54f   :  { %v4577_v8 = vsel %vm2486_vm2, %v9113_v44, 0.0 }
 0x550   :  { %4578 = vadd.xlane.f32.xlu0 %v4577_v8 }
 0x55c   :  { %v3618_v19 = vpop.f32.mrb[44].mxu1  ;;  %v3704_v62 = vpop.f32.mrb[44].mxu0 }
 0x55d   :  { %v9118_v9 = vadd.f32 %v3618_v19, %v9062_v1  ;;  %v9121_v10 = vadd.f32 %v3704_v62, %v9062_v1  ;;  %v6915_v39 = vpop.f32.mrb[45].mxu1  ;;  %v6926_v0 = vpop.f32.mrb[45].mxu0 }
 0x55f   :  { %v4583_v48 = vsel %vm2486_vm2, %v9121_v10, 0.0  ;;  %v4580_v5 = vsel %vm2486_vm2, %v9118_v9, 0.0 }
 0x560   :  { %4584 = vadd.xlane.f32.xlu0 %v4583_v48  ;;  %4581 = vadd.xlane.f32.xlu1 %v4580_v5 }
 0x56c   :  { %v3790_v32 = vpop.f32.mrb[46].mxu1 }
 0x56d   :  { %v3791_v17 = vadd.f32 %v3790_v32, %v9062_v1  ;;  %v6937_v50 = vpop.f32.mrb[47].mxu1 }
 0x56f   :  { %v4586_v31 = vsel %vm2486_vm2, %v3791_v17, 0.0 }
 0x570   :  { %4587 = vadd.xlane.f32.xlu1 %v4586_v31 }
 0x571   :  { %v3876_v18 = vpop.f32.mrb[46].mxu0 }
 0x572   :  { %v9130_v57 = vadd.f32 %v3876_v18, %v9062_v1  ;;  %v6948_v30 = vpop.f32.mrb[47].mxu0 }
 0x574   :  { %v4589_v4 = vsel %vm2486_vm2, %v9130_v57, 0.0 }
 0x575   :  { %4590 = vadd.xlane.f32.xlu0 %v4589_v4 }
 0x57c   :  { %v3962_v34 = vpop.f32.mrb[48].mxu1 }
 0x57d   :  { %v3963_v55 = vadd.f32 %v3962_v34, %v9062_v1  ;;  %v6959_v49 = vpop.f32.mrb[49].mxu1 }
 0x57f   :  { %v4592_v61 = vsel %vm2486_vm2, %v3963_v55, 0.0 }
 0x580   :  { %4593 = vadd.xlane.f32.xlu1 %v4592_v61 }
 0x5ad   :  { %v4570_v24 = vpop.xlane.xlu0 %4569 }
 0x5ae   :  { %v4617_v47 = vmul.f32 0.03125, %v4570_v24 }
 0x5b0   :  { %v9157_v52 = vsub.f32 %v9067_v25, %v4617_v47 }
 0x5b2   :  { %v4048_v40 = vpop.f32.mrb[48].mxu0  ;;  %v4649_v15 = vmul.f32 %v9157_v52, %v9157_v52 }
 0x5b3   :  { %v9137_v21 = vadd.f32 %v4048_v40, %v9062_v1  ;;  %v6970_v46 = vpop.f32.mrb[49].mxu0 }
 0x5b5   :  { %v4595_v58 = vsel %vm2486_vm2, %v9137_v21, 0.0 }
 0x5b6   :  { %4596 = vadd.xlane.f32.xlu0 %v4595_v58 }
 0x5bb   :  { %v4134_v63 = vpop.f32.mrb[50].mxu1 }
 0x5bc   :  { %v9142_v29 = vadd.f32 %v4134_v63, %v9062_v1  ;;  %v6981_v43 = vpop.f32.mrb[51].mxu1 }
 0x5bd   :  { %v4573_v45 = vpop.xlane.xlu1 %4572 }
 0x5be   :  { %v4598_v20 = vsel %vm2486_vm2, %v9142_v29, 0.0  ;;  %v4618_v0 = vmul.f32 0.03125, %v4573_v45 }
 0x5bf   :  { %4599 = vadd.xlane.f32.xlu1 %v4598_v20 }
 0x5cb   :  { %v4306_v14 = vpop.f32.mrb[52].mxu1 }
 0x5cc   :  { %v9147_v11 = vadd.f32 %v4306_v14, %v9062_v1  ;;  %v7003_v27 = vpop.f32.mrb[53].mxu1 }
 0x5cd   :  { %v4576_v53 = vpop.xlane.xlu0 %4575 }
 0x5ce   :  { %v4604_v16 = vsel %vm2486_vm2, %v9147_v11, 0.0  ;;  %v4619_v37 = vmul.f32 0.03125, %v4576_v53 }
 0x5cf   :  { %4605 = vadd.xlane.f32.xlu1 %v4604_v16 }
 0x5d0   :  { %v9165_v41 = vsub.f32 %v9107_v6, %v4619_v37  ;;  %v4665_v6 = vsel %vm2486_vm2, %v4649_v15, 0.0 }
 0x5d2   :  { %v4651_v42 = vmul.f32 %v9165_v41, %v9165_v41 }
 0x5d4   :  { %v4671_v19 = vsel %vm2486_vm2, %v4651_v42, 0.0 }
 0x5ed   :  { %v4582_v7 = vpop.xlane.xlu1 %4581 }
 0x5ee   :  { %v4621_v12 = vmul.f32 0.03125, %v4582_v7 }
 0x5f0   :  { %v9175_v35 = vsub.f32 %v9118_v9, %v4621_v12  ;;  %v4579_v9 = vpop.xlane.xlu0 %4578 }
 0x5f1   :  { %v4620_v50 = vmul.f32 0.03125, %v4579_v9 }
 0x5f2   :  { %v4653_v62 = vmul.f32 %v9175_v35, %v9175_v35 }
 0x5f3   :  { %v9200_v49 = vsub.f32 %v9113_v44, %v4620_v50 }
 0x5f4   :  { %v4220_v23 = vpop.f32.mrb[50].mxu0  ;;  %v4677_v5 = vsel %vm2486_vm2, %v4653_v62, 0.0  ;;  %v4585_v31 = vpop.xlane.xlu0 %4584 }
 0x5f5   :  { %v9152_v54 = vadd.f32 %v4220_v23, %v9062_v1  ;;  %v6992_v59 = vpop.f32.mrb[51].mxu0  ;;  %v4622_v61 = vmul.f32 0.03125, %v4585_v31  ;;  %v4652_v44 = vmul.f32 %v9200_v49, %v9200_v49 }
 0x5f7   :  { %v4601_v13 = vsel %vm2486_vm2, %v9152_v54, 0.0  ;;  %v9208_v58 = vsub.f32 %v9121_v10, %v4622_v61  ;;  %v4674_v14 = vsel %vm2486_vm2, %v4652_v44, 0.0 }
 0x5f8   :  { %4602 = vadd.xlane.f32.xlu0 %v4601_v13 }
 0x5f9   :  { %v4654_v27 = vmul.f32 %v9208_v58, %v9208_v58 }
 0x5fb   :  { %v4680_v16 = vsel %vm2486_vm2, %v4654_v27, 0.0 }
 0x5fd   :  { %v4588_v51 = vpop.xlane.xlu1 %4587 }
 0x5fe   :  { %v4623_v22 = vmul.f32 0.03125, %v4588_v51 }
 0x600   :  { %v9180_v36 = vsub.f32 %v3791_v17, %v4623_v22  ;;  %v9191_v17 = vsub.f32 %v9090_v28, %v4618_v0 }
 0x602   :  { %v4478_v2 = vpop.f32.mrb[54].mxu1  ;;  %v4655_v32 = vmul.f32 %v9180_v36, %v9180_v36  ;;  %v4650_v40 = vmul.f32 %v9191_v17, %v9191_v17  ;;  %v4591_v46 = vpop.xlane.xlu0 %4590 }
 0x603   :  { %v9160_v3 = vadd.f32 %v4478_v2, %v9062_v1  ;;  %v7025_v26 = vpop.f32.mrb[55].mxu1  ;;  %v4624_v63 = vmul.f32 0.03125, %v4591_v46 }
 0x604   :  { %v4392_v60 = vpop.f32.mrb[52].mxu0  ;;  %v4683_v34 = vsel %vm2486_vm2, %v4655_v32, 0.0  ;;  %v4668_v43 = vsel %vm2486_vm2, %v4650_v40, 0.0  ;;  %v9262_v40 = vld [vmem:[%s9865_s4] ss:$0 sm:$0xff] }
 0x605   :  { %v9168_v56 = vadd.f32 %v4392_v60, %v9062_v1  ;;  %v7014_v25 = vpop.f32.mrb[53].mxu0  ;;  %v4610_v33 = vsel %vm2486_vm2, %v9160_v3, 0.0  ;;  %v9214_v20 = vsub.f32 %v9130_v57, %v4624_v63 }
 0x606   :  { %4611 = vadd.xlane.f32.xlu1 %v4610_v33 }
 0x607   :  { %v4607_v38 = vsel %vm2486_vm2, %v9168_v56, 0.0  ;;  %v4656_v10 = vmul.f32 %v9214_v20, %v9214_v20 }
 0x608   :  { %4608 = vadd.xlane.f32.xlu0 %v4607_v38 }
 0x609   :  { %v4686_v23 = vsel %vm2486_vm2, %v4656_v10, 0.0 }
 0x60a   :  { %4666 = vadd.xlane.f32.xlu1 %v4665_v6 }
 0x60d   :  { %v4594_v8 = vpop.xlane.xlu1 %4593 }
 0x60e   :  { %v4625_v39 = vmul.f32 0.03125, %v4594_v8  ;;  %4672 = vadd.xlane.f32.xlu1 %v4671_v19 }
 0x610   :  { %v9185_v48 = vsub.f32 %v3963_v55, %v4625_v39 }
 0x612   :  { %4678 = vadd.xlane.f32.xlu1 %v4677_v5  ;;  %v4657_v55 = vmul.f32 %v9185_v48, %v9185_v48 }
 0x614   :  { %v4564_v18 = vpop.f32.mrb[54].mxu0 }
 0x615   :  { %v9194_v30 = vadd.f32 %v4564_v18, %v9062_v1  ;;  %v7036_v4 = vpop.f32.mrb[55].mxu0  ;;  %v4689_v1 = vsel %vm2486_vm2, %v4657_v55, 0.0 }
 0x616   :  { %4684 = vadd.xlane.f32.xlu1 %v4683_v34 }
 0x617   :  { %v4613_v28 = vsel %vm2486_vm2, %v9194_v30, 0.0 }
 0x618   :  { %4614 = vadd.xlane.f32.xlu0 %v4613_v28 }
 0x61a   :  { %4690 = vadd.xlane.f32.xlu1 %v4689_v1 }
 0x61c   :  { %4669 = vadd.xlane.f32.xlu0 %v4668_v43  ;;  %v9268_v43 = vld [vmem:[%s9866_s5] ss:$0 sm:$0xff] }
 0x620   :  { %4675 = vadd.xlane.f32.xlu0 %v4674_v14 }
 0x624   :  { %4681 = vadd.xlane.f32.xlu0 %v4680_v16 }
 0x628   :  { %4687 = vadd.xlane.f32.xlu0 %v4686_v23 }
 0x643   :  { %v4597_v59 = vpop.xlane.xlu0 %4596 }
 0x644   :  { %v4626_v13 = vmul.f32 0.03125, %v4597_v59 }
 0x646   :  { %v9224_v57 = vsub.f32 %v9137_v21, %v4626_v13 }
 0x648   :  { %v4658_v24 = vmul.f32 %v9224_v57, %v9224_v57 }
 0x64a   :  { %v4692_v47 = vsel %vm2486_vm2, %v4658_v24, 0.0 }
 0x64b   :  { %4693 = vadd.xlane.f32.xlu0 %v4692_v47 }
 0x64c   :  { %v4600_v45 = vpop.xlane.xlu1 %4599 }
 0x64d   :  { %v4627_v53 = vmul.f32 0.03125, %v4600_v45 }
 0x64f   :  { %v9230_v37 = vsub.f32 %v9142_v29, %v4627_v53 }
 0x651   :  { %v4659_v7 = vmul.f32 %v9230_v37, %v9230_v37 }
 0x653   :  { %v4695_v2 = vsel %vm2486_vm2, %v4659_v7, 0.0 }
 0x654   :  { %4696 = vadd.xlane.f32.xlu1 %v4695_v2 }
 0x65c   :  { %v4606_v26 = vpop.xlane.xlu1 %4605 }
 0x65d   :  { %v4629_v21 = vmul.f32 0.03125, %v4606_v26 }
 0x65f   :  { %v9236_v60 = vsub.f32 %v9147_v11, %v4629_v21 }
 0x661   :  { %v4661_v15 = vmul.f32 %v9236_v60, %v9236_v60 }
 0x663   :  { %v4701_v12 = vsel %vm2486_vm2, %v4661_v15, 0.0 }
 0x664   :  { %4702 = vadd.xlane.f32.xlu1 %v4701_v12 }
 0x685   :  { %v4603_v25 = vpop.xlane.xlu0 %4602 }
 0x686   :  { %v4628_v29 = vmul.f32 0.03125, %v4603_v25 }
 0x688   :  { %v9242_v33 = vsub.f32 %v9152_v54, %v4628_v29 }
 0x68a   :  { %v4660_v51 = vmul.f32 %v9242_v33, %v9242_v33 }
 0x68c   :  { %v4698_v38 = vsel %vm2486_vm2, %v4660_v51, 0.0 }
 0x68d   :  { %4699 = vadd.xlane.f32.xlu0 %v4698_v38 }
 0x693   :  { %v4612_v22 = vpop.xlane.xlu1 %4611 }
 0x694   :  { %v4631_v11 = vmul.f32 0.03125, %v4612_v22 }
 0x695   :  { %v4609_v6 = vpop.xlane.xlu0 %4608 }
 0x696   :  { %v9248_v42 = vsub.f32 %v9160_v3, %v4631_v11  ;;  %v4630_v8 = vmul.f32 0.03125, %v4609_v6 }
 0x697   :  { %v4667_v19 = vpop.xlane.xlu1 %4666 }
 0x698   :  { %v9251_v62 = vsub.f32 %v9168_v56, %v4630_v8  ;;  %v4713_v39 = vmul.f32 0.03125, %v4667_v19  ;;  %v4663_v54 = vmul.f32 %v9248_v42, %v9248_v42 }
 0x69a   :  { %v4729_v0 = vadd.f32 1e-05, %v4713_v39  ;;  %v4707_v9 = vsel %vm2486_vm2, %v4663_v54, 0.0  ;;  %v4662_v5 = vmul.f32 %v9251_v62, %v9251_v62 }
 0x69b   :  { %4708 = vadd.xlane.f32.xlu1 %v4707_v9  ;;  %v4673_v32 = vpop.xlane.xlu1 %4672 }
 0x69c   :  { %7593 = vrsqrt.f32 %v4729_v0  ;;  %v4715_v3 = vmul.f32 0.03125, %v4673_v32  ;;  %v4704_v50 = vsel %vm2486_vm2, %v4662_v5, 0.0 }
 0x69d   :  { %4705 = vadd.xlane.f32.xlu0 %v4704_v50 }
 0x69e   :  { %v4731_v31 = vadd.f32 1e-05, %v4715_v3 }
 0x69f   :  { %v4679_v56 = vpop.xlane.xlu1 %4678 }
 0x6a0   :  { %7595 = vrsqrt.f32 %v4731_v31  ;;  %v4717_v18 = vmul.f32 0.03125, %v4679_v56 }
 0x6a2   :  { %v4733_v4 = vadd.f32 1e-05, %v4717_v18 }
 0x6a3   :  { %v4685_v34 = vpop.xlane.xlu1 %4684 }
 0x6a4   :  { %7597 = vrsqrt.f32 %v4733_v4  ;;  %v4719_v55 = vmul.f32 0.03125, %v4685_v34 }
 0x6a5   :  { %v4615_v61 = vpop.xlane.xlu0 %4614 }
 0x6a6   :  { %v7594_v28 = vpop.eup %7593  ;;  %v4735_v46 = vadd.f32 1e-05, %v4719_v55  ;;  %v4632_v1 = vmul.f32 0.03125, %v4615_v61 }
 0x6a7   :  { %v4761_v63 = vmul.f32 %v7594_v28, %v9157_v52 }
 0x6a8   :  { %7599 = vrsqrt.f32 %v4735_v46  ;;  %v9271_v44 = vsub.f32 %v9194_v30, %v4632_v1 }
 0x6a9   :  { %v4784_v14 = vmul.f32 %v9262_v40, %v4761_v63  ;;  %v4670_v27 = vpop.xlane.xlu0 %4669 }
 0x6aa   :  { %v7596_v16 = vpop.eup %7595  ;;  %v4714_v10 = vmul.f32 0.03125, %v4670_v27  ;;  %v4664_v23 = vmul.f32 %v9271_v44, %v9271_v44 }
 0x6ab   :  { %v9277_v59 = vadd.f32 %v9268_v43, %v4784_v14  ;;  %v4763_v52 = vmul.f32 %v7596_v16, %v9165_v41 }
 0x6ac   :  { %v4730_v13 = vadd.f32 1e-05, %v4714_v10  ;;  %v4710_v24 = vsel %vm2486_vm2, %v4664_v23, 0.0 }
 0x6ad   :  { %v9282_v47 = vmul.f32 0.70710677, %v9277_v59  ;;  %v4786_v30 = vmul.f32 %v9262_v40, %v4763_v52  ;;  %4711 = vadd.xlane.f32.xlu0 %v4710_v24  ;;  %v4676_v45 = vpop.xlane.xlu0 %4675 }
 0x6ae   :  { %v7598_v53 = vpop.eup %7597  ;;  %7601 = vrsqrt.f32 %v4730_v13  ;;  %v4716_v7 = vmul.f32 0.03125, %v4676_v45 }
 0x6af   :  { %v9286_v2 = vadd.f32 %v9268_v43, %v4786_v30  ;;  %v4765_v26 = vmul.f32 %v7598_v53, %v9175_v35  ;;  %v9290_v41 = vand.u32 2147483647, %v9282_v47  ;;  %vm4855_vm6 = vcmp.ge.f32.partialorder %v9282_v47, 0.0 }
 0x6b0   :  { %v4732_v21 = vadd.f32 1e-05, %v4716_v7 }
 0x6b1   :  { %v9293_v15 = vmul.f32 0.70710677, %v9286_v2  ;;  %v4682_v12 = vpop.xlane.xlu0 %4681  ;;  %v4788_v29 = vmul.f32 %v9262_v40, %v4765_v26  ;;  %v4903_v22 = vmul.f32 0.3275911, %v9290_v41  ;;  %v5111_v7 = vsub.f32 0.0, %v9290_v41 }
 0x6b2   :  { %v7600_v25 = vpop.eup %7599  ;;  %7603 = vrsqrt.f32 %v4732_v21  ;;  %v4718_v51 = vmul.f32 0.03125, %v4682_v12 }
 0x6b3   :  { %v9297_v38 = vand.u32 2147483647, %v9293_v15  ;;  %v9301_v35 = vadd.f32 %v9268_v43, %v4788_v29  ;;  %v4767_v11 = vmul.f32 %v7600_v25, %v9180_v36  ;;  %v4919_v0 = vadd.f32 1.0, %v4903_v22 }
 0x6b4   :  { %v4734_v6 = vadd.f32 1e-05, %v4718_v51  ;;  %vm4857_vm5 = vcmp.ge.f32.partialorder %v9293_v15, 0.0 }
 0x6b5   :  { %v4905_v8 = vmul.f32 0.3275911, %v9297_v38  ;;  %v9306_v19 = vmul.f32 0.70710677, %v9301_v35  ;;  %v4790_v39 = vmul.f32 %v9262_v40, %v4767_v11  ;;  %v4688_v56 = vpop.xlane.xlu0 %4687  ;;  %v5113_v51 = vsub.f32 0.0, %v9297_v38 }
 0x6b6   :  { %7605 = vrsqrt.f32 %v4734_v6  ;;  %v4720_v28 = vmul.f32 0.03125, %v4688_v56 }
 0x6b7   :  { %v9310_v9 = vand.u32 2147483647, %v9306_v19  ;;  %v9313_v5 = vadd.f32 %v9268_v43, %v4790_v39  ;;  %v4921_v32 = vadd.f32 1.0, %v4905_v8  ;;  %7607 = vrcp.f32 %v4919_v0 }
 0x6b8   :  { %v7602_v54 = vpop.eup %7601  ;;  %v4736_v10 = vadd.f32 1e-05, %v4720_v28  ;;  %v5127_v8 = vmul.f32 %v5111_v7, %v9290_v41  ;;  %vm4859_vm10 = vcmp.ge.f32.partialorder %v9306_v19, 0.0 }
 0x6b9   :  { %v4762_v36 = vmul.f32 %v7602_v54, %v9191_v17  ;;  %v4907_v3 = vmul.f32 0.3275911, %v9310_v9  ;;  %v9318_v50 = vmul.f32 0.70710677, %v9313_v5  ;;  %7609 = vrcp.f32 %v4921_v32 }
 0x6ba   :  { %v5115_v0 = vsub.f32 0.0, %v9310_v9  ;;  %v5143_v41 = vmul.f32 1.442695, %v5127_v8 }
 0x6bb   :  { %v4785_v31 = vmul.f32 %v9262_v40, %v4762_v36  ;;  %v4923_v4 = vadd.f32 1.0, %v4907_v3  ;;  %v9322_v34 = vand.u32 2147483647, %v9318_v50  ;;  %vm4861_vm8 = vcmp.ge.f32.partialorder %v9318_v50, 0.0 }
 0x6bc   :  { %v7604_v18 = vpop.eup %7603 }
 0x6bd   :  { %v9325_v55 = vadd.f32 %v9268_v43, %v4785_v31  ;;  %7611 = vrcp.f32 %v4923_v4  ;;  %v4909_v17 = vmul.f32 0.3275911, %v9322_v34  ;;  %v4764_v61 = vmul.f32 %v7604_v18, %v9200_v49 }
 0x6be   :  { %v5129_v18 = vmul.f32 %v5113_v51, %v9297_v38 }
 0x6bf   :  { %v9330_v46 = vmul.f32 0.70710677, %v9325_v55  ;;  %v4925_v63 = vadd.f32 1.0, %v4909_v17  ;;  %v4787_v27 = vmul.f32 %v9262_v40, %v4764_v61 }
 0x6c0   :  { %v7606_v1 = vpop.eup %7605 }
 0x6c1   :  { %v4888_v14 = vand.u32 2147483647, %v9330_v46  ;;  %7613 = vrcp.f32 %v4925_v63  ;;  %v4766_v16 = vmul.f32 %v7606_v1, %v9208_v58  ;;  %v9336_v52 = vadd.f32 %v9268_v43, %v4787_v27  ;;  %v9339_v24 = vpop.eup %7607 }
 0x6c2   :  { %7615 = vrsqrt.f32 %v4736_v10  ;;  %v4967_v12 = vmul.f32 1.0614054, %v9339_v24  ;;  %v5117_v1 = vsub.f32 0.0, %v9322_v34  ;;  %vm4856_vm7 = vcmp.ge.f32.partialorder %v9330_v46, 0.0 }
 0x6c3   :  { %v4904_v23 = vmul.f32 0.3275911, %v4888_v14  ;;  %v4789_v49 = vmul.f32 %v9262_v40, %v4766_v16  ;;  %v9342_v30 = vmul.f32 0.70710677, %v9336_v52  ;;  %v9347_v53 = vpop.eup %7609  ;;  %v5112_v3 = vsub.f32 0.0, %v4888_v14 }
 0x6c4   :  { %v4969_v29 = vmul.f32 1.0614054, %v9347_v53  ;;  %v4983_v54 = vadd.f32 -1.4531521, %v4967_v12  ;;  %v5131_v16 = vmul.f32 %v5115_v0, %v9310_v9  ;;  %v5147_v12 = vmul.f32 1.442695, %v5129_v18 }
 0x6c5   :  { %v4920_v13 = vadd.f32 1.0, %v4904_v23  ;;  %v9345_v45 = vadd.f32 %v9268_v43, %v4789_v49  ;;  %v9353_v26 = vand.u32 2147483647, %v9342_v30  ;;  %v5128_v49 = vmul.f32 %v5112_v3, %v4888_v14 }
 0x6c6   :  { %v4985_v31 = vadd.f32 -1.4531521, %v4969_v29  ;;  %v4999_v61 = vmul.f32 %v9339_v24, %v4983_v54  ;;  %vm4858_vm9 = vcmp.ge.f32.partialorder %v9342_v30, 0.0 }
 0x6c7   :  { %v9349_v58 = vpop.eup %7611  ;;  %7617 = vrcp.f32 %v4920_v13  ;;  %v9356_v21 = vmul.f32 0.70710677, %v9345_v45  ;;  %v4906_v25 = vmul.f32 0.3275911, %v9353_v26  ;;  %v5145_v0 = vmul.f32 1.442695, %v5128_v49 }
 0x6c8   :  { %v4971_v11 = vmul.f32 1.0614054, %v9349_v58  ;;  %v5001_v63 = vmul.f32 %v9347_v53, %v4985_v31  ;;  %v5015_v13 = vadd.f32 1.4214138, %v4999_v61 }
 0x6c9   :  { %v9363_v22 = vand.u32 2147483647, %v9356_v21  ;;  %v4922_v39 = vadd.f32 1.0, %v4906_v25  ;;  %vm4860_vm11 = vcmp.ge.f32.partialorder %v9356_v21, 0.0 }
 0x6ca   :  { %v4987_v56 = vadd.f32 -1.4531521, %v4971_v11  ;;  %v5017_v7 = vadd.f32 1.4214138, %v5001_v63  ;;  %v5133_v11 = vmul.f32 %v5117_v1, %v9322_v34  ;;  %v5031_v9 = vmul.f32 %v9339_v24, %v5015_v13 }
 0x6cb   :  { %v9366_v6 = vpop.eup %7613  ;;  %v4908_v32 = vmul.f32 0.3275911, %v9363_v22  ;;  %7619 = vrcp.f32 %v4922_v39  ;;  %v5151_v39 = vmul.f32 1.442695, %v5131_v16  ;;  %v5116_v13 = vsub.f32 0.0, %v9363_v22 }
 0x6cc   :  { %v4973_v36 = vmul.f32 1.0614054, %v9366_v6  ;;  %v7616_v28 = vpop.eup %7615  ;;  %v5003_v27 = vmul.f32 %v9349_v58, %v4987_v56  ;;  %v5047_v3 = vadd.f32 -0.28449672, %v5031_v9 }
 0x6cd   :  { %v4924_v4 = vadd.f32 1.0, %v4908_v32  ;;  %v4768_v10 = vmul.f32 %v7616_v28, %v9214_v20  ;;  %v5033_v20 = vmul.f32 %v9347_v53, %v5017_v7  ;;  %v5114_v32 = vsub.f32 0.0, %v9353_v26 }
 0x6ce   :  { %v4989_v17 = vadd.f32 -1.4531521, %v4973_v36  ;;  %v5019_v51 = vadd.f32 1.4214138, %v5003_v27  ;;  %v5063_v1 = vmul.f32 %v9339_v24, %v5047_v3 }
 0x6cf   :  { %7621 = vrcp.f32 %v4924_v4  ;;  %v4791_v25 = vmul.f32 %v9262_v40, %v4768_v10  ;;  %v5049_v18 = vadd.f32 -0.28449672, %v5033_v20  ;;  %v5130_v63 = vmul.f32 %v5114_v32, %v9353_v26 }
 0x6d0   :  { %v5005_v23 = vmul.f32 %v9366_v6, %v4989_v17  ;;  %7623 = vpow2.f32 %v5143_v41  ;;  %v5035_v56 = vmul.f32 %v9349_v58, %v5019_v51  ;;  %v5155_v17 = vmul.f32 1.442695, %v5133_v11 }
 0x6d1   :  { %v9380_v38 = vpop.eup %7617  ;;  %v9388_v54 = vadd.f32 %v9268_v43, %v4791_v25  ;;  %7625 = vpow2.f32 %v5147_v12  ;;  %v5065_v49 = vmul.f32 %v9347_v53, %v5049_v18  ;;  %v5079_v51 = vadd.f32 0.2548296, %v5063_v1 }
 0x6d2   :  { %v4968_v29 = vmul.f32 1.0614054, %v9380_v38  ;;  %v5021_v8 = vadd.f32 1.4214138, %v5005_v23  ;;  %7627 = vpow2.f32 %v5151_v39  ;;  %v5051_v23 = vadd.f32 -0.28449672, %v5035_v56 }
 0x6d3   :  { %v9393_v31 = vmul.f32 0.70710677, %v9388_v54  ;;  %7629 = vpow2.f32 %v5145_v0  ;;  %v5149_v11 = vmul.f32 1.442695, %v5130_v63  ;;  %v5081_v0 = vadd.f32 0.2548296, %v5065_v49 }
 0x6d4   :  { %v4984_v14 = vadd.f32 -1.4531521, %v4968_v29  ;;  %v5037_v36 = vmul.f32 %v9366_v6, %v5021_v8  ;;  %7631 = vpow2.f32 %v5155_v17  ;;  %v5132_v32 = vmul.f32 %v5116_v13, %v9363_v22 }
 0x6d5   :  { %v9397_v4 = vpop.eup %7619  ;;  %v9400_v61 = vand.u32 2147483647, %v9393_v31  ;;  %v5095_v18 = vmul.f32 %v9339_v24, %v5079_v51  ;;  %v5097_v17 = vmul.f32 %v9347_v53, %v5081_v0  ;;  %v7797_v63 = vmov 1983009808  }
 0x6d6   :  { %v5000_v34 = vmul.f32 %v9380_v38, %v4984_v14  ;;  %v4970_v28 = vmul.f32 1.0614054, %v9397_v4  ;;  %v5053_v41 = vadd.f32 -0.28449672, %v5037_v36  ;;  %v5067_v14 = vmul.f32 %v9349_v58, %v5051_v23 }
 0x6d7   :  { %v4910_v10 = vmul.f32 0.3275911, %v9400_v61  ;;  %v5153_v49 = vmul.f32 1.442695, %v5132_v32  ;;  %v5118_v53 = vsub.f32 0.0, %v9400_v61  ;;  %v9915_v32 = vmov -1.0  }
 0x6d8   :  { %v5016_v27 = vadd.f32 1.4214138, %v5000_v34  ;;  %v4986_v12 = vadd.f32 -1.4531521, %v4970_v28  ;;  %v5069_v26 = vmul.f32 %v9366_v6, %v5053_v41  ;;  %v4871_v15 = vsel %vm4855_vm6, 1.0, %v9915_v32 }
 0x6d9   :  { %v9405_v16 = vpop.eup %7621  ;;  %v4926_v29 = vadd.f32 1.0, %v4910_v10  ;;  %v5083_v10 = vadd.f32 0.2548296, %v5067_v14  ;;  %vm4862_vm12 = vcmp.ge.f32.partialorder %v9393_v31, 0.0  ;;  %v4876_v21 = vsel %vm4860_vm11, 1.0, %v9915_v32 }
 0x6da   :  { %v4972_v7 = vmul.f32 1.0614054, %v9405_v16  ;;  %v5032_v25 = vmul.f32 %v9380_v38, %v5016_v27  ;;  %v5002_v9 = vmul.f32 %v9397_v4, %v4986_v12  ;;  %v7624_v39 = vpop.eup %7623  ;;  %v5085_v56 = vadd.f32 0.2548296, %v5069_v26 }
 0x6db   :  { %7633 = vrcp.f32 %v4926_v29  ;;  %v7626_v28 = vpop.eup %7625  ;;  %v9421_v27 = vunpack.c.l.s4 %v7797_v63  ;;  %v5175_v24 = vmul.f32 %v7624_v39, %v5095_v18  ;;  %v5099_v14 = vmul.f32 %v9349_v58, %v5083_v10 }
 0x6dc   :  { %v4988_v8 = vadd.f32 -1.4531521, %v4972_v7  ;;  %v5048_v20 = vadd.f32 -0.28449672, %v5032_v25  ;;  %v5018_v3 = vadd.f32 1.4214138, %v5002_v9  ;;  %7635 = vpow2.f32 %v5149_v11  ;;  %v7628_v23 = vpop.eup %7627 }
 0x6dd   :  { %v7630_v12 = vpop.eup %7629  ;;  %v5101_v29 = vmul.f32 %v9366_v6, %v5085_v56  ;;  %v5177_v26 = vmul.f32 %v7626_v28, %v5097_v17  ;;  %v5292_v9 = vlaneseq  ;;  %7637 = vpow2.f32 %v5153_v49 }
 0x6de   :  { %v5004_v36 = vmul.f32 %v9405_v16, %v4988_v8  ;;  %v5064_v34 = vmul.f32 %v9380_v38, %v5048_v20  ;;  %v5034_v1 = vmul.f32 %v9397_v4, %v5018_v3  ;;  %v5291_v8 = vunpack.c.0.s8 %v9421_v27  ;;  %v7632_v20 = vpop.eup %7631 }
 0x6df   :  { %v5193_v0 = vsub.f32 1.0, %v5177_v26  ;;  %v5191_v3 = vsub.f32 1.0, %v5175_v24  ;;  %v5134_v56 = vmul.f32 %v5118_v53, %v9400_v61  ;;  %v5181_v18 = vmul.f32 %v7632_v20, %v5101_v29 }
 0x6e0   :  { %v5020_v41 = vadd.f32 1.4214138, %v5004_v36  ;;  %v5080_v22 = vadd.f32 0.2548296, %v5064_v34  ;;  %v5050_v7 = vadd.f32 -0.28449672, %v5034_v1  ;;  %v5179_v63 = vmul.f32 %v7628_v23, %v5099_v14 }
 0x6e1   :  { %v5207_v49 = vmul.f32 %v5191_v3, %v4871_v15  ;;  %v5197_v24 = vsub.f32 1.0, %v5181_v18  ;;  %v4874_v26 = vsel %vm4858_vm9, 1.0, %v9915_v32  ;;  %v4875_v14 = vsel %vm4859_vm10, 1.0, %v9915_v32 }
 0x6e2   :  { %v5036_v13 = vmul.f32 %v9405_v16, %v5020_v41  ;;  %v5096_v25 = vmul.f32 %v9380_v38, %v5080_v22  ;;  %v5066_v11 = vmul.f32 %v9397_v4, %v5050_v7  ;;  %v4873_v38 = vsel %vm4857_vm5, 1.0, %v9915_v32 }
 0x6e3   :  { %v5209_v28 = vmul.f32 %v5193_v0, %v4873_v38  ;;  %v9441_v41 = vshrl.u32 %v5292_v9, 7  ;;  %v4872_v22 = vsel %vm4856_vm7, 1.0, %v9915_v32  ;;  %v5195_v29 = vsub.f32 1.0, %v5179_v63 }
 0x6e4   :  { %v5052_v51 = vadd.f32 -0.28449672, %v5036_v13  ;;  %v5176_v39 = vmul.f32 %v7630_v12, %v5096_v25  ;;  %v5082_v36 = vadd.f32 0.2548296, %v5066_v11  ;;  %v5157_v13 = vmul.f32 1.442695, %v5134_v56 }
 0x6e5   :  { %v9436_v34 = vpop.eup %7633  ;;  %v4825_v12 = vmul.f32 0.5, %v9286_v2  ;;  %v5225_v25 = vadd.f32 1.0, %v5209_v28  ;;  %v5223_v11 = vadd.f32 1.0, %v5207_v49  ;;  %v4823_v2 = vmul.f32 0.5, %v9277_v59 }
 0x6e6   :  { %v5068_v6 = vmul.f32 %v9405_v16, %v5052_v51  ;;  %v4974_v58 = vmul.f32 1.0614054, %v9436_v34  ;;  %v5192_v17 = vsub.f32 1.0, %v5176_v39  ;;  %v5098_v1 = vmul.f32 %v9397_v4, %v5082_v36  ;;  %v7636_v46 = vpop.eup %7635 }
 0x6e7   :  { %v4877_v4 = vsel %vm4861_vm8, 1.0, %v9915_v32  ;;  %7639 = vpow2.f32 %v5157_v13  ;;  %v5241_v50 = vmul.f32 %v5225_v25, %v4825_v12  ;;  %v7638_v0 = vpop.eup %7637  ;;  %v4826_v38 = vmul.f32 0.5, %v9336_v52 }
 0x6e8   :  { %v4990_v61 = vadd.f32 -1.4531521, %v4974_v58  ;;  %v5084_v10 = vadd.f32 0.2548296, %v5068_v6  ;;  %v5178_v7 = vmul.f32 %v7636_v46, %v5098_v1  ;;  %v5208_v47 = vmul.f32 %v5192_v17, %v4872_v22 }
 0x6e9   :  { %v5213_v20 = vmul.f32 %v5197_v24, %v4877_v4  ;;  %v5211_v6 = vmul.f32 %v5195_v29, %v4875_v14  ;;  %v4824_v3 = vmul.f32 0.5, %v9325_v55  ;;  %v5239_v18 = vmul.f32 %v5223_v11, %v4823_v2  ;;  %v5256_v29 = vld [vmem:[#allocation7 + $0x8] sm:$0xff] }
 0x6ea   :  { %v5006_v53 = vmul.f32 %v9436_v34, %v4990_v61  ;;  %v5194_v23 = vsub.f32 1.0, %v5178_v7  ;;  %v5100_v51 = vmul.f32 %v9405_v16, %v5084_v10  ;;  %v5224_v39 = vadd.f32 1.0, %v5208_v47  ;;  %v5260_v2 = vld [vmem:[#allocation7 + $0x28] sm:$0xff] }
 0x6eb   :  { %v5229_v59 = vadd.f32 1.0, %v5213_v20  ;;  %v5287_v15 = vcombine.low %v5239_v18, %v5241_v50  ;;  %v9467_v1 = vsub.s32 %v5291_v8, %v9441_v41  ;;  %v4829_v52 = vmul.f32 0.5, %v9313_v5  ;;  %v5258_v20 = vld [vmem:[#allocation7 + $0x18] sm:$0xff] }
 0x6ec   :  { %v5022_v30 = vadd.f32 1.4214138, %v5006_v53  ;;  %v5210_v9 = vmul.f32 %v5194_v23, %v4874_v26  ;;  %v5180_v56 = vmul.f32 %v7638_v0, %v5100_v51  ;;  %v5240_v28 = vmul.f32 %v5224_v39, %v4824_v3  ;;  %v5255_v23 = vld [vmem:[#allocation7] sm:$0xff]  ;;  %v4694_v3 = vpop.xlane.xlu0 %4693 }
 0x6ed   :  { %v5227_v63 = vadd.f32 1.0, %v5211_v6  ;;  %v4827_v61 = vmul.f32 0.5, %v9301_v35  ;;  %v9472_v10 = vmul.f32 %v5229_v59, %v4829_v52  ;;  %v5288_v49 = vcombine.high %v5239_v18, %v5241_v50  ;;  %v4691_v35 = vpop.xlane.xlu1 %4690  ;;  %v5259_v26 = vld [vmem:[#allocation7 + $0x20] sm:$0xff]  ;;  %v5262_v6 = vld [vmem:[#allocation7 + $0x38] sm:$0xff] }
 0x6ee   :  { %v5038_v19 = vmul.f32 %v9436_v34, %v5022_v30  ;;  %v5226_v36 = vadd.f32 1.0, %v5210_v9  ;;  %v5196_v46 = vsub.f32 1.0, %v5180_v56  ;;  %v9476_v7 = vrot.slane %v5287_v15, %v9467_v1  ;;  %v5257_v9 = vld [vmem:[#allocation7 + $0x10] sm:$0xff] }
 0x6ef   :  { %v9483_v24 = vmul.f32 %v5227_v63, %v4827_v61  ;;  %v7799_v25 = vmov 1934713408   ;;  %v7257_v11 = vpack.c.bf16 %v5256_v29, %v5255_v23  ;;  %v9493_v14 = vrot.slane %v5288_v49, %v9467_v1 }
 0x6f0   :  { %v5054_v16 = vadd.f32 -0.28449672, %v5038_v19  ;;  %v5242_v58 = vmul.f32 %v5226_v36, %v4826_v38  ;;  %v5212_v53 = vmul.f32 %v5196_v46, %v4876_v21  ;;  %v5354_v4 = vunpack.c.l.s4 %v7799_v25  ;;  %v5261_v38 = vld [vmem:[#allocation7 + $0x30] sm:$0xff]  ;;  %v5263_v36 = vld [vmem:[#allocation7 + $0x40] sm:$0xff] }
 0x6f1   :  { %v7640_v8 = vpop.eup %7639  ;;  %v5320_v30 = vcombine.high %v9483_v24, %v9472_v10  ;;  %v4721_v19 = vmul.f32 0.03125, %v4691_v35  ;;  %v4878_v39 = vsel %vm4862_vm12, 1.0, %v9915_v32  ;;  %v7265_v50 = vpack.c.bf16 %v5260_v2, %v5259_v26  ;;  %7258 = vmatprep.subr.bf16.mxu1 %v7257_v11 }
 0x6f2   :  { %v5070_v17 = vmul.f32 %v9436_v34, %v5054_v16  ;;  %v5303_v22 = vcombine.low %v5240_v28, %v5242_v58  ;;  %v5304_v5 = vcombine.high %v5240_v28, %v5242_v58  ;;  %v7261_v0 = vpack.c.bf16 %v5258_v20, %v5257_v9  ;;  %v4697_v16 = vpop.xlane.xlu1 %4696  ;;  %v5264_v58 = vld [vmem:[#allocation7 + $0x48] sm:$0xff]  ;;  %7260 = vmatpush3.bf16.msra.mxu1 %v7257_v11 }
 0x6f3   :  { %v5228_v18 = vadd.f32 1.0, %v5212_v53  ;;  %v7269_v59 = vpack.c.bf16 %v5262_v6, %v5261_v38  ;;  %v5268_v28 = vld [vmem:[#allocation7 + $0x68] sm:$0xff]  ;;  %v4828_v31 = vmul.f32 0.5, %v9345_v45  ;;  %v5355_v52 = vunpack.c.0.s8 %v5354_v4  ;;  %7266 = vmatprep.subr.bf16.mxu0 %v7265_v50 }
 0x6f4   :  { %v5086_v55 = vadd.f32 0.2548296, %v5070_v17  ;;  %v9479_v27 = vrot.slane %v5303_v22, %v9467_v1  ;;  %v9488_v47 = vrot.slane %v5304_v5, %v9467_v1  ;;  %v5267_v17 = vld [vmem:[#allocation7 + $0x60] sm:$0xff]  ;;  %v4830_v63 = vmul.f32 0.5, %v9388_v54  ;;  %7268 = vmatpush3.bf16.msra.mxu0 %v7265_v50  ;;  %7262 = vmatprep.subr.bf16.mxu1 %v7261_v0 }
 0x6f5   :  { %v9502_v46 = vpack.c.bf16 %v5264_v58, %v5263_v36  ;;  %v4737_v61 = vadd.f32 1e-05, %v4721_v19  ;;  %v4722_v49 = vmul.f32 0.03125, %v4694_v3  ;;  %7270 = vmatprep.subr.bf16.mxu0 %v7269_v59  ;;  %v9506_v5 = vpack.c.bf16 %v5268_v28, %v5267_v17 }
 0x6f6   :  { %v5102_v13 = vmul.f32 %v9436_v34, %v5086_v55  ;;  %v5352_v34 = vcombine.high %v9476_v7, %v9479_v27  ;;  %v5367_v15 = vcombine.low %v9493_v14, %v9488_v47  ;;  %v5368_v22 = vcombine.high %v9493_v14, %v9488_v47  ;;  %7264 = vmatpush3.bf16.msra.mxu1 %v7261_v0  ;;  %v4703_v54 = vpop.xlane.xlu1 %4702 }
 0x6f7   :  { %v5244_v45 = vmul.f32 %v5228_v18, %v4828_v31  ;;  %v5319_v21 = vcombine.low %v9483_v24, %v9472_v10  ;;  %7274 = vmatprep.subr.bf16.mxu1 %v9502_v46  ;;  %7641 = vrsqrt.f32 %v4737_v61  ;;  %v4738_v53 = vadd.f32 1e-05, %v4722_v49 }
 0x6f8   :  { %v5182_v12 = vmul.f32 %v7640_v8, %v5102_v13  ;;  %v4723_v13 = vmul.f32 0.03125, %v4697_v16  ;;  %7272 = vmatpush3.bf16.msra.mxu0 %v7269_v59  ;;  %v9512_v25 = vsub.s32 %v5355_v52, %v9441_v41  ;;  %v5351_v10 = vcombine.low %v9476_v7, %v9479_v27 }
 0x6f9   :  { %7282 = vmatprep.subr.bf16.mxu0 %v9506_v5  ;;  %v5327_v4 = vrot.slane %v5319_v21, %v9467_v1  ;;  %v4725_v29 = vmul.f32 0.03125, %v4703_v54  ;;  %v5334_v26 = vrot.slane %v5320_v30, %v9467_v1  ;;  %vm6278_vm7 = vcmask 392192  }
 0x6fa   :  { %v5198_v51 = vsub.f32 1.0, %v5182_v12  ;;  %v4739_v47 = vadd.f32 1e-05, %v4723_v13  ;;  %v5359_v41 = vrot.slane %v5351_v10, %v9512_v25  ;;  %v9527_v14 = vrot.slane %v5352_v34, %v9512_v25 }
 0x6fb   :  { %v4741_v20 = vadd.f32 1e-05, %v4725_v29  ;;  %v9540_v6 = vrot.slane %v5367_v15, %v9512_v25  ;;  %v9549_v3 = vrot.slane %v5368_v22, %v9512_v25 }
 0x6fc   :  { %v5214_v56 = vmul.f32 %v5198_v51, %v4878_v39  ;;  %7643 = vrsqrt.f32 %v4739_v47 }
 0x6fd   :  { %7645 = vrsqrt.f32 %v4738_v53 }
 0x6fe   :  { %v5230_v55 = vadd.f32 1.0, %v5214_v56  ;;  %7647 = vrsqrt.f32 %v4741_v20 }
 0x700   :  { %v5246_v8 = vmul.f32 %v5230_v55, %v4830_v63 }
 0x701   :  { %v7642_v7 = vpop.eup %7641 }
 0x702   :  { %v5335_v35 = vcombine.low %v5244_v45, %v5246_v8  ;;  %v5336_v12 = vcombine.high %v5244_v45, %v5246_v8  ;;  %v4769_v18 = vmul.f32 %v7642_v7, %v9185_v48 }
 0x704   :  { %v5343_v23 = vrot.slane %v5335_v35, %v9467_v1  ;;  %v5350_v24 = vrot.slane %v5336_v12, %v9467_v1  ;;  %v4792_v15 = vmul.f32 %v9262_v40, %v4769_v18 }
 0x706   :  { %v5383_v51 = vcombine.low %v5327_v4, %v5343_v23  ;;  %v5384_v11 = vcombine.high %v5327_v4, %v5343_v23  ;;  %v5399_v2 = vcombine.low %v5334_v26, %v5350_v24  ;;  %v5400_v36 = vcombine.high %v5334_v26, %v5350_v24  ;;  %v7644_v56 = vpop.eup %7643 }
 0x707   :  { %v7646_v17 = vpop.eup %7645  ;;  %v4771_v28 = vmul.f32 %v7644_v56, %v9230_v37  ;;  %v9564_v48 = vadd.f32 %v9268_v43, %v4792_v15 }
 0x708   :  { %v5391_v9 = vrot.slane %v5383_v51, %v9512_v25  ;;  %v9530_v19 = vrot.slane %v5384_v11, %v9512_v25  ;;  %v9533_v30 = vrot.slane %v5399_v2, %v9512_v25  ;;  %v9552_v16 = vrot.slane %v5400_v36, %v9512_v25  ;;  %v7648_v63 = vpop.eup %7647 }
 0x709   :  { %v4770_v31 = vmul.f32 %v7646_v17, %v9224_v57  ;;  %v4794_v22 = vmul.f32 %v9262_v40, %v4771_v28  ;;  %v4773_v13 = vmul.f32 %v7648_v63, %v9236_v60  ;;  %v9572_v45 = vmul.f32 0.70710677, %v9564_v48 }
 0x70a   :  { %v5415_v39 = vcombine.low %v5359_v41, %v5391_v9  ;;  %v5416_v50 = vcombine.high %v5359_v41, %v5391_v9 }
 0x70b   :  { %v4793_v49 = vmul.f32 %v9262_v40, %v4770_v31  ;;  %v9569_v37 = vadd.f32 %v9268_v43, %v4794_v22  ;;  %v4796_v8 = vmul.f32 %v9262_v40, %v4773_v13  ;;  %v9582_v54 = vand.u32 2147483647, %v9572_v45 }
 0x70c   :  { %7045 = vmatprep.mubr.msk.f32.mxu1 %vm2486_vm2, %v5415_v39  ;;  %7056 = vmatprep.mubr.msk.f32.mxu0 %vm2486_vm2, %v5416_v50  ;;  %vm4863_vm13 = vcmp.ge.f32.partialorder %v9572_v45, 0.0 }
 0x70d   :  { %v9575_v57 = vadd.f32 %v9268_v43, %v4793_v49  ;;  %v9579_v21 = vmul.f32 0.70710677, %v9569_v37  ;;  %v9588_v35 = vadd.f32 %v9268_v43, %v4796_v8  ;;  %v4911_v4 = vmul.f32 0.3275911, %v9582_v54 }
 0x70f   :  { %v9585_v60 = vmul.f32 0.70710677, %v9575_v57  ;;  %v9591_v12 = vand.u32 2147483647, %v9579_v21  ;;  %v9598_v24 = vmul.f32 0.70710677, %v9588_v35 }
 0x710   :  { %v4927_v9 = vadd.f32 1.0, %v4911_v4  ;;  %vm4865_vm14 = vcmp.ge.f32.partialorder %v9579_v21, 0.0 }
 0x711   :  { %v9595_v10 = vand.u32 2147483647, %v9585_v60  ;;  %v4913_v2 = vmul.f32 0.3275911, %v9591_v12  ;;  %v9605_v50 = vand.u32 2147483647, %v9598_v24 }
 0x712   :  { %vm4864_vm1 = vcmp.ge.f32.partialorder %v9585_v60, 0.0  ;;  %vm4867_vm4 = vcmp.ge.f32.partialorder %v9598_v24, 0.0 }
 0x713   :  { %v4912_v39 = vmul.f32 0.3275911, %v9595_v10  ;;  %v4915_v18 = vmul.f32 0.3275911, %v9605_v50 }
 0x715   :  { %v4928_v56 = vadd.f32 1.0, %v4912_v39  ;;  %v4931_v15 = vadd.f32 1.0, %v4915_v18 }
 0x71a   :  { %v4700_v52 = vpop.xlane.xlu0 %4699 }
 0x71b   :  { %v4724_v55 = vmul.f32 0.03125, %v4700_v52 }
 0x71d   :  { %v4740_v61 = vadd.f32 1e-05, %v4724_v55 }
 0x71f   :  { %7649 = vrsqrt.f32 %v4740_v61 }
 0x728   :  { %v4709_v53 = vpop.xlane.xlu1 %4708 }
 0x729   :  { %v7650_v47 = vpop.eup %7649  ;;  %v4727_v23 = vmul.f32 0.03125, %v4709_v53 }
 0x72a   :  { %v4772_v29 = vmul.f32 %v7650_v47, %v9242_v33  ;;  %v4706_v26 = vpop.xlane.xlu0 %4705  ;;  %v4929_v33 = vadd.f32 1.0, %v4913_v2 }
 0x72b   :  { %v4743_v51 = vadd.f32 1e-05, %v4727_v23  ;;  %v4726_v11 = vmul.f32 0.03125, %v4706_v26 }
 0x72c   :  { %v4795_v41 = vmul.f32 %v9262_v40, %v4772_v29 }
 0x72d   :  { %7651 = vrsqrt.f32 %v4743_v51  ;;  %v4742_v20 = vadd.f32 1e-05, %v4726_v11 }
 0x72e   :  { %v9608_v7 = vadd.f32 %v9268_v43, %v4795_v41 }
 0x72f   :  { %7653 = vrsqrt.f32 %v4742_v20 }
 0x730   :  { %v9611_v36 = vmul.f32 0.70710677, %v9608_v7  ;;  %7655 = vrcp.f32 %v4927_v9 }
 0x731   :  { %7657 = vrcp.f32 %v4929_v33 }
 0x732   :  { %v9615_v17 = vand.u32 2147483647, %v9611_v36  ;;  %7659 = vrcp.f32 %v4928_v56  ;;  %vm4866_vm15 = vcmp.ge.f32.partialorder %v9611_v36, 0.0 }
 0x734   :  { %v4914_v28 = vmul.f32 0.3275911, %v9615_v17  ;;  %v5122_v58 = vsub.f32 0.0, %v9615_v17 }
 0x736   :  { %v4930_v31 = vadd.f32 1.0, %v4914_v28 }
 0x737   :  { %v7652_v52 = vpop.eup %7651 }
 0x738   :  { %7661 = vrcp.f32 %v4930_v31  ;;  %v4775_v63 = vmul.f32 %v7652_v52, %v9248_v42 }
 0x739   :  { %v7654_v55 = vpop.eup %7653  ;;  %7663 = vrcp.f32 %v4931_v15 }
 0x73a   :  { %v4798_v22 = vmul.f32 %v9262_v40, %v4775_v63  ;;  %v4774_v61 = vmul.f32 %v7654_v55, %v9251_v62  ;;  %v4712_v49 = vpop.xlane.xlu0 %4711  ;;  %v9621_v13 = vpop.eup %7655  ;;  %v5119_v55 = vsub.f32 0.0, %v9582_v54 }
 0x73b   :  { %v4728_v8 = vmul.f32 0.03125, %v4712_v49  ;;  %v9627_v23 = vpop.eup %7657  ;;  %v4975_v42 = vmul.f32 1.0614054, %v9621_v13 }
 0x73c   :  { %v9624_v53 = vadd.f32 %v9268_v43, %v4798_v22  ;;  %v4797_v47 = vmul.f32 %v9262_v40, %v4774_v61  ;;  %v9636_v62 = vpop.eup %7659  ;;  %v4977_v2 = vmul.f32 1.0614054, %v9627_v23 }
 0x73d   :  { %v4744_v4 = vadd.f32 1e-05, %v4728_v8  ;;  %v4991_v9 = vadd.f32 -1.4531521, %v4975_v42  ;;  %v4976_v33 = vmul.f32 1.0614054, %v9636_v62 }
 0x73e   :  { %v9631_v29 = vmul.f32 0.70710677, %v9624_v53  ;;  %v9634_v26 = vadd.f32 %v9268_v43, %v4797_v47  ;;  %v4993_v31 = vadd.f32 -1.4531521, %v4977_v2 }
 0x73f   :  { %7665 = vrsqrt.f32 %v4744_v4  ;;  %v5007_v63 = vmul.f32 %v9621_v13, %v4991_v9  ;;  %v4992_v61 = vadd.f32 -1.4531521, %v4976_v33 }
 0x740   :  { %v9639_v51 = vand.u32 2147483647, %v9631_v29  ;;  %v9642_v11 = vmul.f32 0.70710677, %v9634_v26  ;;  %v5009_v47 = vmul.f32 %v9627_v23, %v4993_v31  ;;  %vm4869_vm3 = vcmp.ge.f32.partialorder %v9631_v29, 0.0 }
 0x741   :  { %v5023_v42 = vadd.f32 1.4214138, %v5007_v63  ;;  %v5008_v9 = vmul.f32 %v9636_v62, %v4992_v61 }
 0x742   :  { %v9645_v41 = vpop.eup %7661  ;;  %v4917_v20 = vmul.f32 0.3275911, %v9639_v51  ;;  %v9649_v39 = vand.u32 2147483647, %v9642_v11  ;;  %vm4868_vm5 = vcmp.ge.f32.partialorder %v9642_v11, 0.0 }
 0x743   :  { %v4978_v56 = vmul.f32 1.0614054, %v9645_v41  ;;  %v9653_v18 = vpop.eup %7663  ;;  %v5039_v59 = vmul.f32 %v9621_v13, %v5023_v42  ;;  %v5024_v63 = vadd.f32 1.4214138, %v5008_v9 }
 0x744   :  { %v4933_v28 = vadd.f32 1.0, %v4917_v20  ;;  %v4916_v15 = vmul.f32 0.3275911, %v9649_v39  ;;  %v4979_v49 = vmul.f32 1.0614054, %v9653_v18  ;;  %v5135_v20 = vmul.f32 %v5119_v55, %v9582_v54 }
 0x745   :  { %v4994_v52 = vadd.f32 -1.4531521, %v4978_v56  ;;  %v5121_v54 = vsub.f32 0.0, %v9591_v12 }
 0x746   :  { %7667 = vrcp.f32 %v4933_v28  ;;  %v4932_v22 = vadd.f32 1.0, %v4916_v15  ;;  %v4995_v56 = vadd.f32 -1.4531521, %v4979_v49  ;;  %v5025_v15 = vadd.f32 1.4214138, %v5009_v47 }
 0x747   :  { %v5010_v4 = vmul.f32 %v9645_v41, %v4994_v52  ;;  %v5159_v31 = vmul.f32 1.442695, %v5135_v20  ;;  %v5055_v47 = vadd.f32 -0.28449672, %v5039_v59  ;;  %v5137_v9 = vmul.f32 %v5121_v54, %v9591_v12 }
 0x748   :  { %7669 = vrcp.f32 %v4932_v22  ;;  %v5120_v22 = vsub.f32 0.0, %v9595_v10  ;;  %v5041_v61 = vmul.f32 %v9627_v23, %v5025_v15 }
 0x749   :  { %v7666_v8 = vpop.eup %7665  ;;  %v5026_v33 = vadd.f32 1.4214138, %v5010_v4  ;;  %7671 = vpow2.f32 %v5159_v31  ;;  %v5125_v4 = vsub.f32 0.0, %v9639_v51 }
 0x74a   :  { %v4776_v2 = vmul.f32 %v7666_v8, %v9271_v44  ;;  %v5011_v44 = vmul.f32 %v9653_v18, %v4995_v56  ;;  %v5138_v8 = vmul.f32 %v5122_v58, %v9615_v17  ;;  %v5136_v15 = vmul.f32 %v5120_v22, %v9595_v10 }
 0x74b   :  { %v5042_v49 = vmul.f32 %v9645_v41, %v5026_v33  ;;  %v5123_v58 = vsub.f32 0.0, %v9605_v50  ;;  %v5057_v33 = vadd.f32 -0.28449672, %v5041_v61  ;;  %v5141_v38 = vmul.f32 %v5125_v4, %v9639_v51 }
 0x74c   :  { %v4799_v28 = vmul.f32 %v9262_v40, %v4776_v2  ;;  %v5040_v2 = vmul.f32 %v9636_v62, %v5024_v63  ;;  %v5027_v56 = vadd.f32 1.4214138, %v5011_v44  ;;  %v5165_v34 = vmul.f32 1.442695, %v5138_v8 }
 0x74d   :  { %v5058_v31 = vadd.f32 -0.28449672, %v5042_v49  ;;  %v5124_v63 = vsub.f32 0.0, %v9649_v39  ;;  %v5163_v44 = vmul.f32 1.442695, %v5137_v9  ;;  %v5139_v32 = vmul.f32 %v5123_v58, %v9605_v50 }
 0x74e   :  { %v9668_v52 = vadd.f32 %v9268_v43, %v4799_v28  ;;  %v5056_v54 = vadd.f32 -0.28449672, %v5040_v2  ;;  %v5043_v10 = vmul.f32 %v9653_v18, %v5027_v56  ;;  %v5071_v49 = vmul.f32 %v9621_v13, %v5055_v47 }
 0x74f   :  { %v5073_v8 = vmul.f32 %v9627_v23, %v5057_v33  ;;  %v5074_v51 = vmul.f32 %v9645_v41, %v5058_v31  ;;  %v5171_v2 = vmul.f32 1.442695, %v5141_v38  ;;  %v5140_v56 = vmul.f32 %v5124_v63, %v9649_v39 }
 0x750   :  { %v9672_v55 = vpop.eup %7667  ;;  %v9676_v40 = vmul.f32 0.70710677, %v9668_v52  ;;  %v5059_v50 = vadd.f32 -0.28449672, %v5043_v10  ;;  %v5087_v58 = vadd.f32 0.2548296, %v5071_v49 }
 0x751   :  { %v4981_v43 = vmul.f32 1.0614054, %v9672_v55 }
 0x752   :  { %v4902_v42 = vand.u32 2147483647, %v9676_v40  ;;  %v9684_v20 = vpop.eup %7669  ;;  %v5075_v63 = vmul.f32 %v9653_v18, %v5059_v50  ;;  %v5103_v10 = vmul.f32 %v9621_v13, %v5087_v58  ;;  %vm4870_vm6 = vcmp.ge.f32.partialorder %v9676_v40, 0.0 }
 0x753   :  { %v4997_v28 = vadd.f32 -1.4531521, %v4981_v43  ;;  %v4980_v17 = vmul.f32 1.0614054, %v9684_v20  ;;  %v5161_v43 = vmul.f32 1.442695, %v5136_v15 }
 0x754   :  { %v4918_v59 = vmul.f32 0.3275911, %v4902_v42  ;;  %v5167_v15 = vmul.f32 1.442695, %v5139_v32  ;;  %v5126_v31 = vsub.f32 0.0, %v4902_v42 }
 0x755   :  { %v5013_v27 = vmul.f32 %v9672_v55, %v4997_v28  ;;  %v4996_v0 = vadd.f32 -1.4531521, %v4980_v17  ;;  %v5089_v17 = vadd.f32 0.2548296, %v5073_v8  ;;  %v5091_v49 = vadd.f32 0.2548296, %v5075_v63 }
 0x756   :  { %v4934_v12 = vadd.f32 1.0, %v4918_v59  ;;  %v5090_v59 = vadd.f32 0.2548296, %v5074_v51 }
 0x757   :  { %v5029_v22 = vadd.f32 1.4214138, %v5013_v27  ;;  %v5012_v61 = vmul.f32 %v9684_v20, %v4996_v0  ;;  %v5072_v27 = vmul.f32 %v9636_v62, %v5056_v54  ;;  %v7672_v0 = vpop.eup %7671 }
 0x758   :  { %7673 = vrcp.f32 %v4934_v12  ;;  %v5106_v12 = vmul.f32 %v9645_v41, %v5090_v59  ;;  %v5183_v50 = vmul.f32 %v7672_v0, %v5103_v10 }
 0x759   :  { %v5045_v4 = vmul.f32 %v9672_v55, %v5029_v22  ;;  %7675 = vpow2.f32 %v5165_v34  ;;  %v5028_v9 = vadd.f32 1.4214138, %v5012_v61  ;;  %v5169_v34 = vmul.f32 1.442695, %v5140_v56 }
 0x75a   :  { %7677 = vpow2.f32 %v5163_v44  ;;  %v5088_v39 = vadd.f32 0.2548296, %v5072_v27  ;;  %v5105_v22 = vmul.f32 %v9627_v23, %v5089_v17  ;;  %v5107_v23 = vmul.f32 %v9653_v18, %v5091_v49 }
 0x75b   :  { %v5061_v28 = vadd.f32 -0.28449672, %v5045_v4  ;;  %7679 = vpow2.f32 %v5161_v43  ;;  %v5044_v47 = vmul.f32 %v9684_v20, %v5028_v9  ;;  %v5142_v43 = vmul.f32 %v5126_v31, %v4902_v42 }
 0x75c   :  { %7681 = vpow2.f32 %v5171_v2  ;;  %v5104_v61 = vmul.f32 %v9636_v62, %v5088_v39  ;;  %v5199_v59 = vsub.f32 1.0, %v5183_v50  ;;  %v10015_v39 = vmov -1.0  }
 0x75d   :  { %v5077_v33 = vmul.f32 %v9672_v55, %v5061_v28  ;;  %v5060_v38 = vadd.f32 -0.28449672, %v5044_v47  ;;  %7683 = vpow2.f32 %v5167_v15  ;;  %v5173_v13 = vmul.f32 1.442695, %v5142_v43 }
 0x75e   :  { %7685 = vpow2.f32 %v5169_v34  ;;  %v4879_v63 = vsel %vm4863_vm13, 1.0, %v10015_v39  ;;  %v4880_v43 = vsel %vm4864_vm1, 1.0, %v10015_v39  ;;  %v4834_v50 = vmul.f32 0.5, %v9608_v7 }
 0x75f   :  { %v5093_v54 = vadd.f32 0.2548296, %v5077_v33  ;;  %v5076_v32 = vmul.f32 %v9684_v20, %v5060_v38  ;;  %7687 = vpow2.f32 %v5173_v13  ;;  %v4832_v13 = vmul.f32 0.5, %v9575_v57 }
 0x760   :  { %v4884_v11 = vsel %vm4868_vm5, 1.0, %v10015_v39  ;;  %v4837_v57 = vmul.f32 0.5, %v9624_v53  ;;  %v4886_v40 = vsel %vm4870_vm6, 1.0, %v10015_v39  ;;  %v4838_v53 = vmul.f32 0.5, %v9668_v52 }
 0x761   :  { %v5109_v41 = vmul.f32 %v9672_v55, %v5093_v54  ;;  %v5092_v9 = vadd.f32 0.2548296, %v5076_v32 }
 0x762   :  { %v9708_v44 = vpop.eup %7673 }
 0x763   :  { %v4982_v8 = vmul.f32 1.0614054, %v9708_v44  ;;  %v7676_v51 = vpop.eup %7675  ;;  %v5108_v58 = vmul.f32 %v9684_v20, %v5092_v9  ;;  %v4881_v20 = vsel %vm4865_vm14, 1.0, %v10015_v39  ;;  %v4883_v9 = vsel %vm4867_vm4, 1.0, %v10015_v39 }
 0x764   :  { %v7678_v4 = vpop.eup %7677  ;;  %v5186_v2 = vmul.f32 %v7676_v51, %v5106_v12  ;;  %v4882_v12 = vsel %vm4866_vm15, 1.0, %v10015_v39 }
 0x765   :  { %v4998_v56 = vadd.f32 -1.4531521, %v4982_v8  ;;  %v7680_v27 = vpop.eup %7679  ;;  %v5185_v28 = vmul.f32 %v7678_v4, %v5105_v22  ;;  %v5215_v22 = vmul.f32 %v5199_v59, %v4879_v63  ;;  %v4885_v8 = vsel %vm4869_vm3, 1.0, %v10015_v39 }
 0x766   :  { %v5184_v15 = vmul.f32 %v7680_v27, %v5104_v61  ;;  %v7682_v62 = vpop.eup %7681  ;;  %v5202_v47 = vsub.f32 1.0, %v5186_v2 }
 0x767   :  { %v5014_v42 = vmul.f32 %v9708_v44, %v4998_v56  ;;  %v5189_v55 = vmul.f32 %v7682_v62, %v5109_v41  ;;  %v7684_v0 = vpop.eup %7683  ;;  %v5201_v33 = vsub.f32 1.0, %v5185_v28  ;;  %v5231_v2 = vadd.f32 1.0, %v5215_v22 }
 0x768   :  { %v5200_v18 = vsub.f32 1.0, %v5184_v15  ;;  %v5187_v38 = vmul.f32 %v7684_v0, %v5107_v23  ;;  %v7686_v31 = vpop.eup %7685  ;;  %v5218_v60 = vmul.f32 %v5202_v47, %v4882_v12  ;;  %v4833_v15 = vmul.f32 0.5, %v9569_v37 }
 0x769   :  { %v5030_v17 = vadd.f32 1.4214138, %v5014_v42  ;;  %v5205_v54 = vsub.f32 1.0, %v5189_v55  ;;  %v5188_v32 = vmul.f32 %v7686_v31, %v5108_v58  ;;  %v5217_v61 = vmul.f32 %v5201_v33, %v4881_v20  ;;  %v7688_v28 = vpop.eup %7687 }
 0x76a   :  { %v5216_v45 = vmul.f32 %v5200_v18, %v4880_v43  ;;  %v5203_v49 = vsub.f32 1.0, %v5187_v38  ;;  %v5234_v36 = vadd.f32 1.0, %v5218_v60  ;;  %v4831_v55 = vmul.f32 0.5, %v9564_v48 }
 0x76b   :  { %v5046_v34 = vmul.f32 %v9708_v44, %v5030_v17  ;;  %v5221_v29 = vmul.f32 %v5205_v54, %v4885_v8  ;;  %v5204_v51 = vsub.f32 1.0, %v5188_v32  ;;  %v5233_v41 = vadd.f32 1.0, %v5217_v61  ;;  %v5265_v61 = vld [vmem:[#allocation7 + $0x50] sm:$0xff] }
 0x76c   :  { %v5232_v56 = vadd.f32 1.0, %v5216_v45  ;;  %v5219_v27 = vmul.f32 %v5203_v49, %v4883_v9  ;;  %v9745_v23 = vmul.f32 %v5234_v36, %v4834_v50  ;;  %v9753_v37 = vmul.f32 %v5231_v2, %v4831_v55  ;;  %v5266_v45 = vld [vmem:[#allocation7 + $0x58] sm:$0xff]  ;;  %v5269_v49 = vld [vmem:[#allocation7 + $0x70] sm:$0xff] }
 0x76d   :  { %v5062_v10 = vadd.f32 -0.28449672, %v5046_v34  ;;  %v5237_v42 = vadd.f32 1.0, %v5221_v29  ;;  %v5220_v62 = vmul.f32 %v5204_v51, %v4884_v11  ;;  %v9748_v58 = vmul.f32 %v5233_v41, %v4833_v15  ;;  %v5271_v51 = vld [vmem:[#allocation7 + $0x80] sm:$0xff]  ;;  %v5274_v55 = vld [vmem:[#allocation7 + $0x98] sm:$0xff] }
 0x76e   :  { %v9750_v7 = vmul.f32 %v5232_v56, %v4832_v13  ;;  %v4835_v0 = vmul.f32 0.5, %v9588_v35  ;;  %v4836_v31 = vmul.f32 0.5, %v9634_v26  ;;  %v7277_v41 = vpack.c.bf16 %v5266_v45, %v5265_v61  ;;  %v5275_v56 = vld [vmem:[#allocation7 + $0xa0] sm:$0xff] }
 0x76f   :  { %v5078_v21 = vmul.f32 %v9708_v44, %v5062_v10  ;;  %v5253_v59 = vmul.f32 %v5237_v42, %v4837_v57  ;;  %v5236_v33 = vadd.f32 1.0, %v5220_v62  ;;  %v5423_v38 = vcombine.low %v9753_v37, %v9748_v58 }
 0x770   :  { %v5439_v48 = vcombine.low %v9750_v7, %v9745_v23  ;;  %v5424_v15 = vcombine.high %v9753_v37, %v9748_v58  ;;  %v10016_v11 = vcombine.low %v9527_v14, %v9530_v19  ;;  %v10017_v42 = vcombine.high %v9527_v14, %v9530_v19  ;;  %v5277_v58 = vld [vmem:[#allocation7 + $0xb0] sm:$0xff] }
 0x771   :  { %v5094_v4 = vadd.f32 0.2548296, %v5078_v21  ;;  %v5252_v20 = vmul.f32 %v5236_v33, %v4836_v31  ;;  %v5431_v60 = vrot.slane %v5423_v38, %v9467_v1  ;;  %v5270_v21 = vld [vmem:[#allocation7 + $0x78] sm:$0xff]  ;;  %v5280_v33 = vld [vmem:[#allocation7 + $0xc8] sm:$0xff] }
 0x772   :  { %v5447_v35 = vrot.slane %v5439_v48, %v9467_v1  ;;  %v7285_v9 = vpack.c.bf16 %v5270_v21, %v5269_v49  ;;  %v5438_v14 = vrot.slane %v5424_v15, %v9467_v1  ;;  %v5283_v48 = vld [vmem:[#allocation7 + $0xe0] sm:$0xff]  ;;  %v5284_v38 = vld [vmem:[#allocation7 + $0xe8] sm:$0xff] }
 0x773   :  { %v5110_v24 = vmul.f32 %v9708_v44, %v5094_v4  ;;  %v5235_v44 = vadd.f32 1.0, %v5219_v27  ;;  %v5272_v4 = vld [vmem:[#allocation7 + $0x88] sm:$0xff] }
 0x774   :  { %v5487_v22 = vcombine.low %v5431_v60, %v5447_v35  ;;  %v5276_v27 = vld [vmem:[#allocation7 + $0xa8] sm:$0xff]  ;;  %v5488_v50 = vcombine.high %v5431_v60, %v5447_v35  ;;  %v7289_v13 = vpack.c.bf16 %v5272_v4, %v5271_v51  ;;  %v5282_v35 = vld [vmem:[#allocation7 + $0xd8] sm:$0xff] }
 0x775   :  { %v5190_v47 = vmul.f32 %v7688_v28, %v5110_v24  ;;  %v5251_v34 = vmul.f32 %v5235_v44, %v4835_v0  ;;  %v5440_v24 = vcombine.high %v9750_v7, %v9745_v23  ;;  %v7297_v62 = vpack.c.bf16 %v5276_v27, %v5275_v56  ;;  %v5278_v7 = vld [vmem:[#allocation7 + $0xb8] sm:$0xff] }
 0x776   :  { %v5495_v26 = vrot.slane %v5487_v22, %v9512_v25  ;;  %v5286_v60 = vld [vmem:[#allocation7 + $0xf8] sm:$0xff] }
 0x777   :  { %v5206_v17 = vsub.f32 1.0, %v5190_v47  ;;  %v5455_v39 = vcombine.low %v5251_v34, %v5253_v59  ;;  %v5456_v28 = vcombine.high %v5251_v34, %v5253_v59  ;;  %v5502_v47 = vrot.slane %v5488_v50, %v9512_v25  ;;  %v5279_v59 = vld [vmem:[#allocation7 + $0xc0] sm:$0xff] }
 0x778   :  { %v5454_v44 = vrot.slane %v5440_v24, %v9467_v1  ;;  %v10019_v34 = vcombine.high %v9540_v6, %v9533_v30 }
 0x779   :  { %v5222_v18 = vmul.f32 %v5206_v17, %v4886_v40  ;;  %v5463_v32 = vrot.slane %v5455_v39, %v9467_v1  ;;  %v5470_v57 = vrot.slane %v5456_v28, %v9467_v1  ;;  %v7301_v40 = vpack.c.bf16 %v5278_v7, %v5277_v58  ;;  %v5285_v39 = vld [vmem:[#allocation7 + $0xf0] sm:$0xff] }
 0x77a   :  { %v5504_v22 = vcombine.high %v5438_v14, %v5454_v44 }
 0x77b   :  { %v5238_v63 = vadd.f32 1.0, %v5222_v18  ;;  %v5503_v18 = vcombine.low %v5438_v14, %v5454_v44 }
 0x77d   :  { %v5254_v12 = vmul.f32 %v5238_v63, %v4838_v53  ;;  %v7305_v53 = vpack.c.bf16 %v5280_v33, %v5279_v59  ;;  %v7313_v63 = vpack.c.bf16 %v5284_v38, %v5283_v48 }
 0x77f   :  { %v5471_v54 = vcombine.low %v5252_v20, %v5254_v12  ;;  %v5472_v2 = vcombine.high %v5252_v20, %v5254_v12  ;;  %v5511_v20 = vrot.slane %v5503_v18, %v9512_v25  ;;  %v5281_v12 = vld [vmem:[#allocation7 + $0xd0] sm:$0xff] }
 0x781   :  { %v5479_v10 = vrot.slane %v5471_v54, %v9467_v1 }
 0x783   :  { %v5519_v43 = vcombine.low %v5463_v32, %v5479_v10  ;;  %v5520_v29 = vcombine.high %v5463_v32, %v5479_v10  ;;  %v7317_v10 = vpack.c.bf16 %v5286_v60, %v5285_v39 }
 0x785   :  { %v5527_v52 = vrot.slane %v5519_v43, %v9512_v25  ;;  %v5534_v23 = vrot.slane %v5520_v29, %v9512_v25  ;;  %v10020_v43 = vcombine.low %v9549_v3, %v9552_v16 }
 0x787   :  { %v5551_v8 = vcombine.low %v5495_v26, %v5527_v52  ;;  %v5552_v36 = vcombine.high %v5495_v26, %v5527_v52  ;;  %v5553_v19 = vcombine.low %v5502_v47, %v5534_v23  ;;  %v5554_v17 = vcombine.high %v5502_v47, %v5534_v23 }
 0x788   :  { %v10021_v26 = vcombine.high %v9549_v3, %v9552_v16  ;;  %v5518_v52 = vrot.slane %v5504_v22, %v9512_v25  ;;  %v6246_v22 = vld [vmem:[%s9869_s8] sm:$0xff] }
 0x789   :  { %7046 = vmatmul.mubr.msk.f32.vlgmr.msra.gmra.mrb[56].mxu1 %vm2486_vm2, %v5551_v8  ;;  %7057 = vmatmul.mubr.msk.f32.vlgmr.msra.gmra.mrb[56].mxu0 %vm2486_vm2, %v5552_v36 }
 0x78a   :  { %7276 = vmatpush3.bf16.msra.mxu1 %v9502_v46  ;;  %7284 = vmatpush3.bf16.msra.mxu0 %v9506_v5  ;;  %v5486_v46 = vrot.slane %v5472_v2, %v9467_v1  ;;  %v5273_v5 = vld [vmem:[#allocation7 + $0x90] sm:$0xff]  ;;  %v10018_v1 = vcombine.low %v9540_v6, %v9533_v30  ;;  %v7309_v6 = vpack.c.bf16 %v5282_v35, %v5281_v12 }
 0x78b   :  { %7067 = vmatprep.mubr.msk.f32.mxu1 %vm2486_vm2, %v10016_v11  ;;  %7078 = vmatprep.mubr.msk.f32.mxu0 %vm2486_vm2, %v10017_v42  ;;  %v7293_v0 = vpack.c.bf16 %v5274_v55, %v5273_v5 }
 0x78c   :  { %7278 = vmatprep.subr.bf16.mxu1 %v7277_v41  ;;  %7286 = vmatprep.subr.bf16.mxu0 %v7285_v9  ;;  %v5535_v37 = vcombine.low %v5470_v57, %v5486_v46  ;;  %v5536_v32 = vcombine.high %v5470_v57, %v5486_v46 }
 0x78e   :  { %7280 = vmatpush3.bf16.msra.mxu1 %v7277_v41  ;;  %7288 = vmatpush3.bf16.msra.mxu0 %v7285_v9  ;;  %v5543_v31 = vrot.slane %v5535_v37, %v9512_v25  ;;  %v5550_v61 = vrot.slane %v5536_v32, %v9512_v25 }
 0x78f   :  { %7290 = vmatprep.subr.bf16.mxu1 %v7289_v13  ;;  %7298 = vmatprep.subr.bf16.mxu0 %v7297_v62 }
 0x790   :  { %v5555_v54 = vcombine.low %v5511_v20, %v5543_v31  ;;  %v5556_v30 = vcombine.high %v5511_v20, %v5543_v31  ;;  %v5557_v45 = vcombine.low %v5518_v52, %v5550_v61  ;;  %v5558_v49 = vcombine.high %v5518_v52, %v5550_v61 }
 0x791   :  { %7068 = vmatmul.mubr.msk.f32.vlgmr.msra.gmra.mrb[58].mxu1 %vm2486_vm2, %v5553_v19  ;;  %7079 = vmatmul.mubr.msk.f32.vlgmr.msra.gmra.mrb[58].mxu0 %vm2486_vm2, %v5554_v17 }
 0x792   :  { %7292 = vmatpush3.bf16.msra.mxu1 %v7289_v13  ;;  %7089 = vmatprep.mubr.msk.f32.mxu1 %vm2486_vm2, %v10018_v1  ;;  %v6478_v1 = vld [vmem:[%s9868_s7] ss:$0 sm:$0xff] }
 0x793   :  { %7300 = vmatpush3.bf16.msra.mxu0 %v7297_v62  ;;  %7100 = vmatprep.mubr.msk.f32.mxu0 %vm2486_vm2, %v10019_v34 }
 0x794   :  { %7294 = vmatprep.subr.bf16.mxu1 %v7293_v0  ;;  %7302 = vmatprep.subr.bf16.mxu0 %v7301_v40 }
 0x796   :  { %7296 = vmatpush3.bf16.msra.mxu1 %v7293_v0 }
 0x797   :  { %7304 = vmatpush3.bf16.msra.mxu0 %v7301_v40  ;;  %7306 = vmatprep.subr.bf16.mxu1 %v7305_v53 }
 0x798   :  { %7314 = vmatprep.subr.bf16.mxu0 %v7313_v63 }
 0x799   :  { %7090 = vmatmul.mubr.msk.f32.vlgmr.msra.gmra.mrb[60].mxu1 %vm2486_vm2, %v5555_v54 }
 0x79a   :  { %7101 = vmatmul.mubr.msk.f32.vlgmr.msra.gmra.mrb[60].mxu0 %vm2486_vm2, %v5556_v30  ;;  %7308 = vmatpush3.bf16.msra.mxu1 %v7305_v53 }
 0x79b   :  { %7111 = vmatprep.mubr.msk.f32.mxu1 %vm2486_vm2, %v10020_v43  ;;  %7316 = vmatpush3.bf16.msra.mxu0 %v7313_v63 }
 0x79c   :  { %7122 = vmatprep.mubr.msk.f32.mxu0 %vm2486_vm2, %v10021_v26  ;;  %7310 = vmatprep.subr.bf16.mxu1 %v7309_v6 }
 0x79d   :  { %7318 = vmatprep.subr.bf16.mxu0 %v7317_v10 }
 0x79e   :  { %7312 = vmatpush3.bf16.msra.mxu1 %v7309_v6 }
 0x79f   :  { %7320 = vmatpush3.bf16.msra.mxu0 %v7317_v10  ;;  %v6247_v10 = vld [vmem:[%s9869_s8 + $0x8] sm:$0xff]  ;;  %s7759_s8 = scalar_lea.vmem %s6287_s18, 256 }
 0x7a0   :  { %p7760_p10 = scmp.ne.s32.totalorder %s6287_s18, %s7759_s8  ;;  %p7765_p12 = scmp.lt.s32.totalorder %s7759_s8, %s7759_s8 }
 0x7a1   :  { %7112 = vmatmul.mubr.msk.f32.vlgmr.msra.gmra.mrb[62].mxu1 %vm2486_vm2, %v5557_v45 }
 0x7a2   :  { %7123 = vmatmul.mubr.msk.f32.vlgmr.msra.gmra.mrb[62].mxu0 %vm2486_vm2, %v5558_v49  ;;  %p7766_p13 = por %p7765_p12, %p7764_p11 }
 0x7a4   :  { %p7767_p0 = pnand %p7766_p13, %p7760_p10 }
 0x85c   :  { %v7047_v21 = vpop.f32.mrb[56].mxu1  ;;  %v7058_v8 = vpop.f32.mrb[56].mxu0 }
 0x85d   :  { %v6222_v36 = vsel %vm2486_vm2, %v7047_v21, 0.0  ;;  %v6223_v3 = vsel %vm2486_vm2, %v7058_v8, 0.0  ;;  %v5631_v16 = vpop.f32.mrb[57].mxu1  ;;  %v5712_v29 = vpop.f32.mrb[57].mxu0 }
 0x85e   :  { %v6224_v51 = vadd.f32 %v6223_v3, %v6222_v36  ;;  %v6207_v4 = vsel %vm2486_vm2, %v5631_v16, 0.0  ;;  %v6208_v25 = vsel %vm2486_vm2, %v5712_v29, 0.0 }
 0x85f   :  { %v6209_v2 = vadd.f32 %v6208_v25, %v6207_v4 }
 0x864   :  { %v7069_v41 = vpop.f32.mrb[58].mxu1  ;;  %v7080_v9 = vpop.f32.mrb[58].mxu0 }
 0x865   :  { %v6225_v56 = vsel %vm2486_vm2, %v7069_v41, 0.0  ;;  %v5793_v27 = vpop.f32.mrb[59].mxu1  ;;  %v5874_v50 = vpop.f32.mrb[59].mxu0  ;;  %v6227_v13 = vsel %vm2486_vm2, %v7080_v9, 0.0 }
 0x866   :  { %v6226_v24 = vadd.f32 %v6225_v56, %v6224_v51  ;;  %v6210_v28 = vsel %vm2486_vm2, %v5793_v27, 0.0  ;;  %v6212_v42 = vsel %vm2486_vm2, %v5874_v50, 0.0 }
 0x867   :  { %v6211_v15 = vadd.f32 %v6210_v28, %v6209_v2 }
 0x868   :  { %v6228_v11 = vadd.f32 %v6227_v13, %v6226_v24 }
 0x869   :  { %v6213_v23 = vadd.f32 %v6212_v42, %v6211_v15 }
 0x86c   :  { %v7091_v62 = vpop.f32.mrb[60].mxu1 }
 0x86d   :  { %v6229_v46 = vsel %vm2486_vm2, %v7091_v62, 0.0  ;;  %v7102_v5 = vpop.f32.mrb[60].mxu0  ;;  %v5955_v47 = vpop.f32.mrb[61].mxu1 }
 0x86e   :  { %v6230_v55 = vadd.f32 %v6229_v46, %v6228_v11  ;;  %v6214_v58 = vsel %vm2486_vm2, %v5955_v47, 0.0  ;;  %v6036_v7 = vpop.f32.mrb[61].mxu0  ;;  %v6231_v44 = vsel %vm2486_vm2, %v7102_v5, 0.0 }
 0x86f   :  { %v6215_v57 = vadd.f32 %v6214_v58, %v6213_v23  ;;  %v6216_v19 = vsel %vm2486_vm2, %v6036_v7, 0.0 }
 0x870   :  { %v6232_v14 = vadd.f32 %v6231_v44, %v6230_v55 }
 0x871   :  { %v6217_v17 = vadd.f32 %v6216_v19, %v6215_v57 }
 0x874   :  { %v7113_v37 = vpop.f32.mrb[62].mxu1 }
 0x875   :  { %v6233_v0 = vsel %vm2486_vm2, %v7113_v37, 0.0  ;;  %v7124_v40 = vpop.f32.mrb[62].mxu0  ;;  %v6117_v59 = vpop.f32.mrb[63].mxu1 }
 0x876   :  { %v6234_v33 = vadd.f32 %v6233_v0, %v6232_v14  ;;  %v6218_v18 = vsel %vm2486_vm2, %v6117_v59, 0.0  ;;  %v6198_v48 = vpop.f32.mrb[63].mxu0  ;;  %v6235_v38 = vsel %vm2486_vm2, %v7124_v40, 0.0 }
 0x877   :  { %v6219_v34 = vadd.f32 %v6218_v18, %v6217_v17  ;;  %v6220_v53 = vsel %vm2486_vm2, %v6198_v48, 0.0 }
 0x878   :  { %v6236_v31 = vadd.f32 %v6235_v38, %v6234_v33 }
 0x879   :  { %v6221_v63 = vadd.f32 %v6220_v53, %v6219_v34 }
 0x87a   :  { %v6245_v20 = vadd.f32 %v6478_v1, %v6236_v31 }
 0x87b   :  { %v6244_v12 = vadd.f32 %v6478_v1, %v6221_v63 }
 0x87c   :  { %v6249_v35 = vmul.f32 0.5, %v6245_v20 }
 0x87d   :  { %v6248_v39 = vmul.f32 0.5, %v6244_v12  ;;  %6268 = vrot.lane.b32.xlu1 %v6244_v12, %s7800_s1 }
 0x87e   :  { %v6252_v60 = vmul.f32 1.442695, %v6249_v35 }
 0x87f   :  { %v6250_v54 = vmul.f32 1.442695, %v6248_v39 }
 0x880   :  { %7689 = vpow2.f32 %v6252_v60 }
 0x881   :  { %7691 = vpow2.f32 %v6250_v54 }
 0x88a   :  { %v7690_v32 = vpop.eup %7689 }
 0x88b   :  { %v7692_v30 = vpop.eup %7691  ;;  %6258 = vrot.lane.b32.xlu0 %v7690_v32, %s7801_s10 }
 0x88c   :  { %6256 = vrot.lane.b32.xlu1 %v7692_v30, %s7801_s10 }
 0x890   :  { %6270 = vrot.lane.b32.xlu1 %v6245_v20, %s7800_s1 }
 0x8ef   :  { %v6269_v6 = vpop.permute.xlu1 %6268 }
 0x8fd   :  { %v6259_v43 = vpop.permute.xlu0 %6258 }
 0x8fe   :  { %v6263_v61 = vmul.f32 %v6259_v43, %v6247_v10  ;;  %v6257_v26 = vpop.permute.xlu1 %6256 }
 0x8ff   :  { %v6262_v52 = vmul.f32 %v6257_v26, %v6246_v22 }
 0x900   :  { %v6265_v45 = vadd.f32 %v6263_v61, %v6245_v20 }
 0x901   :  { %v6264_v49 = vadd.f32 %v6262_v52, %v6244_v12 }
 0x902   :  { %v6271_v21 = vpop.permute.xlu1 %6270 }
 0x903   :  { %v6274_v8 = vsel %vm99_vm0, %v6264_v49, %v6269_v6  ;;  %v6275_v36 = vsel %vm99_vm0, %v6265_v45, %v6271_v21 }
 0x904   :  { %v6277_v3 = vsel %vm2486_vm2, %v6275_v36, %v6271_v21  ;;  %v6276_v16 = vsel %vm2486_vm2, %v6274_v8, %v6269_v6 }
 0x905   :  { %6279 = vst.msk [vmem:[#allocation8] sm:$0xff] %vm6278_vm7, %v6276_v16  ;;  %6280 = vst.msk [vmem:[#allocation8 + $0x8] sm:$0xff] %vm6278_vm7, %v6277_v3 }
 0x906   :  { %7770 = shalt.err (!%p7767_p0)
}
 0x907   :  { %s7771_s23 = scalar_lea.hbm %s9870_s9, 256 }
 0x908   :  { %p7772_p1 = scmp.ne.s32.totalorder %s9870_s9, %s7771_s23  ;;  %p7775_p2 = scmp.lt.u32.totalorder %s7771_s23, %s9870_s9 }
 0x90a   :  { %p7777_p3 = pnand %p7775_p2, %p7772_p1 }
 0x90c   :  { %7780 = shalt.err (!%p7777_p3)
}
 0x90d   :  { %6292 = dma.vmem_to_hbm [thread:$0]  %s6287_s18, 256, %s9870_s9, [#allocation4], %s7789_s21, %s7789_s21, %s7790_s22  }
 0x90e   :  { %7785 = dma.done.wait [#allocation4], 256  }
 0x90f   :  { %7786 = vsyncadd [#allocation4], 4294967040 }
 0x910   :  { %6296 = vsyncpa [#allocation3], 1 }
 0x911   :  { %6297 = vsyncpa [#allocation6], 1 }
 0x912   :  { %6298 = vsyncpa [#allocation4], 1 }

</bundles_post_ra>
